<compile_context>
chip_gen: v7x
topology: tpu7x:2x2x1
jax: 0.10.0
libtpu: 0.0.40
codegen_flags: <defaults>
</compile_context>

<pallas_src>
import functools
import math

import jax
import jax.numpy as jnp
from jax import lax
from jax.experimental import pallas as pl
from jax.experimental.pallas import tpu as pltpu

PARAM_DTYPE = jnp.bfloat16             # matmul weight storage dtype (f32 accumulation)
LN_EPS = 1e-5
VMEM_LIMIT_BYTES = 32 * 1024 * 1024    # safe on v5e/v6e (128 MiB) and v7x (64 MiB / TC)
ROW_TILE = 256                         # row tile for the standalone patch-embed matmul


# ----------------------------------------------------------------------------- helpers
def _round_up(x, m):
    return ((x + m - 1) // m) * m


def _gelu_exact(x):
    # torch.nn.GELU() default is the exact (erf) formulation.
    return 0.5 * x * (1.0 + lax.erf(x * (1.0 / math.sqrt(2.0))))


def _layer_norm(x, g, b, eps):
    mu = jnp.mean(x, axis=-1, keepdims=True)
    xc = x - mu
    var = jnp.mean(xc * xc, axis=-1, keepdims=True)
    return xc * lax.rsqrt(var + eps) * g + b


# ----------------------------------------------------------------------------- patch-embed matmul
def _linear_kernel(x_ref, w_ref, b_ref, o_ref):
    """out = x @ W + b, bf16 MXU operands, f32 accumulation."""
    x = x_ref[...].astype(w_ref.dtype)
    acc = jnp.dot(x, w_ref[...], preferred_element_type=jnp.float32)
    o_ref[...] = (acc + b_ref[...].astype(jnp.float32)).astype(o_ref.dtype)


def linear_pallas(x2, w, b, *, out_dtype=jnp.float32, tile_m=ROW_TILE):
    """x2: (M, D), w: (D, Dout) bf16, b: (Dout,) -> (M, Dout)."""
    M0, D = x2.shape
    Dout = w.shape[1]
    tm = min(tile_m, _round_up(M0, 8))
    Mp = _round_up(M0, tm)
    if Mp != M0:
        x2 = jnp.pad(x2, ((0, Mp - M0), (0, 0)))

    cost = pl.CostEstimate(
        flops=int(2 * Mp * D * Dout),
        transcendentals=0,
        bytes_accessed=int(x2.size * x2.dtype.itemsize + w.size * w.dtype.itemsize
                           + b.size * 4 + Mp * Dout * jnp.dtype(out_dtype).itemsize),
    )
    out = pl.pallas_call(
        _linear_kernel,
        out_shape=jax.ShapeDtypeStruct((Mp, Dout), out_dtype),
        grid=(Mp // tm,),
        in_specs=[
            pl.BlockSpec((tm, D), lambda i: (i, 0)),      # x row tile
            pl.BlockSpec((D, Dout), lambda i: (0, 0)),    # weight (resident, bf16)
            pl.BlockSpec((1, Dout), lambda i: (0, 0)),    # bias
        ],
        out_specs=pl.BlockSpec((tm, Dout), lambda i: (i, 0)),
        compiler_params=pltpu.CompilerParams(
            dimension_semantics=("parallel",),
            vmem_limit_bytes=VMEM_LIMIT_BYTES),
        cost_estimate=cost,
    )(x2, w, b.reshape(1, Dout))
    return out[:M0]


# ----------------------------------------------------------------------------- fused ViT kernel
def _vit_fused_kernel(z0_ref,
                      ln1g_ref, ln1b_ref, qkvw_ref, qkvb_ref,
                      projw_ref, projb_ref,
                      ln2g_ref, ln2b_ref, fc1w_ref, fc1b_ref, fc2w_ref, fc2b_ref,
                      normg_ref, normb_ref, headw_ref, headb_ref,
                      logits_ref,
                      z_ref,
                      *, batch, n_pad, n_real, num_heads, eps, scale):
    """One grid step == one transformer block. Residual stream z lives in z_ref (f32 VMEM)."""
    d = pl.program_id(0)

    @pl.when(d == 0)
    def _init():
        z_ref[...] = z0_ref[...].astype(jnp.float32)

    z = z_ref[...]                                   # (Mp, E) f32
    E = z.shape[-1]
    hd = E // num_heads
    wdt = qkvw_ref.dtype

    # ---------------- attention branch (LN1 fused into the QKV matmul) ----------------
    h = _layer_norm(z, ln1g_ref[...], ln1b_ref[...], eps)
    qkv = jnp.dot(h.astype(wdt), qkvw_ref[...],
                  preferred_element_type=jnp.float32) + qkvb_ref[...]     # (Mp, 3E) f32

    # key-padding mask (columns >= n_real are padding tokens)
    kmask = lax.broadcasted_iota(jnp.int32, (n_pad, n_pad), 1) < n_real
    pw = projw_ref[...]                              # (E, E) bf16, resident for this layer

    per_batch = []
    for b in range(batch):
        r0 = b * n_pad
        acc_b = jnp.zeros((n_pad, E), jnp.float32)
        for hidx in range(num_heads):
            c0 = hidx * hd
            q_bh = qkv[r0:r0 + n_pad, c0:c0 + hd].astype(wdt)             # (Np, hd)
            k_bh = qkv[r0:r0 + n_pad, E + c0:E + c0 + hd].astype(wdt)
            v_bh = qkv[r0:r0 + n_pad, 2 * E + c0:2 * E + c0 + hd].astype(wdt)
            s = lax.dot_general(q_bh, k_bh, (((1,), (1,)), ((), ())),
                                preferred_element_type=jnp.float32) * scale   # (Np, Np)
            s = jnp.where(kmask, s, -1e30)
            s = s - jnp.max(s, axis=-1, keepdims=True)
            p = jnp.exp(s)
            p = p * pl.reciprocal(jnp.sum(p, axis=-1, keepdims=True), approx=True)
            o = jnp.dot(p.astype(wdt), v_bh,
                        preferred_element_type=jnp.float32)                 # (Np, hd)
            # fold the output projection per head: attn @ Wp == sum_h o_h @ Wp[h*hd:(h+1)*hd]
            acc_b = acc_b + jnp.dot(o.astype(wdt), pw[c0:c0 + hd, :],
                                    preferred_element_type=jnp.float32)
        per_batch.append(acc_b + projb_ref[...])
    z = z + jnp.concatenate(per_batch, axis=0)       # residual fused

    # ---------------- MLP branch (LN2 fused into fc1, residual fused) ----------------
    h2 = _layer_norm(z, ln2g_ref[...], ln2b_ref[...], eps)
    m = jnp.dot(h2.astype(wdt), fc1w_ref[...],
                preferred_element_type=jnp.float32) + fc1b_ref[...]
    m = _gelu_exact(m)
    m = jnp.dot(m.astype(wdt), fc2w_ref[...],
                preferred_element_type=jnp.float32) + fc2b_ref[...]
    z = z + m
    z_ref[...] = z

    # ---------------- finalize: final LayerNorm + classifier head ----------------
    @pl.when(d == pl.num_programs(0) - 1)
    def _finalize():
        zn = _layer_norm(z, normg_ref[...], normb_ref[...], eps)
        logits = jnp.dot(zn.astype(headw_ref.dtype), headw_ref[...],
                         preferred_element_type=jnp.float32) + headb_ref[...]
        logits_ref[...] = logits.astype(logits_ref.dtype)


def vit_fused_pallas(z0, blocks, norm_g, norm_b, head_w, head_b, *,
                     batch, n_pad, n_real, num_heads, eps=LN_EPS):
    """z0: (B*n_pad, E) f32 residual stream at layer 0 -> logits (B*n_pad, num_classes)."""
    Mp, E = z0.shape
    depth = blocks["qkv_w"].shape[0]
    Hd = blocks["fc1_w"].shape[-1]
    nc = head_w.shape[-1]
    hd = E // num_heads
    scale = float(hd) ** -0.5

    def per_layer(a, b_):
        return pl.BlockSpec((None, a, b_), lambda d: (d, 0, 0))

    def resident(a, b_):
        return pl.BlockSpec((a, b_), lambda d: (0, 0))

    in_specs = [
        resident(Mp, E),                                   # z0 (resident across layers)
        per_layer(1, E), per_layer(1, E),                  # ln1 gamma/beta
        per_layer(E, 3 * E), per_layer(1, 3 * E),          # qkv W/b
        per_layer(E, E), per_layer(1, E),                  # proj W/b
        per_layer(1, E), per_layer(1, E),                  # ln2 gamma/beta
        per_layer(E, Hd), per_layer(1, Hd),                # fc1 W/b
        per_layer(Hd, E), per_layer(1, E),                 # fc2 W/b
        resident(1, E), resident(1, E),                    # final norm gamma/beta
        resident(E, nc), resident(1, nc),                  # head W/b
    ]

    param_bytes = sum(int(v.size) * v.dtype.itemsize for v in blocks.values())
    param_bytes += sum(int(v.size) * v.dtype.itemsize
                       for v in (norm_g, norm_b, head_w, head_b))
    flops = depth * 2 * Mp * E * (3 * E + E + 2 * Hd)
    flops += depth * batch * num_heads * (4 * n_pad * n_pad * hd + 2 * n_pad * hd * E)
    flops += 2 * Mp * E * nc
    cost = pl.CostEstimate(
        flops=int(flops),
        transcendentals=int(depth * (Mp * Hd + batch * num_heads * n_pad * n_pad)),
        bytes_accessed=int(param_bytes + z0.size * z0.dtype.itemsize + Mp * nc * 4),
    )

    kern = functools.partial(
        _vit_fused_kernel, batch=batch, n_pad=n_pad, n_real=n_real,
        num_heads=num_heads, eps=eps, scale=scale)

    # NOTE: residual stream + one layer's (double-buffered) weights easily fit VMEM at
    # this deployment scale (and at the module's default 128x313 / embed_dim=192 config).
    return pl.pallas_call(
        kern,
        out_shape=jax.ShapeDtypeStruct((Mp, nc), jnp.float32),
        grid=(depth,),
        in_specs=in_specs,
        out_specs=pl.BlockSpec((Mp, nc), lambda d: (0, 0)),
        scratch_shapes=[pltpu.VMEM((Mp, E), jnp.float32)],
        compiler_params=pltpu.CompilerParams(
            dimension_semantics=("arbitrary",),
            vmem_limit_bytes=VMEM_LIMIT_BYTES),
        cost_estimate=cost,
    )(z0,
      blocks["ln1_g"], blocks["ln1_b"], blocks["qkv_w"], blocks["qkv_b"],
      blocks["proj_w"], blocks["proj_b"], blocks["ln2_g"], blocks["ln2_b"],
      blocks["fc1_w"], blocks["fc1_b"], blocks["fc2_w"], blocks["fc2_b"],
      norm_g, norm_b, head_w, head_b)


# ----------------------------------------------------------------------------- model
@functools.partial(jax.jit, static_argnames=("patch_size", "num_heads"))
def vit_forward(params, x, *, patch_size, num_heads):
    """x: (B, C, Himg, Wimg) -> logits (B, num_classes)."""
    B, C, Himg, Wimg = x.shape
    P = patch_size
    gh, gw = Himg // P, Wimg // P
    E = params["patch_w"].shape[1]

    # Patch embedding: Conv2d(kernel=stride=P) == patchify + matmul (Pallas kernel #1).
    xp = x.reshape(B, C, gh, P, gw, P).transpose(0, 2, 4, 1, 3, 5)
    xp = xp.reshape(B * gh * gw, C * P * P)
    tok = linear_pallas(xp, params["patch_w"], params["patch_b"]).reshape(B, gh * gw, E)

    cls = jnp.broadcast_to(params["cls_token"], (B, 1, E))
    z = jnp.concatenate([cls, tok], axis=1) + params["pos_embed"]      # (B, N, E)
    N = z.shape[1]
    n_pad = _round_up(N, 8)
    if n_pad != N:
        z = jnp.pad(z, ((0, 0), (0, n_pad - N), (0, 0)))               # zero pad tokens
    z0 = z.reshape(B * n_pad, E)

    # Entire transformer + final LN + head in one fused pallas_call (kernel #2).
    logits = vit_fused_pallas(
        z0, params["blocks"], params["norm_g"], params["norm_b"],
        params["head_w"], params["head_b"],
        batch=B, n_pad=n_pad, n_real=N, num_heads=num_heads)           # (B*n_pad, nc)

    return logits.reshape(B, n_pad, -1)[:, 0, :]                       # CLS-token logits


def init_vit_params(key, *, img_size, patch_size, in_chans, embed_dim, depth,
                    num_heads, mlp_ratio, num_classes, param_dtype=PARAM_DTYPE):
    """Parameter pytree laid out for the kernels: weights transposed for x @ W and stored
    in bf16; per-layer params stacked on a leading depth axis. Biases / LN params get small
    random values (rather than the torch zero-init) so every data path is exercised by the
    self-check below; forward semantics are identical."""
    def trunc(k, shape, std=0.02):
        return std * jax.random.truncated_normal(k, -2.0, 2.0, shape, jnp.float32)

    gh, gw = img_size[0] // patch_size, img_size[1] // patch_size
    num_patches = gh * gw
    patch_dim = in_chans * patch_size * patch_size
    hidden = int(embed_dim * mlp_ratio)
    k = jax.random.split(key, 20)

    return {
        "patch_w": trunc(k[0], (patch_dim, embed_dim)).astype(param_dtype),
        "patch_b": trunc(k[1], (embed_dim,)),
        "cls_token": trunc(k[2], (1, 1, embed_dim)),
        "pos_embed": trunc(k[3], (1, num_patches + 1, embed_dim)),
        "norm_g": 1.0 + trunc(k[4], (1, embed_dim), std=0.05),
        "norm_b": trunc(k[5], (1, embed_dim), std=0.05),
        "head_w": trunc(k[6], (embed_dim, num_classes)).astype(param_dtype),
        "head_b": trunc(k[7], (1, num_classes)),
        "blocks": {
            "ln1_g": 1.0 + trunc(k[8], (depth, 1, embed_dim), std=0.05),
            "ln1_b": trunc(k[9], (depth, 1, embed_dim), std=0.05),
            "qkv_w": trunc(k[10], (depth, embed_dim, 3 * embed_dim)).astype(param_dtype),
            "qkv_b": trunc(k[11], (depth, 1, 3 * embed_dim)),
            "proj_w": trunc(k[12], (depth, embed_dim, embed_dim)).astype(param_dtype),
            "proj_b": trunc(k[13], (depth, 1, embed_dim)),
            "ln2_g": 1.0 + trunc(k[14], (depth, 1, embed_dim), std=0.05),
            "ln2_b": trunc(k[15], (depth, 1, embed_dim), std=0.05),
            "fc1_w": trunc(k[16], (depth, embed_dim, hidden)).astype(param_dtype),
            "fc1_b": trunc(k[17], (depth, 1, hidden)),
            "fc2_w": trunc(k[18], (depth, hidden, embed_dim)).astype(param_dtype),
            "fc2_b": trunc(k[19], (depth, 1, embed_dim)),
        },
    }


# ----------------------------------------------------------------------------- reference
def vit_reference(params, x, *, patch_size, num_heads):
    """Pure-JAX float32 reference with identical math (bf16 weights upcast to f32)."""
    f32 = lambda a: a.astype(jnp.float32)
    B, C, Himg, Wimg = x.shape
    P = patch_size
    gh, gw = Himg // P, Wimg // P
    xp = x.reshape(B, C, gh, P, gw, P).transpose(0, 2, 4, 1, 3, 5).reshape(B, gh * gw, C * P * P)
    tok = xp @ f32(params["patch_w"]) + params["patch_b"]
    E = tok.shape[-1]
    cls = jnp.broadcast_to(params["cls_token"], (B, 1, E))
    z = jnp.concatenate([cls, tok], axis=1) + params["pos_embed"]
    N = z.shape[1]
    hd = E // num_heads
    scale = hd ** -0.5

    def ln(u, g, b):
        mu = u.mean(-1, keepdims=True)
        var = ((u - mu) ** 2).mean(-1, keepdims=True)
        return (u - mu) / jnp.sqrt(var + LN_EPS) * g + b

    blk = params["blocks"]
    depth = blk["qkv_w"].shape[0]
    for d in range(depth):
        h = ln(z, blk["ln1_g"][d, 0], blk["ln1_b"][d, 0])
        qkv = h @ f32(blk["qkv_w"][d]) + blk["qkv_b"][d, 0]
        qkv = qkv.reshape(B, N, 3, num_heads, hd).transpose(2, 0, 3, 1, 4)
        q, k, v = qkv[0], qkv[1], qkv[2]
        s = jnp.einsum("bhqd,bhkd->bhqk", q, k) * scale
        p = jax.nn.softmax(s, axis=-1)
        a = jnp.einsum("bhqk,bhkd->bhqd", p, v).transpose(0, 2, 1, 3).reshape(B, N, E)
        z = z + (a @ f32(blk["proj_w"][d]) + blk["proj_b"][d, 0])
        h2 = ln(z, blk["ln2_g"][d, 0], blk["ln2_b"][d, 0])
        m = _gelu_exact(h2 @ f32(blk["fc1_w"][d]) + blk["fc1_b"][d, 0])
        z = z + (m @ f32(blk["fc2_w"][d]) + blk["fc2_b"][d, 0])
    z = ln(z, params["norm_g"][0], params["norm_b"][0])
    return z[:, 0] @ f32(params["head_w"]) + params["head_b"][0]


# ----------------------------------------------------------------------------- main
if __name__ == "__main__":
    # Small shapes consistent with the module (audio-spectrogram ViT):
    #   3-channel input, 16x16 patches, embed_dim=192, 6 heads, mlp_ratio=4, 1 class.
    B = 2
    in_chans = 3
    img_size = (32, 48)       # -> 2x3 = 6 patches + CLS = 7 tokens (padded to 8 in-kernel)
    patch_size = 16
    embed_dim = 192
    depth = 2
    num_heads = 6
    mlp_ratio = 4.0
    num_classes = 1

    key = jax.random.PRNGKey(0)
    kx, kp = jax.random.split(key)
    x = jax.random.normal(kx, (B, in_chans) + img_size, dtype=jnp.float32)
    params = init_vit_params(
        kp, img_size=img_size, patch_size=patch_size, in_chans=in_chans,
        embed_dim=embed_dim, depth=depth, num_heads=num_heads,
        mlp_ratio=mlp_ratio, num_classes=num_classes)

    out = vit_forward(params, x, patch_size=patch_size, num_heads=num_heads)
    out = jax.block_until_ready(out)

    ref = vit_reference(params, x, patch_size=patch_size, num_heads=num_heads)
    assert out.shape == (B, num_classes), out.shape
    max_err = float(jnp.max(jnp.abs(out - ref)))
    tol = 5e-2 * max(1.0, float(jnp.max(jnp.abs(ref))))
    assert max_err < tol, f"mismatch vs reference: max abs err {max_err} (tol {tol})"

    print("KERNEL_OK")
</pallas_src>

<mosaic_0001>
module attributes {stable_mosaic.version = 11 : i64} {
  func.func @_linear_kernel(%arg0: i32, %arg1: memref<16x768xf32, #tpu.memory_space<vmem>>, %arg2: memref<768x192xbf16, #tpu.memory_space<vmem>>, %arg3: memref<1x192xf32, #tpu.memory_space<vmem>>, %arg4: memref<16x192xf32, #tpu.memory_space<vmem>>) attributes {dimension_semantics = [#tpu.dimension_semantics<parallel>], iteration_bounds = array<i64: 1>, scalar_prefetch = 0 : i64, scratch_operands = 0 : i64, tpu.core_type = #tpu.core_type<tc>, window_params = [{transform_indices = @transform_0, window_bounds = array<i64: 16, 768>}, {pipeline_mode = #tpu.pipeline_mode<synchronous>, transform_indices = @transform_1, window_bounds = array<i64: 768, 192>}, {pipeline_mode = #tpu.pipeline_mode<synchronous>, transform_indices = @transform_2, window_bounds = array<i64: 1, 192>}, {transform_indices = @transform_3, window_bounds = array<i64: 16, 192>}]} {
    %c0 = arith.constant 0 : index
    %c0_0 = arith.constant 0 : index
    %0 = vector.load %arg1[%c0, %c0_0] : memref<16x768xf32, #tpu.memory_space<vmem>>, vector<16x768xf32>
    %1 = arith.truncf %0 : vector<16x768xf32> to vector<16x768xbf16>
    %c0_1 = arith.constant 0 : index
    %c0_2 = arith.constant 0 : index
    %2 = vector.load %arg2[%c0_1, %c0_2] : memref<768x192xbf16, #tpu.memory_space<vmem>>, vector<768x192xbf16>
    %cst = arith.constant dense<0.000000e+00> : vector<16x192xf32>
    %3 = tpu.matmul %1, %2, %cst {dimension_numbers = #tpu.dot_dimension_numbers<[1], [0], [0], [1], [0, 0, 1, 1], [], []>} : vector<16x768xbf16>, vector<768x192xbf16>, vector<16x192xf32> -> vector<16x192xf32>
    %c0_3 = arith.constant 0 : index
    %c0_4 = arith.constant 0 : index
    %4 = vector.load %arg3[%c0_3, %c0_4] : memref<1x192xf32, #tpu.memory_space<vmem>>, vector<1x192xf32>
    %5 = vector.broadcast %4 : vector<1x192xf32> to vector<16x192xf32>
    %6 = arith.addf %3, %5 : vector<16x192xf32>
    %c0_5 = arith.constant 0 : index
    %c0_6 = arith.constant 0 : index
    %7 = vector.load %arg4[%c0_5, %c0_6] : memref<16x192xf32, #tpu.memory_space<vmem>>, vector<16x192xf32>
    tpu.vector_store %arg4[%c0_5, %c0_6], %6 {strides = array<i32>} : memref<16x192xf32, #tpu.memory_space<vmem>>, vector<16x192xf32>,
    return
  }
  func.func @transform_0(%arg0: i32) -> (i32, i32) {
    %c0_i32 = arith.constant 0 : i32
    %c0_i32_0 = arith.constant 0 : i32
    return %arg0, %c0_i32 : i32, i32
  }
  func.func @transform_1(%arg0: i32) -> (i32, i32) {
    %c0_i32 = arith.constant 0 : i32
    %c0_i32_0 = arith.constant 0 : i32
    %c0_i32_1 = arith.constant 0 : i32
    return %c0_i32, %c0_i32_0 : i32, i32
  }
  func.func @transform_2(%arg0: i32) -> (i32, i32) {
    %c0_i32 = arith.constant 0 : i32
    %c0_i32_0 = arith.constant 0 : i32
    %c0_i32_1 = arith.constant 0 : i32
    return %c0_i32, %c0_i32_0 : i32, i32
  }
  func.func @transform_3(%arg0: i32) -> (i32, i32) {
    %c0_i32 = arith.constant 0 : i32
    %c0_i32_0 = arith.constant 0 : i32
    return %arg0, %c0_i32 : i32, i32
  }
}

module attributes {stable_mosaic.version = 11 : i64} {
  func.func @_vit_fused_kernel(%arg0: i32, %arg1: memref<16x192xf32, #tpu.memory_space<vmem>>, %arg2: memref<1x1x192xf32, #tpu.memory_space<vmem>>, %arg3: memref<1x1x192xf32, #tpu.memory_space<vmem>>, %arg4: memref<1x192x576xbf16, #tpu.memory_space<vmem>>, %arg5: memref<1x1x576xf32, #tpu.memory_space<vmem>>, %arg6: memref<1x192x192xbf16, #tpu.memory_space<vmem>>, %arg7: memref<1x1x192xf32, #tpu.memory_space<vmem>>, %arg8: memref<1x1x192xf32, #tpu.memory_space<vmem>>, %arg9: memref<1x1x192xf32, #tpu.memory_space<vmem>>, %arg10: memref<1x192x768xbf16, #tpu.memory_space<vmem>>, %arg11: memref<1x1x768xf32, #tpu.memory_space<vmem>>, %arg12: memref<1x768x192xbf16, #tpu.memory_space<vmem>>, %arg13: memref<1x1x192xf32, #tpu.memory_space<vmem>>, %arg14: memref<1x192xf32, #tpu.memory_space<vmem>>, %arg15: memref<1x192xf32, #tpu.memory_space<vmem>>, %arg16: memref<192x1xbf16, #tpu.memory_space<vmem>>, %arg17: memref<1x1xf32, #tpu.memory_space<vmem>>, %arg18: memref<16x1xf32, #tpu.memory_space<vmem>>, %arg19: memref<16x192xf32, #tpu.memory_space<vmem>>) attributes {dimension_semantics = [#tpu.dimension_semantics<arbitrary>], iteration_bounds = array<i64: 2>, scalar_prefetch = 0 : i64, scratch_operands = 1 : i64, tpu.core_type = #tpu.core_type<tc>, window_params = [{pipeline_mode = #tpu.pipeline_mode<synchronous>, transform_indices = @transform_0, window_bounds = array<i64: 16, 192>}, {transform_indices = @transform_1, window_bounds = array<i64: 1, 1, 192>}, {transform_indices = @transform_2, window_bounds = array<i64: 1, 1, 192>}, {transform_indices = @transform_3, window_bounds = array<i64: 1, 192, 576>}, {transform_indices = @transform_4, window_bounds = array<i64: 1, 1, 576>}, {transform_indices = @transform_5, window_bounds = array<i64: 1, 192, 192>}, {transform_indices = @transform_6, window_bounds = array<i64: 1, 1, 192>}, {transform_indices = @transform_7, window_bounds = array<i64: 1, 1, 192>}, {transform_indices = @transform_8, window_bounds = array<i64: 1, 1, 192>}, {transform_indices = @transform_9, window_bounds = array<i64: 1, 192, 768>}, {transform_indices = @transform_10, window_bounds = array<i64: 1, 1, 768>}, {transform_indices = @transform_11, window_bounds = array<i64: 1, 768, 192>}, {transform_indices = @transform_12, window_bounds = array<i64: 1, 1, 192>}, {pipeline_mode = #tpu.pipeline_mode<synchronous>, transform_indices = @transform_13, window_bounds = array<i64: 1, 192>}, {pipeline_mode = #tpu.pipeline_mode<synchronous>, transform_indices = @transform_14, window_bounds = array<i64: 1, 192>}, {pipeline_mode = #tpu.pipeline_mode<synchronous>, transform_indices = @transform_15, window_bounds = array<i64: 192, 1>}, {pipeline_mode = #tpu.pipeline_mode<synchronous>, transform_indices = @transform_16, window_bounds = array<i64: 1, 1>}, {pipeline_mode = #tpu.pipeline_mode<synchronous>, transform_indices = @transform_17, window_bounds = array<i64: 16, 1>}]} {
    %c0_i32 = arith.constant 0 : i32
    %0 = arith.cmpi eq, %arg0, %c0_i32 : i32
    %1 = arith.extui %0 : i1 to i32
    %c0_i32_0 = arith.constant 0 : i32
    %2 = arith.cmpi ne, %1, %c0_i32_0 : i32
    scf.if %2 {
      %c0_145 = arith.constant 0 : index
      %c0_146 = arith.constant 0 : index
      %430 = vector.load %arg1[%c0_145, %c0_146] : memref<16x192xf32, #tpu.memory_space<vmem>>, vector<16x192xf32>
      %c0_147 = arith.constant 0 : index
      %c0_148 = arith.constant 0 : index
      %431 = vector.load %arg19[%c0_147, %c0_148] : memref<16x192xf32, #tpu.memory_space<vmem>>, vector<16x192xf32>
      tpu.vector_store %arg19[%c0_147, %c0_148], %430 {strides = array<i32>} : memref<16x192xf32, #tpu.memory_space<vmem>>, vector<16x192xf32>,
    } else {
    }
    %c0 = arith.constant 0 : index
    %c0_1 = arith.constant 0 : index
    %3 = vector.load %arg19[%c0, %c0_1] : memref<16x192xf32, #tpu.memory_space<vmem>>, vector<16x192xf32>
    %c0_2 = arith.constant 0 : index
    %c0_3 = arith.constant 0 : index
    %c0_4 = arith.constant 0 : index
    %4 = vector.load %arg2[%c0_2, %c0_3, %c0_4] : memref<1x1x192xf32, #tpu.memory_space<vmem>>, vector<1x1x192xf32>
    %5 = vector.shape_cast %4 : vector<1x1x192xf32> to vector<1x192xf32>
    %c0_5 = arith.constant 0 : index
    %c0_6 = arith.constant 0 : index
    %c0_7 = arith.constant 0 : index
    %6 = vector.load %arg3[%c0_5, %c0_6, %c0_7] : memref<1x1x192xf32, #tpu.memory_space<vmem>>, vector<1x1x192xf32>
    %7 = vector.shape_cast %6 : vector<1x1x192xf32> to vector<1x192xf32>
    %cst = arith.constant dense<0.000000e+00> : vector<16xf32>
    %8 = vector.multi_reduction <add>, %3, %cst [1] : vector<16x192xf32> to vector<16xf32>
    %9 = vector.shape_cast %8 : vector<16xf32> to vector<16x1xf32>
    %cst_8 = arith.constant 1.920000e+02 : f32
    %10 = vector.broadcast %cst_8 : f32 to vector<16x1xf32>
    %11 = arith.divf %9, %10 : vector<16x1xf32>
    %12 = vector.broadcast %11 : vector<16x1xf32> to vector<16x192xf32>
    %13 = arith.subf %3, %12 : vector<16x192xf32>
    %14 = arith.mulf %13, %13 : vector<16x192xf32>
    %cst_9 = arith.constant dense<0.000000e+00> : vector<16xf32>
    %15 = vector.multi_reduction <add>, %14, %cst_9 [1] : vector<16x192xf32> to vector<16xf32>
    %16 = vector.shape_cast %15 : vector<16xf32> to vector<16x1xf32>
    %cst_10 = arith.constant 1.920000e+02 : f32
    %17 = vector.broadcast %cst_10 : f32 to vector<16x1xf32>
    %18 = arith.divf %16, %17 : vector<16x1xf32>
    %cst_11 = arith.constant 9.99999974E-6 : f32
    %19 = vector.broadcast %cst_11 : f32 to vector<16x1xf32>
    %20 = arith.addf %18, %19 : vector<16x1xf32>
    %21 = math.rsqrt %20 : vector<16x1xf32>
    %22 = vector.broadcast %21 : vector<16x1xf32> to vector<16x192xf32>
    %23 = arith.mulf %13, %22 : vector<16x192xf32>
    %24 = vector.broadcast %5 : vector<1x192xf32> to vector<16x192xf32>
    %25 = arith.mulf %23, %24 : vector<16x192xf32>
    %26 = vector.broadcast %7 : vector<1x192xf32> to vector<16x192xf32>
    %27 = arith.addf %25, %26 : vector<16x192xf32>
    %28 = arith.truncf %27 : vector<16x192xf32> to vector<16x192xbf16>
    %c0_12 = arith.constant 0 : index
    %c0_13 = arith.constant 0 : index
    %c0_14 = arith.constant 0 : index
    %29 = vector.load %arg4[%c0_12, %c0_13, %c0_14] : memref<1x192x576xbf16, #tpu.memory_space<vmem>>, vector<1x192x576xbf16>
    %30 = vector.shape_cast %29 : vector<1x192x576xbf16> to vector<192x576xbf16>
    %cst_15 = arith.constant dense<0.000000e+00> : vector<16x576xf32>
    %31 = tpu.matmul %28, %30, %cst_15 {dimension_numbers = #tpu.dot_dimension_numbers<[1], [0], [0], [1], [0, 0, 1, 1], [], []>} : vector<16x192xbf16>, vector<192x576xbf16>, vector<16x576xf32> -> vector<16x576xf32>
    %c0_16 = arith.constant 0 : index
    %c0_17 = arith.constant 0 : index
    %c0_18 = arith.constant 0 : index
    %32 = vector.load %arg5[%c0_16, %c0_17, %c0_18] : memref<1x1x576xf32, #tpu.memory_space<vmem>>, vector<1x1x576xf32>
    %33 = vector.shape_cast %32 : vector<1x1x576xf32> to vector<1x576xf32>
    %34 = vector.broadcast %33 : vector<1x576xf32> to vector<16x576xf32>
    %35 = arith.addf %31, %34 : vector<16x576xf32>
    %36 = tpu.iota {dimensions = array<i32: 1>} : vector<8x8xi32>
    %c7_i32 = arith.constant 7 : i32
    %37 = vector.broadcast %c7_i32 : i32 to vector<8x8xi32>
    %38 = arith.cmpi slt, %36, %37 : vector<8x8xi32>
    %c0_19 = arith.constant 0 : index
    %c0_20 = arith.constant 0 : index
    %c0_21 = arith.constant 0 : index
    %39 = vector.load %arg6[%c0_19, %c0_20, %c0_21] : memref<1x192x192xbf16, #tpu.memory_space<vmem>>, vector<1x192x192xbf16>
    %40 = vector.shape_cast %39 : vector<1x192x192xbf16> to vector<192x192xbf16>
    %cst_22 = arith.constant 0.000000e+00 : f32
    %41 = vector.broadcast %cst_22 : f32 to vector<8x192xf32>
    %42 = vector.extract_strided_slice %35 {offsets = [0, 0], sizes = [8, 32], strides = [1, 1]} : vector<16x576xf32> to vector<8x32xf32>
    %43 = arith.truncf %42 : vector<8x32xf32> to vector<8x32xbf16>
    %44 = vector.extract_strided_slice %35 {offsets = [0, 192], sizes = [8, 32], strides = [1, 1]} : vector<16x576xf32> to vector<8x32xf32>
    %45 = arith.truncf %44 : vector<8x32xf32> to vector<8x32xbf16>
    %46 = vector.extract_strided_slice %35 {offsets = [0, 384], sizes = [8, 32], strides = [1, 1]} : vector<16x576xf32> to vector<8x32xf32>
    %47 = arith.truncf %46 : vector<8x32xf32> to vector<8x32xbf16>
    %cst_23 = arith.constant dense<0.000000e+00> : vector<8x8xf32>
    %48 = tpu.matmul %43, %45, %cst_23 {dimension_numbers = #tpu.dot_dimension_numbers<[1], [1], [0], [0], [0, 0, 1, 0], [], []>} : vector<8x32xbf16>, vector<8x32xbf16>, vector<8x8xf32> -> vector<8x8xf32>
    %cst_24 = arith.constant 0.176776692 : f32
    %49 = vector.broadcast %cst_24 : f32 to vector<8x8xf32>
    %50 = arith.mulf %48, %49 : vector<8x8xf32>
    %cst_25 = arith.constant -1.000000e+30 : f32
    %51 = vector.broadcast %cst_25 : f32 to vector<8x8xf32>
    %52 = arith.select %38, %50, %51 : vector<8x8xi1>, vector<8x8xf32>
    %cst_26 = arith.constant dense<0xFF800000> : vector<8xf32>
    %53 = vector.multi_reduction <maximumf>, %52, %cst_26 [1] : vector<8x8xf32> to vector<8xf32>
    %54 = vector.shape_cast %53 : vector<8xf32> to vector<8x1xf32>
    %55 = vector.broadcast %54 : vector<8x1xf32> to vector<8x8xf32>
    %56 = arith.subf %52, %55 : vector<8x8xf32>
    %57 = math.exp %56 : vector<8x8xf32>
    %cst_27 = arith.constant dense<0.000000e+00> : vector<8xf32>
    %58 = vector.multi_reduction <add>, %57, %cst_27 [1] : vector<8x8xf32> to vector<8xf32>
    %59 = vector.shape_cast %58 : vector<8xf32> to vector<8x1xf32>
    %60 = tpu.reciprocal %59 {approx = true} : vector<8x1xf32> -> vector<8x1xf32>
    %61 = vector.broadcast %60 : vector<8x1xf32> to vector<8x8xf32>
    %62 = arith.mulf %57, %61 : vector<8x8xf32>
    %63 = arith.truncf %62 : vector<8x8xf32> to vector<8x8xbf16>
    %cst_28 = arith.constant dense<0.000000e+00> : vector<8x32xf32>
    %64 = tpu.matmul %63, %47, %cst_28 {dimension_numbers = #tpu.dot_dimension_numbers<[1], [0], [0], [1], [0, 0, 1, 1], [], []>} : vector<8x8xbf16>, vector<8x32xbf16>, vector<8x32xf32> -> vector<8x32xf32>
    %65 = arith.truncf %64 : vector<8x32xf32> to vector<8x32xbf16>
    %66 = vector.extract_strided_slice %40 {offsets = [0, 0], sizes = [32, 192], strides = [1, 1]} : vector<192x192xbf16> to vector<32x192xbf16>
    %cst_29 = arith.constant dense<0.000000e+00> : vector<8x192xf32>
    %67 = tpu.matmul %65, %66, %cst_29 {dimension_numbers = #tpu.dot_dimension_numbers<[1], [0], [0], [1], [0, 0, 1, 1], [], []>} : vector<8x32xbf16>, vector<32x192xbf16>, vector<8x192xf32> -> vector<8x192xf32>
    %68 = arith.addf %41, %67 : vector<8x192xf32>
    %69 = vector.extract_strided_slice %35 {offsets = [0, 32], sizes = [8, 32], strides = [1, 1]} : vector<16x576xf32> to vector<8x32xf32>
    %70 = arith.truncf %69 : vector<8x32xf32> to vector<8x32xbf16>
    %71 = vector.extract_strided_slice %35 {offsets = [0, 224], sizes = [8, 32], strides = [1, 1]} : vector<16x576xf32> to vector<8x32xf32>
    %72 = arith.truncf %71 : vector<8x32xf32> to vector<8x32xbf16>
    %73 = vector.extract_strided_slice %35 {offsets = [0, 416], sizes = [8, 32], strides = [1, 1]} : vector<16x576xf32> to vector<8x32xf32>
    %74 = arith.truncf %73 : vector<8x32xf32> to vector<8x32xbf16>
    %cst_30 = arith.constant dense<0.000000e+00> : vector<8x8xf32>
    %75 = tpu.matmul %70, %72, %cst_30 {dimension_numbers = #tpu.dot_dimension_numbers<[1], [1], [0], [0], [0, 0, 1, 0], [], []>} : vector<8x32xbf16>, vector<8x32xbf16>, vector<8x8xf32> -> vector<8x8xf32>
    %cst_31 = arith.constant 0.176776692 : f32
    %76 = vector.broadcast %cst_31 : f32 to vector<8x8xf32>
    %77 = arith.mulf %75, %76 : vector<8x8xf32>
    %cst_32 = arith.constant -1.000000e+30 : f32
    %78 = vector.broadcast %cst_32 : f32 to vector<8x8xf32>
    %79 = arith.select %38, %77, %78 : vector<8x8xi1>, vector<8x8xf32>
    %cst_33 = arith.constant dense<0xFF800000> : vector<8xf32>
    %80 = vector.multi_reduction <maximumf>, %79, %cst_33 [1] : vector<8x8xf32> to vector<8xf32>
    %81 = vector.shape_cast %80 : vector<8xf32> to vector<8x1xf32>
    %82 = vector.broadcast %81 : vector<8x1xf32> to vector<8x8xf32>
    %83 = arith.subf %79, %82 : vector<8x8xf32>
    %84 = math.exp %83 : vector<8x8xf32>
    %cst_34 = arith.constant dense<0.000000e+00> : vector<8xf32>
    %85 = vector.multi_reduction <add>, %84, %cst_34 [1] : vector<8x8xf32> to vector<8xf32>
    %86 = vector.shape_cast %85 : vector<8xf32> to vector<8x1xf32>
    %87 = tpu.reciprocal %86 {approx = true} : vector<8x1xf32> -> vector<8x1xf32>
    %88 = vector.broadcast %87 : vector<8x1xf32> to vector<8x8xf32>
    %89 = arith.mulf %84, %88 : vector<8x8xf32>
    %90 = arith.truncf %89 : vector<8x8xf32> to vector<8x8xbf16>
    %cst_35 = arith.constant dense<0.000000e+00> : vector<8x32xf32>
    %91 = tpu.matmul %90, %74, %cst_35 {dimension_numbers = #tpu.dot_dimension_numbers<[1], [0], [0], [1], [0, 0, 1, 1], [], []>} : vector<8x8xbf16>, vector<8x32xbf16>, vector<8x32xf32> -> vector<8x32xf32>
    %92 = arith.truncf %91 : vector<8x32xf32> to vector<8x32xbf16>
    %93 = vector.extract_strided_slice %40 {offsets = [32, 0], sizes = [32, 192], strides = [1, 1]} : vector<192x192xbf16> to vector<32x192xbf16>
    %cst_36 = arith.constant dense<0.000000e+00> : vector<8x192xf32>
    %94 = tpu.matmul %92, %93, %cst_36 {dimension_numbers = #tpu.dot_dimension_numbers<[1], [0], [0], [1], [0, 0, 1, 1], [], []>} : vector<8x32xbf16>, vector<32x192xbf16>, vector<8x192xf32> -> vector<8x192xf32>
    %95 = arith.addf %68, %94 : vector<8x192xf32>
    %96 = vector.extract_strided_slice %35 {offsets = [0, 64], sizes = [8, 32], strides = [1, 1]} : vector<16x576xf32> to vector<8x32xf32>
    %97 = arith.truncf %96 : vector<8x32xf32> to vector<8x32xbf16>
    %98 = vector.extract_strided_slice %35 {offsets = [0, 256], sizes = [8, 32], strides = [1, 1]} : vector<16x576xf32> to vector<8x32xf32>
    %99 = arith.truncf %98 : vector<8x32xf32> to vector<8x32xbf16>
    %100 = vector.extract_strided_slice %35 {offsets = [0, 448], sizes = [8, 32], strides = [1, 1]} : vector<16x576xf32> to vector<8x32xf32>
    %101 = arith.truncf %100 : vector<8x32xf32> to vector<8x32xbf16>
    %cst_37 = arith.constant dense<0.000000e+00> : vector<8x8xf32>
    %102 = tpu.matmul %97, %99, %cst_37 {dimension_numbers = #tpu.dot_dimension_numbers<[1], [1], [0], [0], [0, 0, 1, 0], [], []>} : vector<8x32xbf16>, vector<8x32xbf16>, vector<8x8xf32> -> vector<8x8xf32>
    %cst_38 = arith.constant 0.176776692 : f32
    %103 = vector.broadcast %cst_38 : f32 to vector<8x8xf32>
    %104 = arith.mulf %102, %103 : vector<8x8xf32>
    %cst_39 = arith.constant -1.000000e+30 : f32
    %105 = vector.broadcast %cst_39 : f32 to vector<8x8xf32>
    %106 = arith.select %38, %104, %105 : vector<8x8xi1>, vector<8x8xf32>
    %cst_40 = arith.constant dense<0xFF800000> : vector<8xf32>
    %107 = vector.multi_reduction <maximumf>, %106, %cst_40 [1] : vector<8x8xf32> to vector<8xf32>
    %108 = vector.shape_cast %107 : vector<8xf32> to vector<8x1xf32>
    %109 = vector.broadcast %108 : vector<8x1xf32> to vector<8x8xf32>
    %110 = arith.subf %106, %109 : vector<8x8xf32>
    %111 = math.exp %110 : vector<8x8xf32>
    %cst_41 = arith.constant dense<0.000000e+00> : vector<8xf32>
    %112 = vector.multi_reduction <add>, %111, %cst_41 [1] : vector<8x8xf32> to vector<8xf32>
    %113 = vector.shape_cast %112 : vector<8xf32> to vector<8x1xf32>
    %114 = tpu.reciprocal %113 {approx = true} : vector<8x1xf32> -> vector<8x1xf32>
    %115 = vector.broadcast %114 : vector<8x1xf32> to vector<8x8xf32>
    %116 = arith.mulf %111, %115 : vector<8x8xf32>
    %117 = arith.truncf %116 : vector<8x8xf32> to vector<8x8xbf16>
    %cst_42 = arith.constant dense<0.000000e+00> : vector<8x32xf32>
    %118 = tpu.matmul %117, %101, %cst_42 {dimension_numbers = #tpu.dot_dimension_numbers<[1], [0], [0], [1], [0, 0, 1, 1], [], []>} : vector<8x8xbf16>, vector<8x32xbf16>, vector<8x32xf32> -> vector<8x32xf32>
    %119 = arith.truncf %118 : vector<8x32xf32> to vector<8x32xbf16>
    %120 = vector.extract_strided_slice %40 {offsets = [64, 0], sizes = [32, 192], strides = [1, 1]} : vector<192x192xbf16> to vector<32x192xbf16>
    %cst_43 = arith.constant dense<0.000000e+00> : vector<8x192xf32>
    %121 = tpu.matmul %119, %120, %cst_43 {dimension_numbers = #tpu.dot_dimension_numbers<[1], [0], [0], [1], [0, 0, 1, 1], [], []>} : vector<8x32xbf16>, vector<32x192xbf16>, vector<8x192xf32> -> vector<8x192xf32>
    %122 = arith.addf %95, %121 : vector<8x192xf32>
    %123 = vector.extract_strided_slice %35 {offsets = [0, 96], sizes = [8, 32], strides = [1, 1]} : vector<16x576xf32> to vector<8x32xf32>
    %124 = arith.truncf %123 : vector<8x32xf32> to vector<8x32xbf16>
    %125 = vector.extract_strided_slice %35 {offsets = [0, 288], sizes = [8, 32], strides = [1, 1]} : vector<16x576xf32> to vector<8x32xf32>
    %126 = arith.truncf %125 : vector<8x32xf32> to vector<8x32xbf16>
    %127 = vector.extract_strided_slice %35 {offsets = [0, 480], sizes = [8, 32], strides = [1, 1]} : vector<16x576xf32> to vector<8x32xf32>
    %128 = arith.truncf %127 : vector<8x32xf32> to vector<8x32xbf16>
    %cst_44 = arith.constant dense<0.000000e+00> : vector<8x8xf32>
    %129 = tpu.matmul %124, %126, %cst_44 {dimension_numbers = #tpu.dot_dimension_numbers<[1], [1], [0], [0], [0, 0, 1, 0], [], []>} : vector<8x32xbf16>, vector<8x32xbf16>, vector<8x8xf32> -> vector<8x8xf32>
    %cst_45 = arith.constant 0.176776692 : f32
    %130 = vector.broadcast %cst_45 : f32 to vector<8x8xf32>
    %131 = arith.mulf %129, %130 : vector<8x8xf32>
    %cst_46 = arith.constant -1.000000e+30 : f32
    %132 = vector.broadcast %cst_46 : f32 to vector<8x8xf32>
    %133 = arith.select %38, %131, %132 : vector<8x8xi1>, vector<8x8xf32>
    %cst_47 = arith.constant dense<0xFF800000> : vector<8xf32>
    %134 = vector.multi_reduction <maximumf>, %133, %cst_47 [1] : vector<8x8xf32> to vector<8xf32>
    %135 = vector.shape_cast %134 : vector<8xf32> to vector<8x1xf32>
    %136 = vector.broadcast %135 : vector<8x1xf32> to vector<8x8xf32>
    %137 = arith.subf %133, %136 : vector<8x8xf32>
    %138 = math.exp %137 : vector<8x8xf32>
    %cst_48 = arith.constant dense<0.000000e+00> : vector<8xf32>
    %139 = vector.multi_reduction <add>, %138, %cst_48 [1] : vector<8x8xf32> to vector<8xf32>
    %140 = vector.shape_cast %139 : vector<8xf32> to vector<8x1xf32>
    %141 = tpu.reciprocal %140 {approx = true} : vector<8x1xf32> -> vector<8x1xf32>
    %142 = vector.broadcast %141 : vector<8x1xf32> to vector<8x8xf32>
    %143 = arith.mulf %138, %142 : vector<8x8xf32>
    %144 = arith.truncf %143 : vector<8x8xf32> to vector<8x8xbf16>
    %cst_49 = arith.constant dense<0.000000e+00> : vector<8x32xf32>
    %145 = tpu.matmul %144, %128, %cst_49 {dimension_numbers = #tpu.dot_dimension_numbers<[1], [0], [0], [1], [0, 0, 1, 1], [], []>} : vector<8x8xbf16>, vector<8x32xbf16>, vector<8x32xf32> -> vector<8x32xf32>
    %146 = arith.truncf %145 : vector<8x32xf32> to vector<8x32xbf16>
    %147 = vector.extract_strided_slice %40 {offsets = [96, 0], sizes = [32, 192], strides = [1, 1]} : vector<192x192xbf16> to vector<32x192xbf16>
    %cst_50 = arith.constant dense<0.000000e+00> : vector<8x192xf32>
    %148 = tpu.matmul %146, %147, %cst_50 {dimension_numbers = #tpu.dot_dimension_numbers<[1], [0], [0], [1], [0, 0, 1, 1], [], []>} : vector<8x32xbf16>, vector<32x192xbf16>, vector<8x192xf32> -> vector<8x192xf32>
    %149 = arith.addf %122, %148 : vector<8x192xf32>
    %150 = vector.extract_strided_slice %35 {offsets = [0, 128], sizes = [8, 32], strides = [1, 1]} : vector<16x576xf32> to vector<8x32xf32>
    %151 = arith.truncf %150 : vector<8x32xf32> to vector<8x32xbf16>
    %152 = vector.extract_strided_slice %35 {offsets = [0, 320], sizes = [8, 32], strides = [1, 1]} : vector<16x576xf32> to vector<8x32xf32>
    %153 = arith.truncf %152 : vector<8x32xf32> to vector<8x32xbf16>
    %154 = vector.extract_strided_slice %35 {offsets = [0, 512], sizes = [8, 32], strides = [1, 1]} : vector<16x576xf32> to vector<8x32xf32>
    %155 = arith.truncf %154 : vector<8x32xf32> to vector<8x32xbf16>
    %cst_51 = arith.constant dense<0.000000e+00> : vector<8x8xf32>
    %156 = tpu.matmul %151, %153, %cst_51 {dimension_numbers = #tpu.dot_dimension_numbers<[1], [1], [0], [0], [0, 0, 1, 0], [], []>} : vector<8x32xbf16>, vector<8x32xbf16>, vector<8x8xf32> -> vector<8x8xf32>
    %cst_52 = arith.constant 0.176776692 : f32
    %157 = vector.broadcast %cst_52 : f32 to vector<8x8xf32>
    %158 = arith.mulf %156, %157 : vector<8x8xf32>
    %cst_53 = arith.constant -1.000000e+30 : f32
    %159 = vector.broadcast %cst_53 : f32 to vector<8x8xf32>
    %160 = arith.select %38, %158, %159 : vector<8x8xi1>, vector<8x8xf32>
    %cst_54 = arith.constant dense<0xFF800000> : vector<8xf32>
    %161 = vector.multi_reduction <maximumf>, %160, %cst_54 [1] : vector<8x8xf32> to vector<8xf32>
    %162 = vector.shape_cast %161 : vector<8xf32> to vector<8x1xf32>
    %163 = vector.broadcast %162 : vector<8x1xf32> to vector<8x8xf32>
    %164 = arith.subf %160, %163 : vector<8x8xf32>
    %165 = math.exp %164 : vector<8x8xf32>
    %cst_55 = arith.constant dense<0.000000e+00> : vector<8xf32>
    %166 = vector.multi_reduction <add>, %165, %cst_55 [1] : vector<8x8xf32> to vector<8xf32>
    %167 = vector.shape_cast %166 : vector<8xf32> to vector<8x1xf32>
    %168 = tpu.reciprocal %167 {approx = true} : vector<8x1xf32> -> vector<8x1xf32>
    %169 = vector.broadcast %168 : vector<8x1xf32> to vector<8x8xf32>
    %170 = arith.mulf %165, %169 : vector<8x8xf32>
    %171 = arith.truncf %170 : vector<8x8xf32> to vector<8x8xbf16>
    %cst_56 = arith.constant dense<0.000000e+00> : vector<8x32xf32>
    %172 = tpu.matmul %171, %155, %cst_56 {dimension_numbers = #tpu.dot_dimension_numbers<[1], [0], [0], [1], [0, 0, 1, 1], [], []>} : vector<8x8xbf16>, vector<8x32xbf16>, vector<8x32xf32> -> vector<8x32xf32>
    %173 = arith.truncf %172 : vector<8x32xf32> to vector<8x32xbf16>
    %174 = vector.extract_strided_slice %40 {offsets = [128, 0], sizes = [32, 192], strides = [1, 1]} : vector<192x192xbf16> to vector<32x192xbf16>
    %cst_57 = arith.constant dense<0.000000e+00> : vector<8x192xf32>
    %175 = tpu.matmul %173, %174, %cst_57 {dimension_numbers = #tpu.dot_dimension_numbers<[1], [0], [0], [1], [0, 0, 1, 1], [], []>} : vector<8x32xbf16>, vector<32x192xbf16>, vector<8x192xf32> -> vector<8x192xf32>
    %176 = arith.addf %149, %175 : vector<8x192xf32>
    %177 = vector.extract_strided_slice %35 {offsets = [0, 160], sizes = [8, 32], strides = [1, 1]} : vector<16x576xf32> to vector<8x32xf32>
    %178 = arith.truncf %177 : vector<8x32xf32> to vector<8x32xbf16>
    %179 = vector.extract_strided_slice %35 {offsets = [0, 352], sizes = [8, 32], strides = [1, 1]} : vector<16x576xf32> to vector<8x32xf32>
    %180 = arith.truncf %179 : vector<8x32xf32> to vector<8x32xbf16>
    %181 = vector.extract_strided_slice %35 {offsets = [0, 544], sizes = [8, 32], strides = [1, 1]} : vector<16x576xf32> to vector<8x32xf32>
    %182 = arith.truncf %181 : vector<8x32xf32> to vector<8x32xbf16>
    %cst_58 = arith.constant dense<0.000000e+00> : vector<8x8xf32>
    %183 = tpu.matmul %178, %180, %cst_58 {dimension_numbers = #tpu.dot_dimension_numbers<[1], [1], [0], [0], [0, 0, 1, 0], [], []>} : vector<8x32xbf16>, vector<8x32xbf16>, vector<8x8xf32> -> vector<8x8xf32>
    %cst_59 = arith.constant 0.176776692 : f32
    %184 = vector.broadcast %cst_59 : f32 to vector<8x8xf32>
    %185 = arith.mulf %183, %184 : vector<8x8xf32>
    %cst_60 = arith.constant -1.000000e+30 : f32
    %186 = vector.broadcast %cst_60 : f32 to vector<8x8xf32>
    %187 = arith.select %38, %185, %186 : vector<8x8xi1>, vector<8x8xf32>
    %cst_61 = arith.constant dense<0xFF800000> : vector<8xf32>
    %188 = vector.multi_reduction <maximumf>, %187, %cst_61 [1] : vector<8x8xf32> to vector<8xf32>
    %189 = vector.shape_cast %188 : vector<8xf32> to vector<8x1xf32>
    %190 = vector.broadcast %189 : vector<8x1xf32> to vector<8x8xf32>
    %191 = arith.subf %187, %190 : vector<8x8xf32>
    %192 = math.exp %191 : vector<8x8xf32>
    %cst_62 = arith.constant dense<0.000000e+00> : vector<8xf32>
    %193 = vector.multi_reduction <add>, %192, %cst_62 [1] : vector<8x8xf32> to vector<8xf32>
    %194 = vector.shape_cast %193 : vector<8xf32> to vector<8x1xf32>
    %195 = tpu.reciprocal %194 {approx = true} : vector<8x1xf32> -> vector<8x1xf32>
    %196 = vector.broadcast %195 : vector<8x1xf32> to vector<8x8xf32>
    %197 = arith.mulf %192, %196 : vector<8x8xf32>
    %198 = arith.truncf %197 : vector<8x8xf32> to vector<8x8xbf16>
    %cst_63 = arith.constant dense<0.000000e+00> : vector<8x32xf32>
    %199 = tpu.matmul %198, %182, %cst_63 {dimension_numbers = #tpu.dot_dimension_numbers<[1], [0], [0], [1], [0, 0, 1, 1], [], []>} : vector<8x8xbf16>, vector<8x32xbf16>, vector<8x32xf32> -> vector<8x32xf32>
    %200 = arith.truncf %199 : vector<8x32xf32> to vector<8x32xbf16>
    %201 = vector.extract_strided_slice %40 {offsets = [160, 0], sizes = [32, 192], strides = [1, 1]} : vector<192x192xbf16> to vector<32x192xbf16>
    %cst_64 = arith.constant dense<0.000000e+00> : vector<8x192xf32>
    %202 = tpu.matmul %200, %201, %cst_64 {dimension_numbers = #tpu.dot_dimension_numbers<[1], [0], [0], [1], [0, 0, 1, 1], [], []>} : vector<8x32xbf16>, vector<32x192xbf16>, vector<8x192xf32> -> vector<8x192xf32>
    %203 = arith.addf %176, %202 : vector<8x192xf32>
    %c0_65 = arith.constant 0 : index
    %c0_66 = arith.constant 0 : index
    %c0_67 = arith.constant 0 : index
    %204 = vector.load %arg7[%c0_65, %c0_66, %c0_67] : memref<1x1x192xf32, #tpu.memory_space<vmem>>, vector<1x1x192xf32>
    %205 = vector.shape_cast %204 : vector<1x1x192xf32> to vector<1x192xf32>
    %206 = vector.broadcast %205 : vector<1x192xf32> to vector<8x192xf32>
    %207 = arith.addf %203, %206 : vector<8x192xf32>
    %cst_68 = arith.constant 0.000000e+00 : f32
    %208 = vector.broadcast %cst_68 : f32 to vector<8x192xf32>
    %209 = vector.extract_strided_slice %35 {offsets = [8, 0], sizes = [8, 32], strides = [1, 1]} : vector<16x576xf32> to vector<8x32xf32>
    %210 = arith.truncf %209 : vector<8x32xf32> to vector<8x32xbf16>
    %211 = vector.extract_strided_slice %35 {offsets = [8, 192], sizes = [8, 32], strides = [1, 1]} : vector<16x576xf32> to vector<8x32xf32>
    %212 = arith.truncf %211 : vector<8x32xf32> to vector<8x32xbf16>
    %213 = vector.extract_strided_slice %35 {offsets = [8, 384], sizes = [8, 32], strides = [1, 1]} : vector<16x576xf32> to vector<8x32xf32>
    %214 = arith.truncf %213 : vector<8x32xf32> to vector<8x32xbf16>
    %cst_69 = arith.constant dense<0.000000e+00> : vector<8x8xf32>
    %215 = tpu.matmul %210, %212, %cst_69 {dimension_numbers = #tpu.dot_dimension_numbers<[1], [1], [0], [0], [0, 0, 1, 0], [], []>} : vector<8x32xbf16>, vector<8x32xbf16>, vector<8x8xf32> -> vector<8x8xf32>
    %cst_70 = arith.constant 0.176776692 : f32
    %216 = vector.broadcast %cst_70 : f32 to vector<8x8xf32>
    %217 = arith.mulf %215, %216 : vector<8x8xf32>
    %cst_71 = arith.constant -1.000000e+30 : f32
    %218 = vector.broadcast %cst_71 : f32 to vector<8x8xf32>
    %219 = arith.select %38, %217, %218 : vector<8x8xi1>, vector<8x8xf32>
    %cst_72 = arith.constant dense<0xFF800000> : vector<8xf32>
    %220 = vector.multi_reduction <maximumf>, %219, %cst_72 [1] : vector<8x8xf32> to vector<8xf32>
    %221 = vector.shape_cast %220 : vector<8xf32> to vector<8x1xf32>
    %222 = vector.broadcast %221 : vector<8x1xf32> to vector<8x8xf32>
    %223 = arith.subf %219, %222 : vector<8x8xf32>
    %224 = math.exp %223 : vector<8x8xf32>
    %cst_73 = arith.constant dense<0.000000e+00> : vector<8xf32>
    %225 = vector.multi_reduction <add>, %224, %cst_73 [1] : vector<8x8xf32> to vector<8xf32>
    %226 = vector.shape_cast %225 : vector<8xf32> to vector<8x1xf32>
    %227 = tpu.reciprocal %226 {approx = true} : vector<8x1xf32> -> vector<8x1xf32>
    %228 = vector.broadcast %227 : vector<8x1xf32> to vector<8x8xf32>
    %229 = arith.mulf %224, %228 : vector<8x8xf32>
    %230 = arith.truncf %229 : vector<8x8xf32> to vector<8x8xbf16>
    %cst_74 = arith.constant dense<0.000000e+00> : vector<8x32xf32>
    %231 = tpu.matmul %230, %214, %cst_74 {dimension_numbers = #tpu.dot_dimension_numbers<[1], [0], [0], [1], [0, 0, 1, 1], [], []>} : vector<8x8xbf16>, vector<8x32xbf16>, vector<8x32xf32> -> vector<8x32xf32>
    %232 = arith.truncf %231 : vector<8x32xf32> to vector<8x32xbf16>
    %233 = vector.extract_strided_slice %40 {offsets = [0, 0], sizes = [32, 192], strides = [1, 1]} : vector<192x192xbf16> to vector<32x192xbf16>
    %cst_75 = arith.constant dense<0.000000e+00> : vector<8x192xf32>
    %234 = tpu.matmul %232, %233, %cst_75 {dimension_numbers = #tpu.dot_dimension_numbers<[1], [0], [0], [1], [0, 0, 1, 1], [], []>} : vector<8x32xbf16>, vector<32x192xbf16>, vector<8x192xf32> -> vector<8x192xf32>
    %235 = arith.addf %208, %234 : vector<8x192xf32>
    %236 = vector.extract_strided_slice %35 {offsets = [8, 32], sizes = [8, 32], strides = [1, 1]} : vector<16x576xf32> to vector<8x32xf32>
    %237 = arith.truncf %236 : vector<8x32xf32> to vector<8x32xbf16>
    %238 = vector.extract_strided_slice %35 {offsets = [8, 224], sizes = [8, 32], strides = [1, 1]} : vector<16x576xf32> to vector<8x32xf32>
    %239 = arith.truncf %238 : vector<8x32xf32> to vector<8x32xbf16>
    %240 = vector.extract_strided_slice %35 {offsets = [8, 416], sizes = [8, 32], strides = [1, 1]} : vector<16x576xf32> to vector<8x32xf32>
    %241 = arith.truncf %240 : vector<8x32xf32> to vector<8x32xbf16>
    %cst_76 = arith.constant dense<0.000000e+00> : vector<8x8xf32>
    %242 = tpu.matmul %237, %239, %cst_76 {dimension_numbers = #tpu.dot_dimension_numbers<[1], [1], [0], [0], [0, 0, 1, 0], [], []>} : vector<8x32xbf16>, vector<8x32xbf16>, vector<8x8xf32> -> vector<8x8xf32>
    %cst_77 = arith.constant 0.176776692 : f32
    %243 = vector.broadcast %cst_77 : f32 to vector<8x8xf32>
    %244 = arith.mulf %242, %243 : vector<8x8xf32>
    %cst_78 = arith.constant -1.000000e+30 : f32
    %245 = vector.broadcast %cst_78 : f32 to vector<8x8xf32>
    %246 = arith.select %38, %244, %245 : vector<8x8xi1>, vector<8x8xf32>
    %cst_79 = arith.constant dense<0xFF800000> : vector<8xf32>
    %247 = vector.multi_reduction <maximumf>, %246, %cst_79 [1] : vector<8x8xf32> to vector<8xf32>
    %248 = vector.shape_cast %247 : vector<8xf32> to vector<8x1xf32>
    %249 = vector.broadcast %248 : vector<8x1xf32> to vector<8x8xf32>
    %250 = arith.subf %246, %249 : vector<8x8xf32>
    %251 = math.exp %250 : vector<8x8xf32>
    %cst_80 = arith.constant dense<0.000000e+00> : vector<8xf32>
    %252 = vector.multi_reduction <add>, %251, %cst_80 [1] : vector<8x8xf32> to vector<8xf32>
    %253 = vector.shape_cast %252 : vector<8xf32> to vector<8x1xf32>
    %254 = tpu.reciprocal %253 {approx = true} : vector<8x1xf32> -> vector<8x1xf32>
    %255 = vector.broadcast %254 : vector<8x1xf32> to vector<8x8xf32>
    %256 = arith.mulf %251, %255 : vector<8x8xf32>
    %257 = arith.truncf %256 : vector<8x8xf32> to vector<8x8xbf16>
    %cst_81 = arith.constant dense<0.000000e+00> : vector<8x32xf32>
    %258 = tpu.matmul %257, %241, %cst_81 {dimension_numbers = #tpu.dot_dimension_numbers<[1], [0], [0], [1], [0, 0, 1, 1], [], []>} : vector<8x8xbf16>, vector<8x32xbf16>, vector<8x32xf32> -> vector<8x32xf32>
    %259 = arith.truncf %258 : vector<8x32xf32> to vector<8x32xbf16>
    %260 = vector.extract_strided_slice %40 {offsets = [32, 0], sizes = [32, 192], strides = [1, 1]} : vector<192x192xbf16> to vector<32x192xbf16>
    %cst_82 = arith.constant dense<0.000000e+00> : vector<8x192xf32>
    %261 = tpu.matmul %259, %260, %cst_82 {dimension_numbers = #tpu.dot_dimension_numbers<[1], [0], [0], [1], [0, 0, 1, 1], [], []>} : vector<8x32xbf16>, vector<32x192xbf16>, vector<8x192xf32> -> vector<8x192xf32>
    %262 = arith.addf %235, %261 : vector<8x192xf32>
    %263 = vector.extract_strided_slice %35 {offsets = [8, 64], sizes = [8, 32], strides = [1, 1]} : vector<16x576xf32> to vector<8x32xf32>
    %264 = arith.truncf %263 : vector<8x32xf32> to vector<8x32xbf16>
    %265 = vector.extract_strided_slice %35 {offsets = [8, 256], sizes = [8, 32], strides = [1, 1]} : vector<16x576xf32> to vector<8x32xf32>
    %266 = arith.truncf %265 : vector<8x32xf32> to vector<8x32xbf16>
    %267 = vector.extract_strided_slice %35 {offsets = [8, 448], sizes = [8, 32], strides = [1, 1]} : vector<16x576xf32> to vector<8x32xf32>
    %268 = arith.truncf %267 : vector<8x32xf32> to vector<8x32xbf16>
    %cst_83 = arith.constant dense<0.000000e+00> : vector<8x8xf32>
    %269 = tpu.matmul %264, %266, %cst_83 {dimension_numbers = #tpu.dot_dimension_numbers<[1], [1], [0], [0], [0, 0, 1, 0], [], []>} : vector<8x32xbf16>, vector<8x32xbf16>, vector<8x8xf32> -> vector<8x8xf32>
    %cst_84 = arith.constant 0.176776692 : f32
    %270 = vector.broadcast %cst_84 : f32 to vector<8x8xf32>
    %271 = arith.mulf %269, %270 : vector<8x8xf32>
    %cst_85 = arith.constant -1.000000e+30 : f32
    %272 = vector.broadcast %cst_85 : f32 to vector<8x8xf32>
    %273 = arith.select %38, %271, %272 : vector<8x8xi1>, vector<8x8xf32>
    %cst_86 = arith.constant dense<0xFF800000> : vector<8xf32>
    %274 = vector.multi_reduction <maximumf>, %273, %cst_86 [1] : vector<8x8xf32> to vector<8xf32>
    %275 = vector.shape_cast %274 : vector<8xf32> to vector<8x1xf32>
    %276 = vector.broadcast %275 : vector<8x1xf32> to vector<8x8xf32>
    %277 = arith.subf %273, %276 : vector<8x8xf32>
    %278 = math.exp %277 : vector<8x8xf32>
    %cst_87 = arith.constant dense<0.000000e+00> : vector<8xf32>
    %279 = vector.multi_reduction <add>, %278, %cst_87 [1] : vector<8x8xf32> to vector<8xf32>
    %280 = vector.shape_cast %279 : vector<8xf32> to vector<8x1xf32>
    %281 = tpu.reciprocal %280 {approx = true} : vector<8x1xf32> -> vector<8x1xf32>
    %282 = vector.broadcast %281 : vector<8x1xf32> to vector<8x8xf32>
    %283 = arith.mulf %278, %282 : vector<8x8xf32>
    %284 = arith.truncf %283 : vector<8x8xf32> to vector<8x8xbf16>
    %cst_88 = arith.constant dense<0.000000e+00> : vector<8x32xf32>
    %285 = tpu.matmul %284, %268, %cst_88 {dimension_numbers = #tpu.dot_dimension_numbers<[1], [0], [0], [1], [0, 0, 1, 1], [], []>} : vector<8x8xbf16>, vector<8x32xbf16>, vector<8x32xf32> -> vector<8x32xf32>
    %286 = arith.truncf %285 : vector<8x32xf32> to vector<8x32xbf16>
    %287 = vector.extract_strided_slice %40 {offsets = [64, 0], sizes = [32, 192], strides = [1, 1]} : vector<192x192xbf16> to vector<32x192xbf16>
    %cst_89 = arith.constant dense<0.000000e+00> : vector<8x192xf32>
    %288 = tpu.matmul %286, %287, %cst_89 {dimension_numbers = #tpu.dot_dimension_numbers<[1], [0], [0], [1], [0, 0, 1, 1], [], []>} : vector<8x32xbf16>, vector<32x192xbf16>, vector<8x192xf32> -> vector<8x192xf32>
    %289 = arith.addf %262, %288 : vector<8x192xf32>
    %290 = vector.extract_strided_slice %35 {offsets = [8, 96], sizes = [8, 32], strides = [1, 1]} : vector<16x576xf32> to vector<8x32xf32>
    %291 = arith.truncf %290 : vector<8x32xf32> to vector<8x32xbf16>
    %292 = vector.extract_strided_slice %35 {offsets = [8, 288], sizes = [8, 32], strides = [1, 1]} : vector<16x576xf32> to vector<8x32xf32>
    %293 = arith.truncf %292 : vector<8x32xf32> to vector<8x32xbf16>
    %294 = vector.extract_strided_slice %35 {offsets = [8, 480], sizes = [8, 32], strides = [1, 1]} : vector<16x576xf32> to vector<8x32xf32>
    %295 = arith.truncf %294 : vector<8x32xf32> to vector<8x32xbf16>
    %cst_90 = arith.constant dense<0.000000e+00> : vector<8x8xf32>
    %296 = tpu.matmul %291, %293, %cst_90 {dimension_numbers = #tpu.dot_dimension_numbers<[1], [1], [0], [0], [0, 0, 1, 0], [], []>} : vector<8x32xbf16>, vector<8x32xbf16>, vector<8x8xf32> -> vector<8x8xf32>
    %cst_91 = arith.constant 0.176776692 : f32
    %297 = vector.broadcast %cst_91 : f32 to vector<8x8xf32>
    %298 = arith.mulf %296, %297 : vector<8x8xf32>
    %cst_92 = arith.constant -1.000000e+30 : f32
    %299 = vector.broadcast %cst_92 : f32 to vector<8x8xf32>
    %300 = arith.select %38, %298, %299 : vector<8x8xi1>, vector<8x8xf32>
    %cst_93 = arith.constant dense<0xFF800000> : vector<8xf32>
    %301 = vector.multi_reduction <maximumf>, %300, %cst_93 [1] : vector<8x8xf32> to vector<8xf32>
    %302 = vector.shape_cast %301 : vector<8xf32> to vector<8x1xf32>
    %303 = vector.broadcast %302 : vector<8x1xf32> to vector<8x8xf32>
    %304 = arith.subf %300, %303 : vector<8x8xf32>
    %305 = math.exp %304 : vector<8x8xf32>
    %cst_94 = arith.constant dense<0.000000e+00> : vector<8xf32>
    %306 = vector.multi_reduction <add>, %305, %cst_94 [1] : vector<8x8xf32> to vector<8xf32>
    %307 = vector.shape_cast %306 : vector<8xf32> to vector<8x1xf32>
    %308 = tpu.reciprocal %307 {approx = true} : vector<8x1xf32> -> vector<8x1xf32>
    %309 = vector.broadcast %308 : vector<8x1xf32> to vector<8x8xf32>
    %310 = arith.mulf %305, %309 : vector<8x8xf32>
    %311 = arith.truncf %310 : vector<8x8xf32> to vector<8x8xbf16>
    %cst_95 = arith.constant dense<0.000000e+00> : vector<8x32xf32>
    %312 = tpu.matmul %311, %295, %cst_95 {dimension_numbers = #tpu.dot_dimension_numbers<[1], [0], [0], [1], [0, 0, 1, 1], [], []>} : vector<8x8xbf16>, vector<8x32xbf16>, vector<8x32xf32> -> vector<8x32xf32>
    %313 = arith.truncf %312 : vector<8x32xf32> to vector<8x32xbf16>
    %314 = vector.extract_strided_slice %40 {offsets = [96, 0], sizes = [32, 192], strides = [1, 1]} : vector<192x192xbf16> to vector<32x192xbf16>
    %cst_96 = arith.constant dense<0.000000e+00> : vector<8x192xf32>
    %315 = tpu.matmul %313, %314, %cst_96 {dimension_numbers = #tpu.dot_dimension_numbers<[1], [0], [0], [1], [0, 0, 1, 1], [], []>} : vector<8x32xbf16>, vector<32x192xbf16>, vector<8x192xf32> -> vector<8x192xf32>
    %316 = arith.addf %289, %315 : vector<8x192xf32>
    %317 = vector.extract_strided_slice %35 {offsets = [8, 128], sizes = [8, 32], strides = [1, 1]} : vector<16x576xf32> to vector<8x32xf32>
    %318 = arith.truncf %317 : vector<8x32xf32> to vector<8x32xbf16>
    %319 = vector.extract_strided_slice %35 {offsets = [8, 320], sizes = [8, 32], strides = [1, 1]} : vector<16x576xf32> to vector<8x32xf32>
    %320 = arith.truncf %319 : vector<8x32xf32> to vector<8x32xbf16>
    %321 = vector.extract_strided_slice %35 {offsets = [8, 512], sizes = [8, 32], strides = [1, 1]} : vector<16x576xf32> to vector<8x32xf32>
    %322 = arith.truncf %321 : vector<8x32xf32> to vector<8x32xbf16>
    %cst_97 = arith.constant dense<0.000000e+00> : vector<8x8xf32>
    %323 = tpu.matmul %318, %320, %cst_97 {dimension_numbers = #tpu.dot_dimension_numbers<[1], [1], [0], [0], [0, 0, 1, 0], [], []>} : vector<8x32xbf16>, vector<8x32xbf16>, vector<8x8xf32> -> vector<8x8xf32>
    %cst_98 = arith.constant 0.176776692 : f32
    %324 = vector.broadcast %cst_98 : f32 to vector<8x8xf32>
    %325 = arith.mulf %323, %324 : vector<8x8xf32>
    %cst_99 = arith.constant -1.000000e+30 : f32
    %326 = vector.broadcast %cst_99 : f32 to vector<8x8xf32>
    %327 = arith.select %38, %325, %326 : vector<8x8xi1>, vector<8x8xf32>
    %cst_100 = arith.constant dense<0xFF800000> : vector<8xf32>
    %328 = vector.multi_reduction <maximumf>, %327, %cst_100 [1] : vector<8x8xf32> to vector<8xf32>
    %329 = vector.shape_cast %328 : vector<8xf32> to vector<8x1xf32>
    %330 = vector.broadcast %329 : vector<8x1xf32> to vector<8x8xf32>
    %331 = arith.subf %327, %330 : vector<8x8xf32>
    %332 = math.exp %331 : vector<8x8xf32>
    %cst_101 = arith.constant dense<0.000000e+00> : vector<8xf32>
    %333 = vector.multi_reduction <add>, %332, %cst_101 [1] : vector<8x8xf32> to vector<8xf32>
    %334 = vector.shape_cast %333 : vector<8xf32> to vector<8x1xf32>
    %335 = tpu.reciprocal %334 {approx = true} : vector<8x1xf32> -> vector<8x1xf32>
    %336 = vector.broadcast %335 : vector<8x1xf32> to vector<8x8xf32>
    %337 = arith.mulf %332, %336 : vector<8x8xf32>
    %338 = arith.truncf %337 : vector<8x8xf32> to vector<8x8xbf16>
    %cst_102 = arith.constant dense<0.000000e+00> : vector<8x32xf32>
    %339 = tpu.matmul %338, %322, %cst_102 {dimension_numbers = #tpu.dot_dimension_numbers<[1], [0], [0], [1], [0, 0, 1, 1], [], []>} : vector<8x8xbf16>, vector<8x32xbf16>, vector<8x32xf32> -> vector<8x32xf32>
    %340 = arith.truncf %339 : vector<8x32xf32> to vector<8x32xbf16>
    %341 = vector.extract_strided_slice %40 {offsets = [128, 0], sizes = [32, 192], strides = [1, 1]} : vector<192x192xbf16> to vector<32x192xbf16>
    %cst_103 = arith.constant dense<0.000000e+00> : vector<8x192xf32>
    %342 = tpu.matmul %340, %341, %cst_103 {dimension_numbers = #tpu.dot_dimension_numbers<[1], [0], [0], [1], [0, 0, 1, 1], [], []>} : vector<8x32xbf16>, vector<32x192xbf16>, vector<8x192xf32> -> vector<8x192xf32>
    %343 = arith.addf %316, %342 : vector<8x192xf32>
    %344 = vector.extract_strided_slice %35 {offsets = [8, 160], sizes = [8, 32], strides = [1, 1]} : vector<16x576xf32> to vector<8x32xf32>
    %345 = arith.truncf %344 : vector<8x32xf32> to vector<8x32xbf16>
    %346 = vector.extract_strided_slice %35 {offsets = [8, 352], sizes = [8, 32], strides = [1, 1]} : vector<16x576xf32> to vector<8x32xf32>
    %347 = arith.truncf %346 : vector<8x32xf32> to vector<8x32xbf16>
    %348 = vector.extract_strided_slice %35 {offsets = [8, 544], sizes = [8, 32], strides = [1, 1]} : vector<16x576xf32> to vector<8x32xf32>
    %349 = arith.truncf %348 : vector<8x32xf32> to vector<8x32xbf16>
    %cst_104 = arith.constant dense<0.000000e+00> : vector<8x8xf32>
    %350 = tpu.matmul %345, %347, %cst_104 {dimension_numbers = #tpu.dot_dimension_numbers<[1], [1], [0], [0], [0, 0, 1, 0], [], []>} : vector<8x32xbf16>, vector<8x32xbf16>, vector<8x8xf32> -> vector<8x8xf32>
    %cst_105 = arith.constant 0.176776692 : f32
    %351 = vector.broadcast %cst_105 : f32 to vector<8x8xf32>
    %352 = arith.mulf %350, %351 : vector<8x8xf32>
    %cst_106 = arith.constant -1.000000e+30 : f32
    %353 = vector.broadcast %cst_106 : f32 to vector<8x8xf32>
    %354 = arith.select %38, %352, %353 : vector<8x8xi1>, vector<8x8xf32>
    %cst_107 = arith.constant dense<0xFF800000> : vector<8xf32>
    %355 = vector.multi_reduction <maximumf>, %354, %cst_107 [1] : vector<8x8xf32> to vector<8xf32>
    %356 = vector.shape_cast %355 : vector<8xf32> to vector<8x1xf32>
    %357 = vector.broadcast %356 : vector<8x1xf32> to vector<8x8xf32>
    %358 = arith.subf %354, %357 : vector<8x8xf32>
    %359 = math.exp %358 : vector<8x8xf32>
    %cst_108 = arith.constant dense<0.000000e+00> : vector<8xf32>
    %360 = vector.multi_reduction <add>, %359, %cst_108 [1] : vector<8x8xf32> to vector<8xf32>
    %361 = vector.shape_cast %360 : vector<8xf32> to vector<8x1xf32>
    %362 = tpu.reciprocal %361 {approx = true} : vector<8x1xf32> -> vector<8x1xf32>
    %363 = vector.broadcast %362 : vector<8x1xf32> to vector<8x8xf32>
    %364 = arith.mulf %359, %363 : vector<8x8xf32>
    %365 = arith.truncf %364 : vector<8x8xf32> to vector<8x8xbf16>
    %cst_109 = arith.constant dense<0.000000e+00> : vector<8x32xf32>
    %366 = tpu.matmul %365, %349, %cst_109 {dimension_numbers = #tpu.dot_dimension_numbers<[1], [0], [0], [1], [0, 0, 1, 1], [], []>} : vector<8x8xbf16>, vector<8x32xbf16>, vector<8x32xf32> -> vector<8x32xf32>
    %367 = arith.truncf %366 : vector<8x32xf32> to vector<8x32xbf16>
    %368 = vector.extract_strided_slice %40 {offsets = [160, 0], sizes = [32, 192], strides = [1, 1]} : vector<192x192xbf16> to vector<32x192xbf16>
    %cst_110 = arith.constant dense<0.000000e+00> : vector<8x192xf32>
    %369 = tpu.matmul %367, %368, %cst_110 {dimension_numbers = #tpu.dot_dimension_numbers<[1], [0], [0], [1], [0, 0, 1, 1], [], []>} : vector<8x32xbf16>, vector<32x192xbf16>, vector<8x192xf32> -> vector<8x192xf32>
    %370 = arith.addf %343, %369 : vector<8x192xf32>
    %c0_111 = arith.constant 0 : index
    %c0_112 = arith.constant 0 : index
    %c0_113 = arith.constant 0 : index
    %371 = vector.load %arg7[%c0_111, %c0_112, %c0_113] : memref<1x1x192xf32, #tpu.memory_space<vmem>>, vector<1x1x192xf32>
    %372 = vector.shape_cast %371 : vector<1x1x192xf32> to vector<1x192xf32>
    %373 = vector.broadcast %372 : vector<1x192xf32> to vector<8x192xf32>
    %374 = arith.addf %370, %373 : vector<8x192xf32>
    %375 = tpu.concatenate %207, %374 in 0 : vector<8x192xf32>, vector<8x192xf32> -> vector<16x192xf32>
    %376 = arith.addf %3, %375 : vector<16x192xf32>
    %c0_114 = arith.constant 0 : index
    %c0_115 = arith.constant 0 : index
    %c0_116 = arith.constant 0 : index
    %377 = vector.load %arg8[%c0_114, %c0_115, %c0_116] : memref<1x1x192xf32, #tpu.memory_space<vmem>>, vector<1x1x192xf32>
    %378 = vector.shape_cast %377 : vector<1x1x192xf32> to vector<1x192xf32>
    %c0_117 = arith.constant 0 : index
    %c0_118 = arith.constant 0 : index
    %c0_119 = arith.constant 0 : index
    %379 = vector.load %arg9[%c0_117, %c0_118, %c0_119] : memref<1x1x192xf32, #tpu.memory_space<vmem>>, vector<1x1x192xf32>
    %380 = vector.shape_cast %379 : vector<1x1x192xf32> to vector<1x192xf32>
    %cst_120 = arith.constant dense<0.000000e+00> : vector<16xf32>
    %381 = vector.multi_reduction <add>, %376, %cst_120 [1] : vector<16x192xf32> to vector<16xf32>
    %382 = vector.shape_cast %381 : vector<16xf32> to vector<16x1xf32>
    %cst_121 = arith.constant 1.920000e+02 : f32
    %383 = vector.broadcast %cst_121 : f32 to vector<16x1xf32>
    %384 = arith.divf %382, %383 : vector<16x1xf32>
    %385 = vector.broadcast %384 : vector<16x1xf32> to vector<16x192xf32>
    %386 = arith.subf %376, %385 : vector<16x192xf32>
    %387 = arith.mulf %386, %386 : vector<16x192xf32>
    %cst_122 = arith.constant dense<0.000000e+00> : vector<16xf32>
    %388 = vector.multi_reduction <add>, %387, %cst_122 [1] : vector<16x192xf32> to vector<16xf32>
    %389 = vector.shape_cast %388 : vector<16xf32> to vector<16x1xf32>
    %cst_123 = arith.constant 1.920000e+02 : f32
    %390 = vector.broadcast %cst_123 : f32 to vector<16x1xf32>
    %391 = arith.divf %389, %390 : vector<16x1xf32>
    %cst_124 = arith.constant 9.99999974E-6 : f32
    %392 = vector.broadcast %cst_124 : f32 to vector<16x1xf32>
    %393 = arith.addf %391, %392 : vector<16x1xf32>
    %394 = math.rsqrt %393 : vector<16x1xf32>
    %395 = vector.broadcast %394 : vector<16x1xf32> to vector<16x192xf32>
    %396 = arith.mulf %386, %395 : vector<16x192xf32>
    %397 = vector.broadcast %378 : vector<1x192xf32> to vector<16x192xf32>
    %398 = arith.mulf %396, %397 : vector<16x192xf32>
    %399 = vector.broadcast %380 : vector<1x192xf32> to vector<16x192xf32>
    %400 = arith.addf %398, %399 : vector<16x192xf32>
    %401 = arith.truncf %400 : vector<16x192xf32> to vector<16x192xbf16>
    %c0_125 = arith.constant 0 : index
    %c0_126 = arith.constant 0 : index
    %c0_127 = arith.constant 0 : index
    %402 = vector.load %arg10[%c0_125, %c0_126, %c0_127] : memref<1x192x768xbf16, #tpu.memory_space<vmem>>, vector<1x192x768xbf16>
    %403 = vector.shape_cast %402 : vector<1x192x768xbf16> to vector<192x768xbf16>
    %cst_128 = arith.constant dense<0.000000e+00> : vector<16x768xf32>
    %404 = tpu.matmul %401, %403, %cst_128 {dimension_numbers = #tpu.dot_dimension_numbers<[1], [0], [0], [1], [0, 0, 1, 1], [], []>} : vector<16x192xbf16>, vector<192x768xbf16>, vector<16x768xf32> -> vector<16x768xf32>
    %c0_129 = arith.constant 0 : index
    %c0_130 = arith.constant 0 : index
    %c0_131 = arith.constant 0 : index
    %405 = vector.load %arg11[%c0_129, %c0_130, %c0_131] : memref<1x1x768xf32, #tpu.memory_space<vmem>>, vector<1x1x768xf32>
    %406 = vector.shape_cast %405 : vector<1x1x768xf32> to vector<1x768xf32>
    %407 = vector.broadcast %406 : vector<1x768xf32> to vector<16x768xf32>
    %408 = arith.addf %404, %407 : vector<16x768xf32>
    %cst_132 = arith.constant 5.000000e-01 : f32
    %409 = vector.broadcast %cst_132 : f32 to vector<16x768xf32>
    %410 = arith.mulf %409, %408 : vector<16x768xf32>
    %cst_133 = arith.constant 0.707106769 : f32
    %411 = vector.broadcast %cst_133 : f32 to vector<16x768xf32>
    %412 = arith.mulf %408, %411 : vector<16x768xf32>
    %413 = math.erf %412 : vector<16x768xf32>
    %cst_134 = arith.constant 1.000000e+00 : f32
    %414 = vector.broadcast %cst_134 : f32 to vector<16x768xf32>
    %415 = arith.addf %414, %413 : vector<16x768xf32>
    %416 = arith.mulf %410, %415 : vector<16x768xf32>
    %417 = arith.truncf %416 : vector<16x768xf32> to vector<16x768xbf16>
    %c0_135 = arith.constant 0 : index
    %c0_136 = arith.constant 0 : index
    %c0_137 = arith.constant 0 : index
    %418 = vector.load %arg12[%c0_135, %c0_136, %c0_137] : memref<1x768x192xbf16, #tpu.memory_space<vmem>>, vector<1x768x192xbf16>
    %419 = vector.shape_cast %418 : vector<1x768x192xbf16> to vector<768x192xbf16>
    %cst_138 = arith.constant dense<0.000000e+00> : vector<16x192xf32>
    %420 = tpu.matmul %417, %419, %cst_138 {dimension_numbers = #tpu.dot_dimension_numbers<[1], [0], [0], [1], [0, 0, 1, 1], [], []>} : vector<16x768xbf16>, vector<768x192xbf16>, vector<16x192xf32> -> vector<16x192xf32>
    %c0_139 = arith.constant 0 : index
    %c0_140 = arith.constant 0 : index
    %c0_141 = arith.constant 0 : index
    %421 = vector.load %arg13[%c0_139, %c0_140, %c0_141] : memref<1x1x192xf32, #tpu.memory_space<vmem>>, vector<1x1x192xf32>
    %422 = vector.shape_cast %421 : vector<1x1x192xf32> to vector<1x192xf32>
    %423 = vector.broadcast %422 : vector<1x192xf32> to vector<16x192xf32>
    %424 = arith.addf %420, %423 : vector<16x192xf32>
    %425 = arith.addf %376, %424 : vector<16x192xf32>
    %c0_142 = arith.constant 0 : index
    %c0_143 = arith.constant 0 : index
    %426 = vector.load %arg19[%c0_142, %c0_143] : memref<16x192xf32, #tpu.memory_space<vmem>>, vector<16x192xf32>
    tpu.vector_store %arg19[%c0_142, %c0_143], %425 {strides = array<i32>} : memref<16x192xf32, #tpu.memory_space<vmem>>, vector<16x192xf32>,
    %c1_i32 = arith.constant 1 : i32
    %427 = arith.cmpi eq, %arg0, %c1_i32 : i32
    %428 = arith.extui %427 : i1 to i32
    %c0_i32_144 = arith.constant 0 : i32
    %429 = arith.cmpi ne, %428, %c0_i32_144 : i32
    scf.if %429 {
      %c0_145 = arith.constant 0 : index
      %c0_146 = arith.constant 0 : index
      %430 = vector.load %arg14[%c0_145, %c0_146] : memref<1x192xf32, #tpu.memory_space<vmem>>, vector<1x192xf32>
      %c0_147 = arith.constant 0 : index
      %c0_148 = arith.constant 0 : index
      %431 = vector.load %arg15[%c0_147, %c0_148] : memref<1x192xf32, #tpu.memory_space<vmem>>, vector<1x192xf32>
      %cst_149 = arith.constant dense<0.000000e+00> : vector<16xf32>
      %432 = vector.multi_reduction <add>, %425, %cst_149 [1] : vector<16x192xf32> to vector<16xf32>
      %433 = vector.shape_cast %432 : vector<16xf32> to vector<16x1xf32>
      %cst_150 = arith.constant 1.920000e+02 : f32
      %434 = vector.broadcast %cst_150 : f32 to vector<16x1xf32>
      %435 = arith.divf %433, %434 : vector<16x1xf32>
      %436 = vector.broadcast %435 : vector<16x1xf32> to vector<16x192xf32>
      %437 = arith.subf %425, %436 : vector<16x192xf32>
      %438 = arith.mulf %437, %437 : vector<16x192xf32>
      %cst_151 = arith.constant dense<0.000000e+00> : vector<16xf32>
      %439 = vector.multi_reduction <add>, %438, %cst_151 [1] : vector<16x192xf32> to vector<16xf32>
      %440 = vector.shape_cast %439 : vector<16xf32> to vector<16x1xf32>
      %cst_152 = arith.constant 1.920000e+02 : f32
      %441 = vector.broadcast %cst_152 : f32 to vector<16x1xf32>
      %442 = arith.divf %440, %441 : vector<16x1xf32>
      %cst_153 = arith.constant 9.99999974E-6 : f32
      %443 = vector.broadcast %cst_153 : f32 to vector<16x1xf32>
      %444 = arith.addf %442, %443 : vector<16x1xf32>
      %445 = math.rsqrt %444 : vector<16x1xf32>
      %446 = vector.broadcast %445 : vector<16x1xf32> to vector<16x192xf32>
      %447 = arith.mulf %437, %446 : vector<16x192xf32>
      %448 = vector.broadcast %430 : vector<1x192xf32> to vector<16x192xf32>
      %449 = arith.mulf %447, %448 : vector<16x192xf32>
      %450 = vector.broadcast %431 : vector<1x192xf32> to vector<16x192xf32>
      %451 = arith.addf %449, %450 : vector<16x192xf32>
      %452 = arith.truncf %451 : vector<16x192xf32> to vector<16x192xbf16>
      %c0_154 = arith.constant 0 : index
      %c0_155 = arith.constant 0 : index
      %453 = vector.load %arg16[%c0_154, %c0_155] : memref<192x1xbf16, #tpu.memory_space<vmem>>, vector<192x1xbf16>
      %cst_156 = arith.constant dense<0.000000e+00> : vector<16x1xf32>
      %454 = tpu.matmul %452, %453, %cst_156 {dimension_numbers = #tpu.dot_dimension_numbers<[1], [0], [0], [1], [0, 0, 1, 1], [], []>} : vector<16x192xbf16>, vector<192x1xbf16>, vector<16x1xf32> -> vector<16x1xf32>
      %c0_157 = arith.constant 0 : index
      %c0_158 = arith.constant 0 : index
      %455 = vector.load %arg17[%c0_157, %c0_158] : memref<1x1xf32, #tpu.memory_space<vmem>>, vector<1x1xf32>
      %456 = vector.broadcast %455 : vector<1x1xf32> to vector<16x1xf32>
      %457 = arith.addf %454, %456 : vector<16x1xf32>
      %c0_159 = arith.constant 0 : index
      %c0_160 = arith.constant 0 : index
      %458 = vector.load %arg18[%c0_159, %c0_160] : memref<16x1xf32, #tpu.memory_space<vmem>>, vector<16x1xf32>
      tpu.vector_store %arg18[%c0_159, %c0_160], %457 {strides = array<i32>} : memref<16x1xf32, #tpu.memory_space<vmem>>, vector<16x1xf32>,
    } else {
    }
    return
  }
  func.func @transform_0(%arg0: i32) -> (i32, i32) {
    %c0_i32 = arith.constant 0 : i32
    %c0_i32_0 = arith.constant 0 : i32
    %c0_i32_1 = arith.constant 0 : i32
    return %c0_i32, %c0_i32_0 : i32, i32
  }
  func.func @transform_1(%arg0: i32) -> (i32, i32, i32) {
    %c0_i32 = arith.constant 0 : i32
    %c0_i32_0 = arith.constant 0 : i32
    %c0_i32_1 = arith.constant 0 : i32
    return %arg0, %c0_i32, %c0_i32_0 : i32, i32, i32
  }
  func.func @transform_2(%arg0: i32) -> (i32, i32, i32) {
    %c0_i32 = arith.constant 0 : i32
    %c0_i32_0 = arith.constant 0 : i32
    %c0_i32_1 = arith.constant 0 : i32
    return %arg0, %c0_i32, %c0_i32_0 : i32, i32, i32
  }
  func.func @transform_3(%arg0: i32) -> (i32, i32, i32) {
    %c0_i32 = arith.constant 0 : i32
    %c0_i32_0 = arith.constant 0 : i32
    %c0_i32_1 = arith.constant 0 : i32
    return %arg0, %c0_i32, %c0_i32_0 : i32, i32, i32
  }
  func.func @transform_4(%arg0: i32) -> (i32, i32, i32) {
    %c0_i32 = arith.constant 0 : i32
    %c0_i32_0 = arith.constant 0 : i32
    %c0_i32_1 = arith.constant 0 : i32
    return %arg0, %c0_i32, %c0_i32_0 : i32, i32, i32
  }
  func.func @transform_5(%arg0: i32) -> (i32, i32, i32) {
    %c0_i32 = arith.constant 0 : i32
    %c0_i32_0 = arith.constant 0 : i32
    %c0_i32_1 = arith.constant 0 : i32
    return %arg0, %c0_i32, %c0_i32_0 : i32, i32, i32
  }
  func.func @transform_6(%arg0: i32) -> (i32, i32, i32) {
    %c0_i32 = arith.constant 0 : i32
    %c0_i32_0 = arith.constant 0 : i32
    %c0_i32_1 = arith.constant 0 : i32
    return %arg0, %c0_i32, %c0_i32_0 : i32, i32, i32
  }
  func.func @transform_7(%arg0: i32) -> (i32, i32, i32) {
    %c0_i32 = arith.constant 0 : i32
    %c0_i32_0 = arith.constant 0 : i32
    %c0_i32_1 = arith.constant 0 : i32
    return %arg0, %c0_i32, %c0_i32_0 : i32, i32, i32
  }
  func.func @transform_8(%arg0: i32) -> (i32, i32, i32) {
    %c0_i32 = arith.constant 0 : i32
    %c0_i32_0 = arith.constant 0 : i32
    %c0_i32_1 = arith.constant 0 : i32
    return %arg0, %c0_i32, %c0_i32_0 : i32, i32, i32
  }
  func.func @transform_9(%arg0: i32) -> (i32, i32, i32) {
    %c0_i32 = arith.constant 0 : i32
    %c0_i32_0 = arith.constant 0 : i32
    %c0_i32_1 = arith.constant 0 : i32
    return %arg0, %c0_i32, %c0_i32_0 : i32, i32, i32
  }
  func.func @transform_10(%arg0: i32) -> (i32, i32, i32) {
    %c0_i32 = arith.constant 0 : i32
    %c0_i32_0 = arith.constant 0 : i32
    %c0_i32_1 = arith.constant 0 : i32
    return %arg0, %c0_i32, %c0_i32_0 : i32, i32, i32
  }
  func.func @transform_11(%arg0: i32) -> (i32, i32, i32) {
    %c0_i32 = arith.constant 0 : i32
    %c0_i32_0 = arith.constant 0 : i32
    %c0_i32_1 = arith.constant 0 : i32
    return %arg0, %c0_i32, %c0_i32_0 : i32, i32, i32
  }
  func.func @transform_12(%arg0: i32) -> (i32, i32, i32) {
    %c0_i32 = arith.constant 0 : i32
    %c0_i32_0 = arith.constant 0 : i32
    %c0_i32_1 = arith.constant 0 : i32
    return %arg0, %c0_i32, %c0_i32_0 : i32, i32, i32
  }
  func.func @transform_13(%arg0: i32) -> (i32, i32) {
    %c0_i32 = arith.constant 0 : i32
    %c0_i32_0 = arith.constant 0 : i32
    %c0_i32_1 = arith.constant 0 : i32
    return %c0_i32, %c0_i32_0 : i32, i32
  }
  func.func @transform_14(%arg0: i32) -> (i32, i32) {
    %c0_i32 = arith.constant 0 : i32
    %c0_i32_0 = arith.constant 0 : i32
    %c0_i32_1 = arith.constant 0 : i32
    return %c0_i32, %c0_i32_0 : i32, i32
  }
  func.func @transform_15(%arg0: i32) -> (i32, i32) {
    %c0_i32 = arith.constant 0 : i32
    %c0_i32_0 = arith.constant 0 : i32
    %c0_i32_1 = arith.constant 0 : i32
    return %c0_i32, %c0_i32_0 : i32, i32
  }
  func.func @transform_16(%arg0: i32) -> (i32, i32) {
    %c0_i32 = arith.constant 0 : i32
    %c0_i32_0 = arith.constant 0 : i32
    %c0_i32_1 = arith.constant 0 : i32
    return %c0_i32, %c0_i32_0 : i32, i32
  }
  func.func @transform_17(%arg0: i32) -> (i32, i32) {
    %c0_i32 = arith.constant 0 : i32
    %c0_i32_0 = arith.constant 0 : i32
    %c0_i32_1 = arith.constant 0 : i32
    return %c0_i32, %c0_i32_0 : i32, i32
  }
}

</mosaic_0001>

<bundles_post_ra>
// kernel: vit_forward.2
= control target key start
LH: loop header
LB: loop body
LE: loop exit
PB: predicated region body
PF: predicated region fallthrough
CT: control target
= control target key end

     0   :  { %vm750_vm0 = vcmask 523264   ;;  %s1369_s1 = inlined_call_operand.vmem [shape: bf16[768,192], index: 1, kind: input, shape index: {}]   ;;  %s1370_s0 = inlined_call_operand.vmem [shape: f32[16,768], index: 0, kind: input, shape index: {}]   ;;  %s1371_s2 = inlined_call_operand.vmem [shape: f32[1,192], index: 2, kind: input, shape index: {}]   ;;  %s1372_s3 = inlined_call_operand.vmem [shape: f32[16,192], index: 3, kind: output, shape index: {}]  }
   0x1   :  { %v866_v0 = vld [vmem:[%s1369_s1 + $0x104] ss:$8 sps:$4 sm:$0xff]   ;;  %v868_v1 = vld [vmem:[%s1369_s1 + $0x100] ss:$8 sps:$4 sm:$0xff]   ;;  %v869_v2 = vld [vmem:[%s1369_s1 + $0x114] ss:$8 sps:$4 sm:$0xff]  }
   0x2   :  { %663 = vmatprep.subr.bf16.mxu0 %v866_v0  ;;  %v871_v3 = vld [vmem:[%s1369_s1 + $0x110] ss:$8 sps:$4 sm:$0xff]   ;;  %v872_v4 = vld [vmem:[%s1369_s1 + $0x124] ss:$8 sps:$4 sm:$0xff]   ;;  %v874_v5 = vld [vmem:[%s1369_s1 + $0x120] ss:$8 sps:$4 sm:$0xff]  }
   0x3   :  { %664 = vmatpush1.bf16.msra.mxu0 %v868_v1  ;;  %v875_v6 = vld [vmem:[%s1369_s1 + $0x134] ss:$8 sps:$4 sm:$0xff]   ;;  %v877_v7 = vld [vmem:[%s1369_s1 + $0x130] ss:$8 sps:$4 sm:$0xff]   ;;  %v878_v8 = vld [vmem:[%s1369_s1 + $0x144] ss:$8 sps:$4 sm:$0xff]  }
   0x4   :  { %665 = vmatprep.subr.bf16.mxu0 %v869_v2  ;;  %v880_v9 = vld [vmem:[%s1369_s1 + $0x140] ss:$8 sps:$4 sm:$0xff]   ;;  %v881_v10 = vld [vmem:[%s1369_s1 + $0x154] ss:$8 sps:$4 sm:$0xff]   ;;  %v883_v11 = vld [vmem:[%s1369_s1 + $0x150] ss:$8 sps:$4 sm:$0xff]  }
   0x5   :  { %v884_v12 = vld [vmem:[%s1369_s1 + $0x164] ss:$8 sps:$4 sm:$0xff]   ;;  %v913_v14 = vld [vmem:[%s1369_s1] ss:$8 sps:$4 sm:$0xff]   ;;  %v887_v16 = vld [vmem:[%s1369_s1 + $0x174] ss:$8 sps:$4 sm:$0xff]  }
   0x6   :  { %v911_v13 = vld [vmem:[%s1369_s1 + $0x4] ss:$8 sps:$4 sm:$0xff]   ;;  %v886_v15 = vld [vmem:[%s1369_s1 + $0x160] ss:$8 sps:$4 sm:$0xff]   ;;  %v917_v17 = vld [vmem:[%s1369_s1 + $0x14] ss:$8 sps:$4 sm:$0xff]  }
   0x7   :  { %666 = vmatpush1.bf16.msra.mxu0 %v871_v3  ;;  %620 = vmatprep.subr.bf16.mxu1 %v911_v13  ;;  %v919_v18 = vld [vmem:[%s1369_s1 + $0x10] ss:$8 sps:$4 sm:$0xff]   ;;  %v23_v20 = vld [vmem:[%s1370_s0 + $0x48] sm:$0xff]  ;;  %v929_v27 = vld [vmem:[%s1369_s1 + $0x34] ss:$8 sps:$4 sm:$0xff]  }
   0x8   :  { %667 = vmatprep.subr.bf16.mxu0 %v872_v4  ;;  %621 = vmatpush1.bf16.msra.mxu1 %v913_v14  ;;  %v17_v19 = vld [vmem:[%s1370_s0 + $0x18] sm:$0xff]  ;;  %v923_v23 = vld [vmem:[%s1369_s1 + $0x24] ss:$8 sps:$4 sm:$0xff]   ;;  %v925_v24 = vld [vmem:[%s1369_s1 + $0x20] ss:$8 sps:$4 sm:$0xff]  }
   0x9   :  { %622 = vmatprep.subr.bf16.mxu1 %v917_v17  ;;  %v29_v21 = vpack.c.bf16 %v23_v20, %v17_v19  ;;  %v889_v22 = vld [vmem:[%s1369_s1 + $0x170] ss:$8 sps:$4 sm:$0xff]   ;;  %v890_v25 = vld [vmem:[%s1369_s1 + $0x184] ss:$8 sps:$4 sm:$0xff]   ;;  %v892_v26 = vld [vmem:[%s1369_s1 + $0x180] ss:$8 sps:$4 sm:$0xff]  }
   0xa   :  { %v893_v28 = vld [vmem:[%s1369_s1 + $0x194] ss:$8 sps:$4 sm:$0xff]   ;;  %v931_v29 = vld [vmem:[%s1369_s1 + $0x30] ss:$8 sps:$4 sm:$0xff]   ;;  %v935_v30 = vld [vmem:[%s1369_s1 + $0x44] ss:$8 sps:$4 sm:$0xff]  }
   0xb   :  { %668 = vmatpush1.bf16.msra.mxu0 %v874_v5  ;;  %695 = vmatprep.mubr.bf16.mxu0 %v29_v21  ;;  %v895_v31 = vld [vmem:[%s1369_s1 + $0x190] ss:$8 sps:$4 sm:$0xff]   ;;  %v896_v32 = vld [vmem:[%s1369_s1 + $0x1a4] ss:$8 sps:$4 sm:$0xff]   ;;  %v937_v33 = vld [vmem:[%s1369_s1 + $0x40] ss:$8 sps:$4 sm:$0xff]  }
   0xc   :  { %669 = vmatprep.subr.bf16.mxu0 %v875_v6  ;;  %623 = vmatpush1.bf16.msra.mxu1 %v919_v18  ;;  %v941_v34 = vld [vmem:[%s1369_s1 + $0x54] ss:$8 sps:$4 sm:$0xff]   ;;  %v898_v35 = vld [vmem:[%s1369_s1 + $0x1a0] ss:$8 sps:$4 sm:$0xff]   ;;  %v943_v37 = vld [vmem:[%s1369_s1 + $0x50] ss:$8 sps:$4 sm:$0xff]  }
   0xd   :  { %624 = vmatprep.subr.bf16.mxu1 %v923_v23  ;;  %v899_v36 = vld [vmem:[%s1369_s1 + $0x1b4] ss:$8 sps:$4 sm:$0xff]   ;;  %v947_v38 = vld [vmem:[%s1369_s1 + $0x64] ss:$8 sps:$4 sm:$0xff]   ;;  %v901_v39 = vld [vmem:[%s1369_s1 + $0x1b0] ss:$8 sps:$4 sm:$0xff]  }
   0xe   :  { %v902_v40 = vld [vmem:[%s1369_s1 + $0x1c4] ss:$8 sps:$4 sm:$0xff]   ;;  %v949_v41 = vld [vmem:[%s1369_s1 + $0x60] ss:$8 sps:$4 sm:$0xff]   ;;  %v953_v42 = vld [vmem:[%s1369_s1 + $0x74] ss:$8 sps:$4 sm:$0xff]  }
   0xf   :  { %670 = vmatpush1.bf16.msra.mxu0 %v877_v7  ;;  %v904_v43 = vld [vmem:[%s1369_s1 + $0x1c0] ss:$8 sps:$4 sm:$0xff]   ;;  %v905_v44 = vld [vmem:[%s1369_s1 + $0x1d4] ss:$8 sps:$4 sm:$0xff]   ;;  %v955_v45 = vld [vmem:[%s1369_s1 + $0x70] ss:$8 sps:$4 sm:$0xff]  }
  0x10   :  { %671 = vmatprep.subr.bf16.mxu0 %v878_v8  ;;  %625 = vmatpush1.bf16.msra.mxu1 %v925_v24  ;;  %v959_v46 = vld [vmem:[%s1369_s1 + $0x84] ss:$8 sps:$4 sm:$0xff]   ;;  %v907_v47 = vld [vmem:[%s1369_s1 + $0x1d0] ss:$8 sps:$4 sm:$0xff]   ;;  %v961_v49 = vld [vmem:[%s1369_s1 + $0x80] ss:$8 sps:$4 sm:$0xff]  }
  0x11   :  { %626 = vmatprep.subr.bf16.mxu1 %v929_v27  ;;  %v908_v48 = vld [vmem:[%s1369_s1 + $0x1e4] ss:$8 sps:$4 sm:$0xff]   ;;  %v965_v50 = vld [vmem:[%s1369_s1 + $0x94] ss:$8 sps:$4 sm:$0xff]   ;;  %v910_v51 = vld [vmem:[%s1369_s1 + $0x1e0] ss:$8 sps:$4 sm:$0xff]  }
  0x12   :  { %v914_v52 = vld [vmem:[%s1369_s1 + $0x1f4] ss:$8 sps:$4 sm:$0xff]   ;;  %v967_v53 = vld [vmem:[%s1369_s1 + $0x90] ss:$8 sps:$4 sm:$0xff]   ;;  %v971_v54 = vld [vmem:[%s1369_s1 + $0xa4] ss:$8 sps:$4 sm:$0xff]  }
  0x13   :  { %672 = vmatpush1.bf16.msra.mxu0 %v880_v9  ;;  %v916_v55 = vld [vmem:[%s1369_s1 + $0x1f0] ss:$8 sps:$4 sm:$0xff]   ;;  %v922_v56 = vld [vmem:[%s1369_s1 + $0x204] ss:$8 sps:$4 sm:$0xff]   ;;  %v973_v59 = vld [vmem:[%s1369_s1 + $0xa0] ss:$8 sps:$4 sm:$0xff]  }
  0x14   :  { %673 = vmatprep.subr.bf16.mxu0 %v881_v10  ;;  %627 = vmatpush1.bf16.msra.mxu1 %v931_v29  ;;  %v16_v57 = vld [vmem:[%s1370_s0 + $0x10] sm:$0xff]  ;;  %v22_v58 = vld [vmem:[%s1370_s0 + $0x40] sm:$0xff]  ;;  %v15_v2 = vld [vmem:[%s1370_s0 + $0x8] sm:$0xff] }
  0x15   :  { %628 = vmatprep.subr.bf16.mxu1 %v935_v30  ;;  %v977_v60 = vld [vmem:[%s1369_s1 + $0xb4] ss:$8 sps:$4 sm:$0xff]   ;;  %v920_v61 = vld [vmem:[%s1369_s1 + $0x200] ss:$8 sps:$4 sm:$0xff]   ;;  %v28_v62 = vpack.c.bf16 %v22_v58, %v16_v57  ;;  %v979_v0 = vld [vmem:[%s1369_s1 + $0xb0] ss:$8 sps:$4 sm:$0xff]  }
  0x16   :  { %v928_v63 = vld [vmem:[%s1369_s1 + $0x214] ss:$8 sps:$4 sm:$0xff]   ;;  %v983_v1 = vld [vmem:[%s1369_s1 + $0xc4] ss:$8 sps:$4 sm:$0xff]   ;;  %v926_v6 = vld [vmem:[%s1369_s1 + $0x210] ss:$8 sps:$4 sm:$0xff]  }
  0x17   :  { %674 = vmatpush1.bf16.msra.mxu0 %v883_v11  ;;  %v21_v3 = vld [vmem:[%s1370_s0 + $0x38] sm:$0xff]  ;;  %v19_v5 = vld [vmem:[%s1370_s0 + $0x28] sm:$0xff]  ;;  %v20_v23 = vld [vmem:[%s1370_s0 + $0x30] sm:$0xff] }
  0x18   :  { %675 = vmatprep.subr.bf16.mxu0 %v884_v12  ;;  %629 = vmatpush1.bf16.msra.mxu1 %v937_v33  ;;  %v27_v4 = vpack.c.bf16 %v21_v3, %v15_v2  ;;  %v985_v7 = vld [vmem:[%s1369_s1 + $0xc0] ss:$8 sps:$4 sm:$0xff]   ;;  %v25_v8 = vld [vmem:[%s1370_s0 + $0x58] sm:$0xff]  ;;  %v934_v9 = vld [vmem:[%s1369_s1 + $0x224] ss:$8 sps:$4 sm:$0xff]  }
  0x19   :  { %630 = vmatprep.subr.bf16.mxu1 %v941_v34  ;;  %v989_v10 = vld [vmem:[%s1369_s1 + $0xd4] ss:$8 sps:$4 sm:$0xff]   ;;  %v31_v11 = vpack.c.bf16 %v25_v8, %v19_v5  ;;  %v932_v12 = vld [vmem:[%s1369_s1 + $0x220] ss:$8 sps:$4 sm:$0xff]   ;;  %v991_v13 = vld [vmem:[%s1369_s1 + $0xd0] ss:$8 sps:$4 sm:$0xff]  }
  0x1a   :  { %652 = vmatprep.mubr.bf16.mxu1 %v27_v4  ;;  %v940_v14 = vld [vmem:[%s1369_s1 + $0x234] ss:$8 sps:$4 sm:$0xff]   ;;  %v997_v17 = vld [vmem:[%s1369_s1 + $0xe0] ss:$8 sps:$4 sm:$0xff]   ;;  %v946_v18 = vld [vmem:[%s1369_s1 + $0x244] ss:$8 sps:$4 sm:$0xff]  }
  0x1b   :  { %676 = vmatpush1.bf16.msra.mxu0 %v886_v15  ;;  %v995_v15 = vld [vmem:[%s1369_s1 + $0xe4] ss:$8 sps:$4 sm:$0xff]   ;;  %v1001_v19 = vld [vmem:[%s1369_s1 + $0xf4] ss:$8 sps:$4 sm:$0xff]   ;;  %v944_v20 = vld [vmem:[%s1369_s1 + $0x240] ss:$8 sps:$4 sm:$0xff]  }
  0x1c   :  { %677 = vmatprep.subr.bf16.mxu0 %v887_v16  ;;  %631 = vmatpush1.bf16.msra.mxu1 %v943_v37  ;;  %v938_v16 = vld [vmem:[%s1369_s1 + $0x230] ss:$8 sps:$4 sm:$0xff]   ;;  %v952_v24 = vld [vmem:[%s1369_s1 + $0x254] ss:$8 sps:$4 sm:$0xff]   ;;  %v958_v27 = vld [vmem:[%s1369_s1 + $0x264] ss:$8 sps:$4 sm:$0xff]  }
  0x1d   :  { %632 = vmatprep.subr.bf16.mxu1 %v947_v38  ;;  %v1003_v21 = vld [vmem:[%s1369_s1 + $0xf0] ss:$8 sps:$4 sm:$0xff]   ;;  %v964_v29 = vld [vmem:[%s1369_s1 + $0x274] ss:$8 sps:$4 sm:$0xff]   ;;  %v128_v57 = vld [vmem:[%s1371_s2] sm:$0x3] }
  0x1e   :  { %v962_v30 = vld [vmem:[%s1369_s1 + $0x270] ss:$8 sps:$4 sm:$0xff]   ;;  %v976_v33 = vld [vmem:[%s1369_s1 + $0x294] ss:$8 sps:$4 sm:$0xff]  }
  0x1f   :  { %678 = vmatpush1.bf16.msra.mxu0 %v889_v22  ;;  %v14_v22 = vld [vmem:[%s1370_s0] sm:$0xff]  ;;  %v974_v34 = vld [vmem:[%s1369_s1 + $0x290] ss:$8 sps:$4 sm:$0xff]   ;;  %v988_v37 = vld [vmem:[%s1369_s1 + $0x2b4] ss:$8 sps:$4 sm:$0xff]  }
  0x20   :  { %679 = vmatprep.subr.bf16.mxu0 %v890_v25  ;;  %633 = vmatpush1.bf16.msra.mxu1 %v949_v41  ;;  %v26_v25 = vpack.c.bf16 %v20_v23, %v14_v22  ;;  %v986_v38 = vld [vmem:[%s1369_s1 + $0x2b0] ss:$8 sps:$4 sm:$0xff]   ;;  %v1000_v41 = vld [vmem:[%s1369_s1 + $0x2d4] ss:$8 sps:$4 sm:$0xff]  }
  0x21   :  { %634 = vmatprep.subr.bf16.mxu1 %v953_v42  ;;  %v998_v42 = vld [vmem:[%s1369_s1 + $0x2d0] ss:$8 sps:$4 sm:$0xff]  }
  0x23   :  { %680 = vmatpush1.bf16.msra.mxu0 %v892_v26  ;;  %v950_v26 = vld [vmem:[%s1369_s1 + $0x250] ss:$8 sps:$4 sm:$0xff]  }
  0x24   :  { %681 = vmatprep.subr.bf16.mxu0 %v893_v28  ;;  %635 = vmatpush1.bf16.msra.mxu1 %v955_v45  ;;  %v956_v28 = vld [vmem:[%s1369_s1 + $0x260] ss:$8 sps:$4 sm:$0xff]   ;;  %v1009_v45 = vld [vmem:[%s1369_s1 + $0x2f4] ss:$8 sps:$4 sm:$0xff]  }
  0x25   :  { %636 = vmatprep.subr.bf16.mxu1 %v959_v46  ;;  %v1007_v46 = vld [vmem:[%s1369_s1 + $0x2f0] ss:$8 sps:$4 sm:$0xff]  }
  0x27   :  { %682 = vmatpush1.bf16.msra.mxu0 %v895_v31  ;;  %v970_v31 = vld [vmem:[%s1369_s1 + $0x284] ss:$8 sps:$4 sm:$0xff]  }
  0x28   :  { %683 = vmatprep.subr.bf16.mxu0 %v896_v32  ;;  %637 = vmatpush1.bf16.msra.mxu1 %v961_v49  ;;  %v968_v32 = vld [vmem:[%s1369_s1 + $0x280] ss:$8 sps:$4 sm:$0xff]  }
  0x29   :  { %638 = vmatprep.subr.bf16.mxu1 %v965_v50 }
  0x2b   :  { %684 = vmatpush1.bf16.msra.mxu0 %v898_v35  ;;  %v982_v35 = vld [vmem:[%s1369_s1 + $0x2a4] ss:$8 sps:$4 sm:$0xff]  }
  0x2c   :  { %685 = vmatprep.subr.bf16.mxu0 %v899_v36  ;;  %639 = vmatpush1.bf16.msra.mxu1 %v967_v53  ;;  %v980_v36 = vld [vmem:[%s1369_s1 + $0x2a0] ss:$8 sps:$4 sm:$0xff]  }
  0x2d   :  { %640 = vmatprep.subr.bf16.mxu1 %v971_v54  ;;  %v130_v54 = vlaneseq }
  0x2f   :  { %686 = vmatpush1.bf16.msra.mxu0 %v901_v39  ;;  %v994_v39 = vld [vmem:[%s1369_s1 + $0x2c4] ss:$8 sps:$4 sm:$0xff]  }
  0x30   :  { %687 = vmatprep.subr.bf16.mxu0 %v902_v40  ;;  %641 = vmatpush1.bf16.msra.mxu1 %v973_v59  ;;  %v992_v40 = vld [vmem:[%s1369_s1 + $0x2c0] ss:$8 sps:$4 sm:$0xff]  }
  0x31   :  { %642 = vmatprep.subr.bf16.mxu1 %v977_v60 }
  0x33   :  { %688 = vmatpush1.bf16.msra.mxu0 %v904_v43  ;;  %v1006_v43 = vld [vmem:[%s1369_s1 + $0x2e4] ss:$8 sps:$4 sm:$0xff]  }
  0x34   :  { %689 = vmatprep.subr.bf16.mxu0 %v905_v44  ;;  %643 = vmatpush1.bf16.msra.mxu1 %v979_v0  ;;  %v1004_v44 = vld [vmem:[%s1369_s1 + $0x2e0] ss:$8 sps:$4 sm:$0xff]  }
  0x35   :  { %644 = vmatprep.subr.bf16.mxu1 %v983_v1 }
  0x37   :  { %690 = vmatpush1.bf16.msra.mxu0 %v907_v47  ;;  %v18_v47 = vld [vmem:[%s1370_s0 + $0x20] sm:$0xff] }
  0x38   :  { %691 = vmatprep.subr.bf16.mxu0 %v908_v48  ;;  %645 = vmatpush1.bf16.msra.mxu1 %v985_v7  ;;  %v24_v48 = vld [vmem:[%s1370_s0 + $0x50] sm:$0xff] }
  0x39   :  { %646 = vmatprep.subr.bf16.mxu1 %v989_v10  ;;  %v30_v49 = vpack.c.bf16 %v24_v48, %v18_v47 }
  0x3b   :  { %692 = vmatpush1.bf16.msra.mxu0 %v910_v51 }
  0x3c   :  { %693 = vmatprep.subr.bf16.mxu0 %v914_v52  ;;  %647 = vmatpush1.bf16.msra.mxu1 %v991_v13 }
  0x3d   :  { %648 = vmatprep.subr.bf16.mxu1 %v995_v15 }
  0x3f   :  { %694 = vmatpush1.bf16.msra.mxu0 %v916_v55  ;;  %v131_v55 = vshrl.u32 %v130_v54, 7 }
  0x40   :  { %706 = vmatprep.subr.bf16.mxu0 %v922_v56  ;;  %649 = vmatpush1.bf16.msra.mxu1 %v997_v17 }
  0x41   :  { %650 = vmatprep.subr.bf16.mxu1 %v1001_v19  ;;  %v132_v56 = vsub.s32 0, %v131_v55  ;;  %v136_v58 = vsub.s32 1, %v131_v55 }
  0x42   :  { %696 = vmatmul.mubr.bf16.vlgmr.msra.gmra.mrb[0].mxu0 %v28_v62 }
  0x43   :  { %707 = vmatpush1.bf16.msra.mxu0 %v920_v61  ;;  %738 = vmatprep.mubr.bf16.mxu0 %v31_v11  ;;  %v133_v59 = vrot.slane %v128_v57, %v132_v56  ;;  %v137_v60 = vrot.slane %v128_v57, %v136_v58 }
  0x44   :  { %708 = vmatprep.subr.bf16.mxu0 %v928_v63  ;;  %651 = vmatpush1.bf16.msra.mxu1 %v1003_v21 }
  0x47   :  { %709 = vmatpush1.bf16.msra.mxu0 %v926_v6  ;;  %653 = vmatmul.mubr.bf16.vlgmr.msra.gmra.mrb[0].mxu1 %v26_v25 }
  0x48   :  { %710 = vmatprep.subr.bf16.mxu0 %v934_v9 }
  0x4b   :  { %711 = vmatpush1.bf16.msra.mxu0 %v932_v12 }
  0x4c   :  { %712 = vmatprep.subr.bf16.mxu0 %v940_v14 }
  0x4f   :  { %713 = vmatpush1.bf16.msra.mxu0 %v938_v16 }
  0x50   :  { %714 = vmatprep.subr.bf16.mxu0 %v946_v18 }
  0x53   :  { %715 = vmatpush1.bf16.msra.mxu0 %v944_v20 }
  0x54   :  { %716 = vmatprep.subr.bf16.mxu0 %v952_v24 }
  0x57   :  { %717 = vmatpush1.bf16.msra.mxu0 %v950_v26 }
  0x58   :  { %718 = vmatprep.subr.bf16.mxu0 %v958_v27 }
  0x5b   :  { %719 = vmatpush1.bf16.msra.mxu0 %v956_v28 }
  0x5c   :  { %720 = vmatprep.subr.bf16.mxu0 %v964_v29 }
  0x5f   :  { %721 = vmatpush1.bf16.msra.mxu0 %v962_v30 }
  0x60   :  { %722 = vmatprep.subr.bf16.mxu0 %v970_v31 }
  0x63   :  { %723 = vmatpush1.bf16.msra.mxu0 %v968_v32 }
  0x64   :  { %724 = vmatprep.subr.bf16.mxu0 %v976_v33 }
  0x67   :  { %725 = vmatpush1.bf16.msra.mxu0 %v974_v34 }
  0x68   :  { %726 = vmatprep.subr.bf16.mxu0 %v982_v35 }
  0x6b   :  { %727 = vmatpush1.bf16.msra.mxu0 %v980_v36 }
  0x6c   :  { %728 = vmatprep.subr.bf16.mxu0 %v988_v37 }
  0x6f   :  { %729 = vmatpush1.bf16.msra.mxu0 %v986_v38 }
  0x70   :  { %730 = vmatprep.subr.bf16.mxu0 %v994_v39 }
  0x73   :  { %731 = vmatpush1.bf16.msra.mxu0 %v992_v40 }
  0x74   :  { %732 = vmatprep.subr.bf16.mxu0 %v1000_v41 }
  0x77   :  { %733 = vmatpush1.bf16.msra.mxu0 %v998_v42 }
  0x78   :  { %734 = vmatprep.subr.bf16.mxu0 %v1006_v43 }
  0x7b   :  { %735 = vmatpush1.bf16.msra.mxu0 %v1004_v44 }
  0x7c   :  { %736 = vmatprep.subr.bf16.mxu0 %v1009_v45 }
  0x7f   :  { %737 = vmatpush1.bf16.msra.mxu0 %v1007_v46 }
  0x82   :  { %739 = vmatmul.mubr.bf16.vlgmr.msra.gmra.mrb[0].mxu0 %v30_v49 }
 0x11a   :  { %v654_v50 = vpop.f32.mrb[0].mxu1 }
 0x11b   :  { %v656_v51 = vpop.f32.mrb[1].mxu1  ;;  %v655_v61 = vadd.f32 %v654_v50, %v133_v59 }
 0x11c   :  { %v658_v52 = vpop.f32.mrb[2].mxu1  ;;  %v657_v62 = vadd.f32 %v656_v51, %v137_v60 }
 0x11d   :  { %v660_v53 = vpop.f32.mrb[3].mxu1  ;;  %v659_v0 = vadd.f32 %v658_v52, %v133_v59 }
 0x11e   :  { %v661_v3 = vadd.f32 %v660_v53, %v137_v60 }
 0x155   :  { %v740_v63 = vpop.f32.mrb[0].mxu0 }
 0x156   :  { %v855_v1 = vadd.f32 %v740_v63, %v655_v61  ;;  %v742_v2 = vpop.f32.mrb[1].mxu0 }
 0x157   :  { %v857_v4 = vadd.f32 %v742_v2, %v657_v62  ;;  %v744_v5 = vpop.f32.mrb[2].mxu0 }
 0x158   :  { %749 = vst [vmem:[%s1372_s3] sm:$0xff] %v855_v1  ;;  %v859_v6 = vadd.f32 %v744_v5, %v659_v0  ;;  %v746_v7 = vpop.f32.mrb[3].mxu0 }
 0x159   :  { %751 = vst.msk [vmem:[%s1372_s3 + $0x8] sm:$0xff] %vm750_vm0, %v857_v4  ;;  %v861_v8 = vadd.f32 %v746_v7, %v661_v3 }
 0x15a   :  { %752 = vst [vmem:[%s1372_s3 + $0x10] sm:$0xff] %v859_v6 }
 0x15b   :  { %753 = vst.msk [vmem:[%s1372_s3 + $0x18] sm:$0xff] %vm750_vm0, %v861_v8 }

// kernel: vit_forward.3
= control target key start
LH: loop header
LB: loop body
LE: loop exit
PB: predicated region body
PF: predicated region fallthrough
CT: control target
= control target key end

     0   :  { %s6405_s26 = smov 0   ;;  %s7400_s0 = inlined_call_operand.vmem [shape: f32[16,192], index: 0, kind: input, shape index: {}]   ;;  %s7401_s1 = inlined_call_operand.vmem [shape: f32[2,1,192], index: 1, kind: input, shape index: {}]   ;;  %s7402_s2 = inlined_call_operand.vmem [shape: f32[2,1,192], index: 2, kind: input, shape index: {}]   ;;  %s7403_s3 = inlined_call_operand.vmem [shape: bf16[2,192,576], index: 3, kind: input, shape index: {}]   ;;  %s7404_s4 = inlined_call_operand.vmem [shape: f32[2,1,576], index: 4, kind: input, shape index: {}]   ;;  %s7405_s5 = inlined_call_operand.vmem [shape: bf16[2,192,192], index: 5, kind: input, shape index: {}]   ;;  %s7406_s6 = inlined_call_operand.vmem [shape: f32[2,1,192], index: 6, kind: input, shape index: {}]   ;;  %s7407_s7 = inlined_call_operand.vmem [shape: f32[2,1,192], index: 7, kind: input, shape index: {}]   ;;  %s7408_s8 = inlined_call_operand.vmem [shape: f32[2,1,192], index: 8, kind: input, shape index: {}]   ;;  %s7409_s9 = inlined_call_operand.vmem [shape: bf16[2,192,768], index: 9, kind: input, shape index: {}]   ;;  %s7410_s10 = inlined_call_operand.vmem [shape: f32[2,1,768], index: 10, kind: input, shape index: {}]   ;;  %s7411_s11 = inlined_call_operand.vmem [shape: bf16[2,768,192], index: 11, kind: input, shape index: {}]   ;;  %s7412_s12 = inlined_call_operand.vmem [shape: f32[2,1,192], index: 12, kind: input, shape index: {}]   ;;  %s7413_s13 = inlined_call_operand.vmem [shape: f32[1,192], index: 13, kind: input, shape index: {}]   ;;  %s7414_s14 = inlined_call_operand.vmem [shape: f32[1,192], index: 14, kind: input, shape index: {}]   ;;  %s7415_s15 = inlined_call_operand.vmem [shape: bf16[192,1], index: 15, kind: input, shape index: {}]   ;;  %s7416_s16 = inlined_call_operand.<no memory space> [shape: f32[1,1], index: 16, kind: input, shape index: {}]   ;;  %s7417_s17 = inlined_call_operand.vmem [shape: f32[16,1], index: 17, kind: output, shape index: {}]  }
   0x1   :  { %7423 = sst [smem:[#allocation6_spill]] %s7400_s0  ;;  %v22_v0 = vstv %s7416_s16 }
   0x2   :  { %7424 = sst [smem:[#allocation7_spill]] %s7401_s1  ;;  %23 = vst [vmem:[#allocation3] sm:$0x1] %v22_v0 }
   0x3   :  { %7425 = sst [smem:[#allocation8_spill]] %s7403_s3 }
   0x4   :  { %7426 = sst [smem:[#allocation9_spill]] %s7413_s13 }
   0x5   :  { %7427 = sst [smem:[#allocation10_spill]] %s7414_s14 }
   0x6   :  { %7428 = sst [smem:[#allocation11_spill]] %s7415_s15 }
   0x7   :  { %7429 = sst [smem:[#allocation12_spill]] %s7417_s17 }
   0x8 LB: > { %7430 = sst [smem:[#allocation4_spill]] %s6303_s26  ;;  %s6411_s27 = sadd.s32 4294967295, %s6303_s26   ;;  %s6303_s26 = sphi %s6405_s26, %s29_s26  }
   0x9   : > { %7431 = sst [smem:[#allocation5_spill]] %s6411_s27  ;;  %p5277_p0 = scmp.ge.s32.totalorder %s6303_s26, 1 }
   0xa   : > { %p586_p1 = scmp.lt.s32.totalorder %s6303_s26, 3 }
   0xc   : > { %p587_p2 = pnand %p5277_p0, %p586_p1 }
   0xd   : > { %p680_p3 = scmp.lt.s32.totalorder (!%p587_p2), %s6411_s27, 1  ;;  %s7433_s3 = sld [smem:[#allocation8_spill]] (!%p587_p2) }
   0xe   : > { %590 = sbr.rel (%p587_p2) target bundleno = 8352 (0x20a0), region = 88  ;;  %s7434_s19 = sld [smem:[#allocation5_spill]] (!%p587_p2) }
  0x14   : > { %p5288_p4 = scmp.ne.s32.totalorder (!%p587_p2), %s7434_s19, 0 }
  0x15   : > { %s681_s16 = scalar_select %p680_p3, %s6411_s27, 1 }
  0x16   : > { %s7435_s15 = sld [smem:[#allocation6_spill]] (!%p5288_p4)  ;;  %vm742_vm0 = vcmask (!%p5288_p4), 523264  }
  0x17   : > { %s6417_s28 = sshll.u32 %s681_s16, 1  ;;  %s5804_s29 = smul.u32 480, %s681_s16 }
  0x18   : > { %s5805_s25 = smul.u32 5, %s681_s16 }
  0x19   : > { %s6430_s24 = scalar_lea.vmem %s7433_s3, %s5804_s29  ;;  %s5806_s26 = smul.u32 192, %s681_s16 }
  0x1a   : > { %s6439_s0 = scalar_lea.vmem %s7404_s4, %s5805_s25  ;;  %s5807_s14 = smul.u32 576, %s681_s16 }
  0x1b   : > { %s6448_s29 = scalar_lea.vmem %s7405_s5, %s5806_s26  ;;  %s5808_s27 = smul.u32 6, %s681_s16 }
  0x1c   : > { %s6461_s30 = scalar_lea.vmem %s7409_s9, %s5807_s14  ;;  %s5809_s18 = smul.u32 768, %s681_s16  ;;  %v737_v1 = vld [vmem:[%s7435_s15] sm:$0xff] (!%p5288_p4)  ;;  %v738_v2 = vld [vmem:[%s7435_s15 + $0x8] sm:$0xff] (!%p5288_p4)  ;;  %v739_v3 = vld [vmem:[%s7435_s15 + $0x10] sm:$0xff] (!%p5288_p4) }
  0x1d   : > { %s6466_s26 = scalar_lea.vmem %s7410_s10, %s5808_s27  ;;  %736 = sbr.rel (%p5288_p4) target bundleno = 36 (0x24), region = 92  ;;  %741 = vst [vmem:[#allocation2] sm:$0xff] (!%p5288_p4), %v737_v1  ;;  %743 = vst.msk [vmem:[#allocation2 + $0x8] sm:$0xff] (!%p5288_p4), %vm742_vm0, %v738_v2  ;;  %v740_v4 = vld [vmem:[%s7435_s15 + $0x18] sm:$0xff] (!%p5288_p4) }
  0x1e   : > { %s6471_s23 = scalar_lea.vmem %s7411_s11, %s5809_s18  ;;  %744 = vst [vmem:[#allocation2 + $0x10] sm:$0xff] (!%p5288_p4), %v739_v3  ;;  %745 = vst.msk [vmem:[#allocation2 + $0x18] sm:$0xff] (!%p5288_p4), %vm742_vm0, %v740_v4 }
  0x24 PF: > { %v746_v5 = vld [vmem:[#allocation2] sm:$0xff]  ;;  %v747_v6 = vld [vmem:[#allocation2 + $0x8] sm:$0xff]  ;;  %vm752_vm1 = vcmask 523264   ;;  %v5840_v22 = vld [vmem:[%s6430_s24 + $0x5c] ss:$20 sps:$4 sm:$0xff]   ;;  %s7436_s21 = sld [smem:[#allocation7_spill]]  ;;  %s7438_s17 = scalar_lea.vmem %s7402_s2, %s6417_s28 }
  0x25   : > { %v748_v7 = vld [vmem:[#allocation2 + $0x10] sm:$0xff]  ;;  %v753_v8 = vsel %vm752_vm1, %v747_v6, 0.0  ;;  %v749_v9 = vld [vmem:[#allocation2 + $0x18] sm:$0xff]  ;;  %v5828_v15 = vld [vmem:[%s6430_s24 + $0xc] ss:$20 sps:$4 sm:$0xff]   ;;  %vm6307_vm2 = vmmov 0   ;;  %s7439_s16 = scalar_lea.vmem %s7406_s6, %s6417_s28  ;;  %s7440_s25 = scalar_lea.vmem %s7407_s7, %s6417_s28 }
  0x26   : > { %v754_v10 = vadd.f32 %v753_v8, %v746_v5  ;;  %v757_v11 = vsel %vm752_vm1, %v749_v9, 0.0  ;;  %v5825_v13 = vld [vmem:[%s6430_s24 + $0x4] ss:$20 sps:$4 sm:$0xff]   ;;  %v5827_v14 = vld [vmem:[%s6430_s24] ss:$20 sps:$4 sm:$0xff]   ;;  %1279 = vmatprep.subr.bf16.mxu1 %v5828_v15  ;;  %vm1461_vm3 = vcmask 1043456  }
  0x27   : > { %v758_v12 = vadd.f32 %v757_v11, %v748_v7  ;;  %v5830_v16 = vld [vmem:[%s6430_s24 + $0x8] ss:$20 sps:$4 sm:$0xff]   ;;  %v5831_v17 = vld [vmem:[%s6430_s24 + $0x2c] ss:$20 sps:$4 sm:$0xff]   ;;  %1236 = vmatprep.subr.bf16.mxu0 %v5825_v13  ;;  %v5836_v20 = vld [vmem:[%s6430_s24 + $0x30] ss:$20 sps:$4 sm:$0xff]  }
  0x28   : > { %755 = vadd.xlane.f32.xlu0 %v754_v10  ;;  %v5834_v18 = vld [vmem:[%s6430_s24 + $0x34] ss:$20 sps:$4 sm:$0xff]   ;;  %1237 = vmatpush1.bf16.msra.mxu0 %v5827_v14  ;;  %v5839_v23 = vld [vmem:[%s6430_s24 + $0x50] ss:$20 sps:$4 sm:$0xff]   ;;  %v5842_v24 = vld [vmem:[%s6430_s24 + $0x58] ss:$20 sps:$4 sm:$0xff]  }
  0x29   : > { %1280 = vmatpush1.bf16.msra.mxu1 %v5830_v16  ;;  %v5833_v19 = vld [vmem:[%s6430_s24 + $0x28] ss:$20 sps:$4 sm:$0xff]   ;;  %1238 = vmatprep.subr.bf16.mxu0 %v5831_v17  ;;  %v5846_v26 = vld [vmem:[%s6430_s24 + $0x84] ss:$20 sps:$4 sm:$0xff]   ;;  %v5848_v28 = vld [vmem:[%s6430_s24 + $0x80] ss:$20 sps:$4 sm:$0xff]  }
  0x2a   : > { %1281 = vmatprep.subr.bf16.mxu1 %v5834_v18  ;;  %v5837_v21 = vld [vmem:[%s6430_s24 + $0x54] ss:$20 sps:$4 sm:$0xff]   ;;  %v5843_v25 = vld [vmem:[%s6430_s24 + $0x7c] ss:$20 sps:$4 sm:$0xff]   ;;  %v5845_v27 = vld [vmem:[%s6430_s24 + $0x78] ss:$20 sps:$4 sm:$0xff]   ;;  %v791_v18 = vlaneseq  ;;  %s7437_s20 = scalar_lea.vmem %s7436_s21, %s6417_s28  ;;  %s7441_s21 = scalar_lea.vmem %s7408_s8, %s6417_s28 }
  0x2b   : > { %v5849_v29 = vld [vmem:[%s6430_s24 + $0xa4] ss:$20 sps:$4 sm:$0xff]   ;;  %v5852_v30 = vld [vmem:[%s6430_s24 + $0xac] ss:$20 sps:$4 sm:$0xff]   ;;  %v5854_v32 = vld [vmem:[%s6430_s24 + $0xa8] ss:$20 sps:$4 sm:$0xff]  }
  0x2c   : > { %759 = vadd.xlane.f32.xlu0 %v758_v12  ;;  %1239 = vmatpush1.bf16.msra.mxu0 %v5833_v19  ;;  %v5851_v31 = vld [vmem:[%s6430_s24 + $0xa0] ss:$20 sps:$4 sm:$0xff]   ;;  %v5857_v50 = vld [vmem:[%s6430_s24 + $0xc8] ss:$20 sps:$4 sm:$0xff]   ;;  %v5860_v52 = vld [vmem:[%s6430_s24 + $0xd0] ss:$20 sps:$4 sm:$0xff]  }
  0x2d   : > { %1282 = vmatpush1.bf16.msra.mxu1 %v5836_v20  ;;  %1240 = vmatprep.subr.bf16.mxu0 %v5837_v21  ;;  %v5855_v33 = vld [vmem:[%s6430_s24 + $0xcc] ss:$20 sps:$4 sm:$0xff]   ;;  %v5858_v51 = vld [vmem:[%s6430_s24 + $0xd4] ss:$20 sps:$4 sm:$0xff]   ;;  %v5863_v54 = vld [vmem:[%s6430_s24 + $0xf0] ss:$20 sps:$4 sm:$0xff]  }
  0x2e   : > { %1283 = vmatprep.subr.bf16.mxu1 %v5840_v22  ;;  %v5861_v53 = vld [vmem:[%s6430_s24 + $0xf4] ss:$20 sps:$4 sm:$0xff]   ;;  %v5864_v55 = vld [vmem:[%s6430_s24 + $0xfc] ss:$20 sps:$4 sm:$0xff]   ;;  %v5866_v56 = vld [vmem:[%s6430_s24 + $0xf8] ss:$20 sps:$4 sm:$0xff]  }
  0x2f   : > { %v5867_v57 = vld [vmem:[%s6430_s24 + $0x11c] ss:$20 sps:$4 sm:$0xff]   ;;  %v5869_v58 = vld [vmem:[%s6430_s24 + $0x118] ss:$20 sps:$4 sm:$0xff]   ;;  %v5872_v60 = vld [vmem:[%s6430_s24 + $0x120] ss:$20 sps:$4 sm:$0xff]  }
  0x30   : > { %1241 = vmatpush1.bf16.msra.mxu0 %v5839_v23  ;;  %v5870_v59 = vld [vmem:[%s6430_s24 + $0x124] ss:$20 sps:$4 sm:$0xff]   ;;  %v5875_v62 = vld [vmem:[%s6430_s24 + $0x140] ss:$20 sps:$4 sm:$0xff]   ;;  %v5878_v0 = vld [vmem:[%s6430_s24 + $0x148] ss:$20 sps:$4 sm:$0xff]  }
  0x31   : > { %1284 = vmatpush1.bf16.msra.mxu1 %v5842_v24  ;;  %1242 = vmatprep.subr.bf16.mxu0 %v5843_v25  ;;  %v5873_v61 = vld [vmem:[%s6430_s24 + $0x144] ss:$20 sps:$4 sm:$0xff]   ;;  %v5876_v63 = vld [vmem:[%s6430_s24 + $0x14c] ss:$20 sps:$4 sm:$0xff]   ;;  %v5882_v2 = vld [vmem:[%s6430_s24 + $0x174] ss:$20 sps:$4 sm:$0xff]  }
  0x32   : > { %1285 = vmatprep.subr.bf16.mxu1 %v5846_v26  ;;  %v5879_v1 = vld [vmem:[%s6430_s24 + $0x16c] ss:$20 sps:$4 sm:$0xff]   ;;  %v5881_v3 = vld [vmem:[%s6430_s24 + $0x168] ss:$20 sps:$4 sm:$0xff]   ;;  %v5884_v4 = vld [vmem:[%s6430_s24 + $0x170] ss:$20 sps:$4 sm:$0xff]  }
  0x33   : > { %v5890_v8 = vld [vmem:[%s6430_s24 + $0x198] ss:$20 sps:$4 sm:$0xff]   ;;  %v5896_v12 = vld [vmem:[%s6430_s24 + $0x1c0] ss:$20 sps:$4 sm:$0xff]   ;;  %v6305_v13 = vmov 0   ;;  %v6556_v21 = vshrl.u32 %v791_v18, 7 }
  0x34   : > { %1243 = vmatpush1.bf16.msra.mxu0 %v5845_v27  ;;  %v5894_v10 = vld [vmem:[%s6430_s24 + $0x1c4] ss:$20 sps:$4 sm:$0xff]   ;;  %v750_v24 = vld [vmem:[%s7437_s20] sm:$0x3]  ;;  %vm1396_vm4 = vcmask 261120   ;;  %vm1445_vm6 = vcmask 64512   ;;  %s7442_s20 = scalar_lea.vmem %s7412_s12, %s6417_s28 }
  0x35   : > { %1286 = vmatpush1.bf16.msra.mxu1 %v5848_v28  ;;  %1244 = vmatprep.subr.bf16.mxu0 %v5849_v29  ;;  %v5893_v11 = vld [vmem:[%s6430_s24 + $0x1b8] ss:$20 sps:$4 sm:$0xff]   ;;  %v6559_v22 = vsub.s32 1, %v6556_v21  ;;  %v6562_v23 = vsub.s32 0, %v6556_v21  ;;  %v751_v26 = vld [vmem:[%s7438_s17] sm:$0x3] }
  0x36   : > { %1287 = vmatprep.subr.bf16.mxu1 %v5852_v30  ;;  %s6310_s3 = smov 32   ;;  %s7443_s28 = sld [smem:[#allocation5_spill]] }
  0x37   : > { %v798_v28 = vrot.slane %v750_v24, %v6559_v22  ;;  %v794_v30 = vrot.slane %v750_v24, %v6562_v23 }
  0x38   : > { %1245 = vmatpush1.bf16.msra.mxu0 %v5851_v31 }
  0x39   : > { %1288 = vmatpush1.bf16.msra.mxu1 %v5854_v32  ;;  %1246 = vmatprep.subr.bf16.mxu0 %v5855_v33  ;;  %v813_v32 = vrot.slane %v751_v26, %v6559_v22  ;;  %v809_v33 = vrot.slane %v751_v26, %v6562_v23  ;;  %v914_v26 = vsub.s32 4, %v6556_v21 }
  0x3a   : > { %1289 = vmatprep.subr.bf16.mxu1 %v5858_v51  ;;  %v5902_v51 = vld [vmem:[%s6430_s24 + $0xd8] ss:$20 sps:$4 sm:$0xff]  }
  0x3c   : > { %1247 = vmatpush1.bf16.msra.mxu0 %v5857_v50  ;;  %v5901_v50 = vld [vmem:[%s6430_s24 + $0xb0] ss:$20 sps:$4 sm:$0xff]   ;;  %p5583_p5 = scmp.ne.s32.totalorder %s7443_s28, 1 }
  0x3d   : > { %1290 = vmatpush1.bf16.msra.mxu1 %v5860_v52  ;;  %1248 = vmatprep.subr.bf16.mxu0 %v5861_v53  ;;  %v5903_v52 = vld [vmem:[%s6430_s24 + $0x100] ss:$20 sps:$4 sm:$0xff]   ;;  %v5904_v53 = vld [vmem:[%s6430_s24 + $0x128] ss:$20 sps:$4 sm:$0xff]   ;;  %s7444_s13 = sld [smem:[#allocation11_spill]] (!%p5583_p5)  ;;  %s7445_s14 = sld [smem:[#allocation9_spill]] (!%p5583_p5) }
  0x3e   : > { %1291 = vmatprep.subr.bf16.mxu1 %v5864_v55  ;;  %v5906_v55 = vld [vmem:[%s6430_s24 + $0x178] ss:$20 sps:$4 sm:$0xff]   ;;  %s7446_s27 = sld [smem:[#allocation10_spill]] (!%p5583_p5)  ;;  %vm5111_vm7 = vcmask (!%p5583_p5), 7168   ;;  %s7447_s18 = sld [smem:[#allocation12_spill]] (!%p5583_p5) }
  0x40   : > { %1249 = vmatpush1.bf16.msra.mxu0 %v5863_v54  ;;  %v5905_v54 = vld [vmem:[%s6430_s24 + $0x150] ss:$20 sps:$4 sm:$0xff]  }
  0x41   : > { %1292 = vmatpush1.bf16.msra.mxu1 %v5866_v56  ;;  %1250 = vmatprep.subr.bf16.mxu0 %v5867_v57  ;;  %v5907_v56 = vld [vmem:[%s6430_s24 + $0x1a0] ss:$20 sps:$4 sm:$0xff]   ;;  %v5908_v57 = vld [vmem:[%s6430_s24 + $0x1c8] ss:$20 sps:$4 sm:$0xff]  }
  0x42   : > { %1293 = vmatprep.subr.bf16.mxu1 %v5870_v59  ;;  %v910_v59 = vsub.s32 3, %v6556_v21 }
  0x44   : > { %1251 = vmatpush1.bf16.msra.mxu0 %v5869_v58  ;;  %v6306_v58 = vmov 0.0  }
  0x45   : > { %1294 = vmatpush1.bf16.msra.mxu1 %v5872_v60  ;;  %1252 = vmatprep.subr.bf16.mxu0 %v5873_v61  ;;  %v894_v60 = vld [vmem:[%s6439_s0] sm:$0x1f]  ;;  %v906_v61 = vsub.s32 2, %v6556_v21  ;;  %s6309_s0 = smov 96  }
  0x46   : > { %1295 = vmatprep.subr.bf16.mxu1 %v5876_v63  ;;  %v911_v63 = vrot.slane %v894_v60, %v910_v59 }
  0x48   : > { %1253 = vmatpush1.bf16.msra.mxu0 %v5875_v62  ;;  %v903_v62 = vrot.slane %v894_v60, %v6559_v22 }
  0x49   : > { %1296 = vmatpush1.bf16.msra.mxu1 %v5878_v0  ;;  %1254 = vmatprep.subr.bf16.mxu0 %v5879_v1  ;;  %v899_v0 = vrot.slane %v894_v60, %v6562_v23 }
  0x4a   : > { %1297 = vmatprep.subr.bf16.mxu1 %v5882_v2 }
  0x4c   : > { %1255 = vmatpush1.bf16.msra.mxu0 %v5881_v3  ;;  %v907_v3 = vrot.slane %v894_v60, %v906_v61 }
  0x4d   : > { %1298 = vmatpush1.bf16.msra.mxu1 %v5884_v4 }
  0xb5   : > { %v756_v34 = vpop.xlane.xlu0 %755 }
  0xb6   : > { %v762_v35 = vmul.f32 0.0052083335, %v756_v34 }
  0xb8   : > { %v6509_v36 = vsub.f32 %v746_v5, %v762_v35  ;;  %v6511_v37 = vsub.f32 %v747_v6, %v762_v35  ;;  %v5885_v5 = vld [vmem:[%s6430_s24 + $0x194] ss:$20 sps:$4 sm:$0xff]   ;;  %v5888_v6 = vld [vmem:[%s6430_s24 + $0x19c] ss:$20 sps:$4 sm:$0xff]  }
  0xb9   : > { %v760_v38 = vpop.xlane.xlu0 %759  ;;  %1256 = vmatprep.subr.bf16.mxu0 %v5885_v5  ;;  %1299 = vmatprep.subr.bf16.mxu1 %v5888_v6 }
  0xba   : > { %v763_v39 = vmul.f32 0.0052083335, %v760_v38  ;;  %v768_v40 = vmul.f32 %v6509_v36, %v6509_v36  ;;  %v769_v41 = vmul.f32 %v6511_v37, %v6511_v37  ;;  %1300 = vmatpush1.bf16.msra.mxu1 %v5890_v8 }
  0xbb   : > { %1301 = vmatprep.subr.bf16.mxu1 %v5894_v10 }
  0xbc   : > { %v6517_v42 = vsub.f32 %v748_v7, %v763_v39  ;;  %v6519_v43 = vsub.f32 %v749_v9, %v763_v39  ;;  %v772_v44 = vsel %vm752_vm1, %v769_v41, 0.0  ;;  %v5887_v7 = vld [vmem:[%s6430_s24 + $0x190] ss:$20 sps:$4 sm:$0xff]  }
  0xbd   : > { %v773_v45 = vadd.f32 %v772_v44, %v768_v40  ;;  %v5891_v9 = vld [vmem:[%s6430_s24 + $0x1bc] ss:$20 sps:$4 sm:$0xff]   ;;  %1257 = vmatpush1.bf16.msra.mxu0 %v5887_v7 }
  0xbe   : > { %v770_v46 = vmul.f32 %v6517_v42, %v6517_v42  ;;  %v771_v47 = vmul.f32 %v6519_v43, %v6519_v43  ;;  %1258 = vmatprep.subr.bf16.mxu0 %v5891_v9  ;;  %1302 = vmatpush1.bf16.msra.mxu1 %v5896_v12 }
  0xbf   : > { %774 = vadd.xlane.f32.xlu1 %v773_v45  ;;  %5654 = vmatprep.subr.bf16.mxu1 %v6306_v58 }
  0xc0   : > { %v776_v48 = vsel %vm752_vm1, %v771_v47, 0.0 }
  0xc1   : > { %v777_v49 = vadd.f32 %v776_v48, %v770_v46  ;;  %1259 = vmatpush1.bf16.msra.mxu0 %v5893_v11  ;;  %v5897_v48 = vld [vmem:[%s6430_s24 + $0x10] ss:$20 sps:$4 sm:$0xff]  }
  0xc2   : > { %1322 = vmatprep.subr.bf16.mxu0 %v6305_v13 }
  0xc3   : > { %778 = vadd.xlane.f32.xlu1 %v777_v49  ;;  %v5900_v49 = vld [vmem:[%s6430_s24 + $0x88] ss:$20 sps:$4 sm:$0xff]  }
 0x14c   : > { %v775_v14 = vpop.xlane.xlu1 %774 }
 0x14d   : > { %v780_v15 = vmul.f32 0.0052083335, %v775_v14 }
 0x14f   : > { %v782_v16 = vadd.f32 1e-05, %v780_v15 }
 0x150   : > { %v779_v17 = vpop.xlane.xlu1 %778 }
 0x151   : > { %6197 = vrsqrt.f32 %v782_v16  ;;  %v781_v19 = vmul.f32 0.0052083335, %v779_v17 }
 0x153   : > { %v783_v20 = vadd.f32 1e-05, %v781_v19 }
 0x155   : > { %6199 = vrsqrt.f32 %v783_v20 }
 0x15b   : > { %v6198_v25 = vpop.eup %6197 }
 0x15c   : > { %v787_v27 = vmul.f32 %v6198_v25, %v6511_v37  ;;  %v786_v29 = vmul.f32 %v6198_v25, %v6509_v36 }
 0x15e   : > { %v802_v35 = vmul.f32 %v798_v28, %v787_v27  ;;  %v801_v39 = vmul.f32 %v794_v30, %v786_v29 }
 0x15f   : > { %v6200_v31 = vpop.eup %6199 }
 0x160   : > { %v789_v34 = vmul.f32 %v6200_v31, %v6519_v43  ;;  %v788_v38 = vmul.f32 %v6200_v31, %v6517_v42  ;;  %v817_v41 = vadd.f32 %v813_v32, %v802_v35  ;;  %v816_v44 = vadd.f32 %v809_v33, %v801_v39  ;;  %v5898_v42 = vld [vmem:[%s6430_s24 + $0x38] ss:$20 sps:$4 sm:$0xff]   ;;  %v5899_v43 = vld [vmem:[%s6430_s24 + $0x60] ss:$20 sps:$4 sm:$0xff]   ;;  %s6308_s24 = smov 64  }
 0x162   : > { %v804_v37 = vmul.f32 %v798_v28, %v789_v34  ;;  %v803_v40 = vmul.f32 %v794_v30, %v788_v38  ;;  %v6649_v28 = vrot.slane %v894_v60, %v914_v26 }
 0x164   : > { %v819_v36 = vadd.f32 %v813_v32, %v804_v37  ;;  %v818_v45 = vadd.f32 %v809_v33, %v803_v40  ;;  %v6665_v37 = vand.u32 127, %v791_v18 }
 0x166   : > { %v821_v46 = vpack.c.bf16 %v819_v36, %v817_v41  ;;  %v820_v47 = vpack.c.bf16 %v818_v45, %v816_v44  ;;  %vm1365_vm5 = vcmp.lt.s32.totalorder %v6665_v37, 7 }
 0x168   : > { %5349 = vmatprep.mubr.msk.bf16.mxu0 %vm752_vm1, %v821_v46  ;;  %5350 = vmatprep.mubr.msk.bf16.mxu1 %vm752_vm1, %v821_v46 }
 0x169   : > { %1269 = vmatmul.mubr.bf16.vlgmr.msra.gmra.mrb[0].mxu0 %v820_v47  ;;  %1312 = vmatmul.mubr.bf16.vlgmr.msra.gmra.mrb[0].mxu1 %v820_v47 }
 0x16a   : > { %1323 = vmatpush1.bf16.msra.mxu0 %v5897_v48  ;;  %5351 = vmatprep.mubr.msk.bf16.mxu0 %vm752_vm1, %v821_v46 }
 0x16b   : > { %1324 = vmatprep.subr.bf16.mxu0 %v6305_v13  ;;  %5656 = vmatprep.mubr.msk.bf16.mxu1 %vm6307_vm2, %v6306_v58 }
 0x16e   : > { %1325 = vmatpush1.bf16.msra.mxu0 %v5898_v42 }
 0x16f   : > { %1326 = vmatprep.subr.bf16.mxu0 %v6305_v13 }
 0x172   : > { %1327 = vmatpush1.bf16.msra.mxu0 %v5899_v43 }
 0x173   : > { %1328 = vmatprep.subr.bf16.mxu0 %v6305_v13 }
 0x176   : > { %1329 = vmatpush1.bf16.msra.mxu0 %v5900_v49 }
 0x177   : > { %1330 = vmatprep.subr.bf16.mxu0 %v6305_v13 }
 0x17a   : > { %1331 = vmatpush1.bf16.msra.mxu0 %v5901_v50 }
 0x17b   : > { %1332 = vmatprep.subr.bf16.mxu0 %v6305_v13 }
 0x17e   : > { %1333 = vmatpush1.bf16.msra.mxu0 %v5902_v51 }
 0x17f   : > { %1334 = vmatprep.subr.bf16.mxu0 %v6305_v13 }
 0x182   : > { %1335 = vmatpush1.bf16.msra.mxu0 %v5903_v52 }
 0x183   : > { %1336 = vmatprep.subr.bf16.mxu0 %v6305_v13 }
 0x186   : > { %1337 = vmatpush1.bf16.msra.mxu0 %v5904_v53 }
 0x187   : > { %1338 = vmatprep.subr.bf16.mxu0 %v6305_v13 }
 0x18a   : > { %1339 = vmatpush1.bf16.msra.mxu0 %v5905_v54 }
 0x18b   : > { %1340 = vmatprep.subr.bf16.mxu0 %v6305_v13 }
 0x18e   : > { %1341 = vmatpush1.bf16.msra.mxu0 %v5906_v55 }
 0x18f   : > { %1342 = vmatprep.subr.bf16.mxu0 %v6305_v13 }
 0x192   : > { %1343 = vmatpush1.bf16.msra.mxu0 %v5907_v56 }
 0x193   : > { %1344 = vmatprep.subr.bf16.mxu0 %v6305_v13 }
 0x196   : > { %1345 = vmatpush1.bf16.msra.mxu0 %v5908_v57 }
 0x197   : > { %5648 = vmatprep.subr.bf16.mxu0 %v6306_v58 }
 0x199   : > { %1355 = vmatmul.mubr.bf16.vlgmr.msra.gmra.mrb[4].mxu0 %v820_v47 }
 0x19a   : > { %5650 = vmatprep.mubr.msk.bf16.mxu0 %vm6307_vm2, %v6306_v58 }
 0x23c   : > { %v1270_v1 = vpop.f32.mrb[0].mxu0  ;;  %v1313_v2 = vpop.f32.mrb[0].mxu1 }
 0x23d   : > { %v1272_v4 = vpop.f32.mrb[1].mxu0  ;;  %v1315_v5 = vpop.f32.mrb[1].mxu1  ;;  %v1271_v10 = vadd.f32 %v1270_v1, %v899_v0  ;;  %v1314_v34 = vadd.f32 %v1313_v2, %v907_v3 }
 0x23e   : > { %v1273_v6 = vadd.f32 %v1272_v4, %v903_v62  ;;  %v1316_v7 = vadd.f32 %v1315_v5, %v911_v63  ;;  %v1274_v8 = vpop.f32.mrb[2].mxu0  ;;  %v1317_v9 = vpop.f32.mrb[2].mxu1 }
 0x23f   : > { %v6623_v11 = vadd.f32 %v1274_v8, %v899_v0  ;;  %v6625_v12 = vadd.f32 %v1317_v9, %v907_v3  ;;  %v1276_v14 = vpop.f32.mrb[3].mxu0  ;;  %v1319_v15 = vpop.f32.mrb[3].mxu1  ;;  %v6639_v25 = vpack.c.bf16 %v1271_v10, %v1271_v10  ;;  %v6656_v38 = vpack.c.bf16 %v1314_v34, %v1314_v34 }
 0x240   : > { %v6627_v16 = vpack.c.bf16 %v1273_v6, %v1273_v6  ;;  %v6629_v17 = vpack.c.bf16 %v1316_v7, %v1316_v7  ;;  %v6631_v19 = vadd.f32 %v1276_v14, %v903_v62  ;;  %v6633_v20 = vadd.f32 %v1319_v15, %v911_v63 }
 0x241   : > { %v1756_v39 = vsel %vm1396_vm4, %v6656_v38, 0 }
 0x242   : > { %1394 = vrot.lane.b32.xlu0 %v6627_v16, %s6308_s24  ;;  %v1463_v24 = vsel %vm1461_vm3, %v6629_v17, 0 }
 0x243   : > { %5655 = vmatpush3.bf16.msra.mxu1 %v1463_v24 }
 0x244   : > { %5660 = vmatprep.subr.bf16.mxu1 %v6306_v58 }
 0x246   : > { %1507 = vrot.lane.b32.xlu0 %v6639_v25, %s6309_s0 }
 0x26c   : > { %v6645_v27 = vpop.f32.mrb[4].mxu0 }
 0x26d   : > { %v1358_v29 = vpop.f32.mrb[5].mxu0 }
 0x26e   : > { %v1359_v30 = vpop.f32.mrb[6].mxu0 }
 0x26f   : > { %v6652_v31 = vadd.f32 %v1359_v30, %v6649_v28  ;;  %v1361_v32 = vpop.f32.mrb[7].mxu0 }
 0x2b4   : > { %v1395_v33 = vpop.permute.xlu0 %1394 }
 0x2b5   : > { %v1401_v35 = vsel %vm1396_vm4, %v1395_v33, 0 }
 0x2b6   : > { %5649 = vmatpush3.bf16.xpose.msra.mxu0 %v1401_v35 }
 0x2b7   : > { %5672 = vmatprep.subr.bf16.mxu0 %v6306_v58 }
 0x2b8   : > { %v1508_v57 = vpop.permute.xlu0 %1507 }
 0x2bd   : > { %5651 = vmatmul.mubr.msk.bf16.vlgmr.msra.gmra.mrb[8].mxu0 %vm1396_vm4, %v6639_v25 }
 0x2be   : > { %5673 = vmatpush3.bf16.xpose.msra.mxu0 %v1756_v39  ;;  %5674 = vmatprep.mubr.msk.bf16.mxu0 %vm6307_vm2, %v6306_v58 }
 0x390   : > { %v1437_v40 = vpop.f32.mrb[8].mxu0 }
 0x391   : > { %v1443_v41 = vmul.f32 0.17677669, %v1437_v40  ;;  %v5652_v36 = vpop.f32.mrb[9].mxu0 }
 0x392   : > { %v1440_v44 = vpop.f32.mrb[10].mxu0 }
 0x393   : > { %v5653_v45 = vpop.f32.mrb[11].mxu0  ;;  %v1444_v46 = vsel %vm1365_vm5, %v1443_v41, -1e+30 }
 0x394   : > { %v1446_v47 = vsel %vm1445_vm6, %v1444_v46, -inf }
 0x395   : > { %1447 = vmax.xlane.f32.xlu1 %v1446_v47 }
 0x422   : > { %v1448_v48 = vpop.xlane.xlu1 %1447 }
 0x423   : > { %v1449_v42 = vsub.f32 %v1444_v46, %v1448_v48 }
 0x425   : > { %v1450_v43 = vmul.f32 1.442695, %v1449_v42 }
 0x427   : > { %6201 = vpow2.f32 %v1450_v43  ;;  %v6708_v43 = vld [vmem:[%s6448_s29 + $0x20] ss:$8 sps:$4 sm:$0xff]  }
 0x431   : > { %v6202_v18 = vpop.eup %6201 }
 0x432   : > { %v1452_v49 = vsel %vm1445_vm6, %v6202_v18, 0.0 }
 0x433   : > { %1453 = vadd.xlane.f32.xlu1 %v1452_v49  ;;  %v6714_v49 = vld [vmem:[%s6448_s29 + $0x34] ss:$8 sps:$4 sm:$0xff]  }
 0x444   : > { %1509 = vrot.lane.b32.xlu1 %v6627_v16, %s6310_s3 }
 0x448   : > { %1750 = vrot.lane.b32.xlu1 %v6639_v25, %s6308_s24 }
 0x4c0   : > { %v1454_v50 = vpop.xlane.xlu1 %1453 }
 0x4c1   : > { %6203 = vrcp.f32 %v1454_v50  ;;  %v6719_v50 = vld [vmem:[%s6448_s29 + $0x30] ss:$8 sps:$4 sm:$0xff]  }
 0x4c4   : > { %v1510_v51 = vpop.permute.xlu1 %1509 }
 0x4c5   : > { %v1515_v56 = vsel %vm1396_vm4, %v1510_v51, 0  ;;  %v6724_v51 = vld [vmem:[%s6448_s29 + $0x4] ss:$8 sps:$4 sm:$0xff]  }
 0x4c8   : > { %v1751_v52 = vpop.permute.xlu1 %1750 }
 0x4c9   : > { %5675 = vmatmul.mubr.msk.bf16.vlgmr.msra.gmra.mrb[12].mxu0 %vm1396_vm4, %v1751_v52 }
 0x4ca   : > { %1916 = vmatprep.mubr.bf16.mxu0 %v6305_v13 }
 0x4cb   : > { %v6204_v53 = vpop.eup %6203 }
 0x4cc   : > { %v1456_v54 = vmul.f32 %v6204_v53, %v6202_v18  ;;  %v6711_v18 = vld [vmem:[%s6448_s29 + $0x24] ss:$8 sps:$4 sm:$0xff]  }
 0x4ce   : > { %v1457_v55 = vpack.c.bf16 %v1456_v54, %v1456_v54  ;;  %v6728_v54 = vld [vmem:[%s6448_s29] ss:$8 sps:$4 sm:$0xff]  }
 0x4d0   : > { %5657 = vmatmul.mubr.msk.bf16.vlgmr.msra.gmra.mrb[4].mxu1 %vm1445_vm6, %v1457_v55 }
 0x4d1   : > { %5661 = vmatpush3.bf16.xpose.msra.mxu1 %v1515_v56  ;;  %5662 = vmatprep.mubr.msk.bf16.mxu1 %vm6307_vm2, %v6306_v58 }
 0x4d2   : > { %5666 = vmatprep.subr.bf16.mxu1 %v6306_v58 }
 0x4d8   : > { %5663 = vmatmul.mubr.msk.bf16.vlgmr.msra.gmra.mrb[8].mxu1 %vm1396_vm4, %v1508_v57  ;;  %v6731_v57 = vld [vmem:[%s6448_s29 + $0x14] ss:$8 sps:$4 sm:$0xff]  }
 0x4d9   : > { %5668 = vmatprep.mubr.msk.bf16.mxu1 %vm6307_vm2, %v6306_v58 }
 0x59c   : > { %v1792_v60 = vpop.f32.mrb[12].mxu0 }
 0x59d   : > { %v5676_v62 = vpop.f32.mrb[13].mxu0  ;;  %v1798_v33 = vmul.f32 0.17677669, %v1792_v60 }
 0x59e   : > { %v1795_v63 = vpop.f32.mrb[14].mxu0 }
 0x59f   : > { %v5677_v0 = vpop.f32.mrb[15].mxu0  ;;  %v1799_v39 = vsel %vm1365_vm5, %v1798_v33, -1e+30  ;;  %v6736_v63 = vld [vmem:[%s6448_s29 + $0x10] ss:$8 sps:$4 sm:$0xff]  }
 0x5a0   : > { %v1800_v40 = vsel %vm1445_vm6, %v1799_v39, -inf }
 0x5a3   : > { %v6686_v1 = vpop.f32.mrb[4].mxu1 }
 0x5a4   : > { %v5658_v2 = vpop.f32.mrb[5].mxu1 }
 0x5a5   : > { %v1502_v3 = vpop.f32.mrb[6].mxu1  ;;  %v1505_v2 = vpack.c.bf16 %v6686_v1, %v6686_v1 }
 0x5a6   : > { %v5659_v4 = vpop.f32.mrb[7].mxu1 }
 0x5ab   : > { %v1551_v5 = vpop.f32.mrb[8].mxu1 }
 0x5ac   : > { %v1557_v6 = vmul.f32 0.17677669, %v1551_v5  ;;  %v5664_v7 = vpop.f32.mrb[9].mxu1 }
 0x5ad   : > { %v1554_v8 = vpop.f32.mrb[10].mxu1 }
 0x5ae   : > { %v5665_v9 = vpop.f32.mrb[11].mxu1  ;;  %v1558_v10 = vsel %vm1365_vm5, %v1557_v6, -1e+30 }
 0x5af   : > { %v1559_v14 = vsel %vm1445_vm6, %v1558_v10, -inf  ;;  %v6756_v9 = vld [vmem:[%s6448_s29 + $0x44] ss:$8 sps:$4 sm:$0xff]  }
 0x5b0   : > { %1560 = vmax.xlane.f32.xlu0 %v1559_v14  ;;  %v6762_v14 = vld [vmem:[%s6448_s29 + $0x54] ss:$8 sps:$4 sm:$0xff]   ;;  %1884 = vmatprep.subr.bf16.mxu0 %v6756_v9 }
 0x5c6   : > { %1572 = vrot.lane.b32.xlu0 %v6629_v17, %s6309_s0 }
 0x5ca   : > { %1930 = vrot.lane.b32.xlu0 %v6656_v38, %s6309_s0 }
 0x5ce   : > { %1927 = vrot.lane.b32.xlu0 %v6639_v25, %s6310_s3 }
 0x63d   : > { %v1561_v15 = vpop.xlane.xlu0 %1560 }
 0x63e   : > { %v1562_v24 = vsub.f32 %v1558_v10, %v1561_v15  ;;  %v6759_v10 = vld [vmem:[%s6448_s29 + $0x40] ss:$8 sps:$4 sm:$0xff]   ;;  %v6767_v15 = vld [vmem:[%s6448_s29 + $0x50] ss:$8 sps:$4 sm:$0xff]  }
 0x63f   : > { %1885 = vmatpush1.bf16.msra.mxu0 %v6759_v10 }
 0x640   : > { %v1563_v29 = vmul.f32 1.442695, %v1562_v24  ;;  %1886 = vmatprep.subr.bf16.mxu0 %v6762_v14 }
 0x641   : > { %v1573_v30 = vpop.permute.xlu0 %1572 }
 0x642   : > { %6205 = vpow2.f32 %v1563_v29  ;;  %v1578_v32 = vsel %vm1461_vm3, %v1573_v30, 0 }
 0x643   : > { %5667 = vmatpush3.bf16.msra.mxu1 %v1578_v32  ;;  %1887 = vmatpush1.bf16.msra.mxu0 %v6767_v15 }
 0x644   : > { %1644 = vmatprep.subr.bf16.mxu1 %v6711_v18  ;;  %5690 = vmatprep.subr.bf16.mxu0 %v6306_v58 }
 0x645   : > { %v1931_v6 = vpop.permute.xlu0 %1930 }
 0x646   : > { %v1936_v7 = vsel %vm1396_vm4, %v1931_v6, 0  ;;  %v6786_v6 = vld [vmem:[%s6448_s29 + $0x60] ss:$8 sps:$4 sm:$0xff]  }
 0x649   : > { %v1928_v8 = vpop.permute.xlu0 %1927 }
 0x64c   : > { %v6206_v34 = vpop.eup %6205 }
 0x64d   : > { %v1565_v35 = vsel %vm1445_vm6, %v6206_v34, 0.0 }
 0x64e   : > { %1566 = vadd.xlane.f32.xlu1 %v1565_v35 }
 0x652   : > { %1801 = vmax.xlane.f32.xlu1 %v1800_v40 }
 0x6db   : > { %v1567_v25 = vpop.xlane.xlu1 %1566 }
 0x6dc   : > { %6207 = vrcp.f32 %v1567_v25 }
 0x6df   : > { %v1802_v41 = vpop.xlane.xlu1 %1801 }
 0x6e0   : > { %v1803_v36 = vsub.f32 %v1799_v39, %v1802_v41 }
 0x6e2   : > { %v1804_v44 = vmul.f32 1.442695, %v1803_v36 }
 0x6e4   : > { %6209 = vpow2.f32 %v1804_v44 }
 0x6e6   : > { %v6208_v45 = vpop.eup %6207 }
 0x6e7   : > { %v1569_v46 = vmul.f32 %v6208_v45, %v6206_v34 }
 0x6e9   : > { %v1570_v47 = vpack.c.bf16 %v1569_v46, %v1569_v46 }
 0x6eb   : > { %5669 = vmatmul.mubr.msk.bf16.vlgmr.msra.gmra.mrb[12].mxu1 %vm1445_vm6, %v1570_v47 }
 0x6ec   : > { %1676 = vmatprep.mubr.bf16.mxu1 %v6305_v13  ;;  %1645 = vmatpush1.bf16.msra.mxu1 %v6708_v43 }
 0x6ed   : > { %1646 = vmatprep.subr.bf16.mxu1 %v6714_v49 }
 0x6ee   : > { %v6210_v48 = vpop.eup %6209 }
 0x6ef   : > { %v1806_v42 = vsel %vm1445_vm6, %v6210_v48, 0.0 }
 0x6f0   : > { %1807 = vadd.xlane.f32.xlu1 %v1806_v42  ;;  %1647 = vmatpush1.bf16.msra.mxu1 %v6719_v50 }
 0x6f1   : > { %1708 = vmatprep.subr.bf16.mxu1 %v6724_v51 }
 0x701   : > { %1812 = vrot.lane.b32.xlu1 %v6629_v17, %s6308_s24 }
 0x77d   : > { %v1808_v52 = vpop.xlane.xlu1 %1807 }
 0x77e   : > { %6211 = vrcp.f32 %v1808_v52 }
 0x781   : > { %v1813_v0 = vpop.permute.xlu1 %1812 }
 0x782   : > { %v1818_v4 = vsel %vm1461_vm3, %v1813_v0, 0 }
 0x788   : > { %v6212_v3 = vpop.eup %6211 }
 0x789   : > { %v1810_v5 = vmul.f32 %v6212_v3, %v6210_v48 }
 0x78b   : > { %v1811_v1 = vpack.c.bf16 %v1810_v5, %v1810_v5 }
 0x7be   : > { %v1614_v53 = vpop.f32.mrb[12].mxu1 }
 0x7bf   : > { %v1620_v55 = vpack.c.bf16 %v1614_v53, %v1614_v53  ;;  %v5670_v56 = vpop.f32.mrb[13].mxu1 }
 0x7c0   : > { %v1617_v60 = vpop.f32.mrb[14].mxu1 }
 0x7c1   : > { %v5671_v62 = vpop.f32.mrb[15].mxu1  ;;  %5360 = vmatmul.mubr.msk.bf16.vlgmr.msra.gmra.mrb[16].mxu1 %vm1396_vm4, %v1620_v55 }
 0x7c2   : > { %1709 = vmatpush1.bf16.msra.mxu1 %v6728_v54  ;;  %1740 = vmatprep.mubr.bf16.mxu1 %v6305_v13 }
 0x7c3   : > { %1710 = vmatprep.subr.bf16.mxu1 %v6731_v57 }
 0x7c6   : > { %1711 = vmatpush1.bf16.msra.mxu1 %v6736_v63 }
 0x7c7   : > { %5678 = vmatprep.subr.bf16.mxu1 %v6306_v58 }
 0x7c9   : > { %5365 = vmatmul.mubr.msk.bf16.vlgmr.msra.gmra.mrb[20].mxu1 %vm1396_vm4, %v1505_v2 }
 0x7ca   : > { %5679 = vmatpush3.bf16.msra.mxu1 %v1818_v4  ;;  %5680 = vmatprep.mubr.msk.bf16.mxu1 %vm6307_vm2, %v6306_v58 }
 0x7cb   : > { %5684 = vmatprep.subr.bf16.mxu1 %v6306_v58 }
 0x7d1   : > { %5681 = vmatmul.mubr.msk.bf16.vlgmr.msra.gmra.mrb[24].mxu1 %vm1445_vm6, %v1811_v1  ;;  %v6792_v1 = vld [vmem:[%s6448_s29 + $0x74] ss:$8 sps:$4 sm:$0xff]  }
 0x7d2   : > { %5686 = vmatprep.mubr.msk.bf16.mxu1 %vm6307_vm2, %v6306_v58 }
 0x7d3   : > { %5685 = vmatpush3.bf16.xpose.msra.mxu1 %v1936_v7  ;;  %v6797_v7 = vld [vmem:[%s6448_s29 + $0x70] ss:$8 sps:$4 sm:$0xff]  }
 0x7da   : > { %5687 = vmatmul.mubr.msk.bf16.vlgmr.msra.gmra.mrb[28].mxu1 %vm1396_vm4, %v1928_v8 }
 0x7db   : > { %2096 = vmatprep.mubr.bf16.mxu1 %v6305_v13 }
 0x894   : > { %v1678_v24 = vpop.f32.mrb[16].mxu1 }
 0x895   : > { %v1680_v29 = vpop.f32.mrb[17].mxu1 }
 0x896   : > { %v1682_v30 = vpop.f32.mrb[18].mxu1 }
 0x897   : > { %v1683_v32 = vpop.f32.mrb[19].mxu1 }
 0x89c   : > { %v1742_v33 = vpop.f32.mrb[20].mxu1 }
 0x89d   : > { %v1743_v34 = vadd.f32 %v1742_v33, %v1678_v24  ;;  %v1744_v35 = vpop.f32.mrb[21].mxu1 }
 0x89e   : > { %v1745_v39 = vadd.f32 %v1744_v35, %v1680_v29  ;;  %v1746_v40 = vpop.f32.mrb[22].mxu1 }
 0x89f   : > { %v1747_v25 = vpop.f32.mrb[23].mxu1 }
 0x8a4   : > { %v1854_v41 = vpop.f32.mrb[24].mxu1 }
 0x8a5   : > { %v1860_v36 = vpack.c.bf16 %v1854_v41, %v1854_v41  ;;  %v5682_v44 = vpop.f32.mrb[25].mxu1 }
 0x8a6   : > { %v1857_v45 = vpop.f32.mrb[26].mxu1 }
 0x8a7   : > { %v5683_v46 = vpop.f32.mrb[27].mxu1  ;;  %5372 = vmatmul.mubr.msk.bf16.vlgmr.msra.gmra.mrb[16].mxu0 %vm1396_vm4, %v1860_v36 }
 0x8a8   : > { %5692 = vmatprep.mubr.msk.bf16.mxu0 %vm6307_vm2, %v6306_v58 }
 0x8ad   : > { %v1972_v47 = vpop.f32.mrb[28].mxu1 }
 0x8ae   : > { %v1978_v48 = vmul.f32 0.17677669, %v1972_v47  ;;  %v5688_v42 = vpop.f32.mrb[29].mxu1 }
 0x8af   : > { %v1975_v52 = vpop.f32.mrb[30].mxu1 }
 0x8b0   : > { %v5689_v53 = vpop.f32.mrb[31].mxu1  ;;  %v1979_v55 = vsel %vm1365_vm5, %v1978_v48, -1e+30 }
 0x8b1   : > { %v1980_v56 = vsel %vm1445_vm6, %v1979_v55, -inf }
 0x8b2   : > { %1981 = vmax.xlane.f32.xlu0 %v1980_v56 }
 0x8c8   : > { %1992 = vrot.lane.b32.xlu0 %v6629_v17, %s6310_s3  ;;  %v6789_v17 = vld [vmem:[%s6448_s29 + $0x64] ss:$8 sps:$4 sm:$0xff]  }
 0x8c9   : > { %2064 = vmatprep.subr.bf16.mxu1 %v6789_v17 }
 0x8ca   : > { %2065 = vmatpush1.bf16.msra.mxu1 %v6786_v6 }
 0x8cb   : > { %2066 = vmatprep.subr.bf16.mxu1 %v6792_v1 }
 0x8ce   : > { %2067 = vmatpush1.bf16.msra.mxu1 %v6797_v7 }
 0x8cf   : > { %5702 = vmatprep.subr.bf16.mxu1 %v6306_v58 }
 0x93f   : > { %v1982_v60 = vpop.xlane.xlu0 %1981 }
 0x940   : > { %v1983_v62 = vsub.f32 %v1979_v55, %v1982_v60 }
 0x942   : > { %v1984_v0 = vmul.f32 1.442695, %v1983_v62 }
 0x943   : > { %v1993_v2 = vpop.permute.xlu0 %1992 }
 0x944   : > { %6213 = vpow2.f32 %v1984_v0  ;;  %v1998_v3 = vsel %vm1461_vm3, %v1993_v2, 0 }
 0x945   : > { %5691 = vmatpush3.bf16.msra.mxu0 %v1998_v3 }
 0x946   : > { %5696 = vmatprep.subr.bf16.mxu0 %v6306_v58 }
 0x94e   : > { %v6214_v4 = vpop.eup %6213 }
 0x94f   : > { %v1986_v5 = vsel %vm1445_vm6, %v6214_v4, 0.0 }
 0x950   : > { %1987 = vadd.xlane.f32.xlu1 %v1986_v5 }
 0x961   : > { %2108 = vrot.lane.b32.xlu1 %v6656_v38, %s6308_s24 }
 0x97a   : > { %v1918_v8 = vpop.f32.mrb[16].mxu0 }
 0x97b   : > { %v1925_v24 = vadd.f32 %v1918_v8, %v1743_v34  ;;  %v1920_v29 = vpop.f32.mrb[17].mxu0  ;;  %v1357_v34 = vadd.f32 %v6645_v27, %v6649_v28  ;;  %v6828_v8 = vld [vmem:[%s6448_s29 + $0x80] ss:$8 sps:$4 sm:$0xff]  }
 0x97c   : > { %v1926_v30 = vadd.f32 %v1920_v29, %v1745_v39  ;;  %v1922_v32 = vpop.f32.mrb[18].mxu0  ;;  %v6831_v29 = vld [vmem:[%s6448_s29 + $0x84] ss:$8 sps:$4 sm:$0xff]  }
 0x97d   : > { %v1923_v33 = vpop.f32.mrb[19].mxu0  ;;  %v6811_v39 = vpack.c.bf16 %v1357_v34, %v1357_v34  ;;  %v6834_v32 = vld [vmem:[%s6448_s29 + $0x94] ss:$8 sps:$4 sm:$0xff]  }
 0x97f   : > { %v2174_v42 = vsel %vm1461_vm3, %v6811_v39, 0 }
 0x9dd   : > { %v1988_v35 = vpop.xlane.xlu1 %1987 }
 0x9de   : > { %6215 = vrcp.f32 %v1988_v35 }
 0x9e1   : > { %v2109_v41 = vpop.permute.xlu1 %2108 }
 0x9e2   : > { %v2114_v44 = vsel %vm1396_vm4, %v2109_v41, 0 }
 0x9e8   : > { %v6216_v40 = vpop.eup %6215 }
 0x9e9   : > { %v1990_v25 = vmul.f32 %v6216_v40, %v6214_v4 }
 0x9eb   : > { %v1991_v36 = vpack.c.bf16 %v1990_v25, %v1990_v25 }
 0x9ed   : > { %5693 = vmatmul.mubr.msk.bf16.vlgmr.msra.gmra.mrb[20].mxu0 %vm1445_vm6, %v1991_v36 }
 0x9ee   : > { %5697 = vmatpush3.bf16.xpose.msra.mxu0 %v2114_v44  ;;  %5698 = vmatprep.mubr.msk.bf16.mxu0 %vm6307_vm2, %v6306_v58 }
 0x9ef   : > { %2240 = vmatprep.subr.bf16.mxu0 %v6831_v29 }
 0x9f5   : > { %5699 = vmatmul.mubr.msk.bf16.vlgmr.msra.gmra.mrb[24].mxu0 %vm1396_vm4, %v6627_v16 }
 0x9f6   : > { %2272 = vmatprep.mubr.bf16.mxu0 %v6305_v13  ;;  %2241 = vmatpush1.bf16.msra.mxu0 %v6828_v8 }
 0x9f7   : > { %2242 = vmatprep.subr.bf16.mxu0 %v6834_v32 }
 0xac0   : > { %v2034_v45 = vpop.f32.mrb[20].mxu0 }
 0xac1   : > { %v2040_v46 = vpack.c.bf16 %v2034_v45, %v2034_v45  ;;  %v5694_v47 = vpop.f32.mrb[21].mxu0 }
 0xac2   : > { %v2037_v48 = vpop.f32.mrb[22].mxu0 }
 0xac3   : > { %v5695_v52 = vpop.f32.mrb[23].mxu0  ;;  %5379 = vmatmul.mubr.msk.bf16.vlgmr.msra.gmra.mrb[32].mxu1 %vm1396_vm4, %v2040_v46 }
 0xac4   : > { %5703 = vmatpush3.bf16.msra.mxu1 %v2174_v42  ;;  %5704 = vmatprep.mubr.msk.bf16.mxu1 %vm6307_vm2, %v6306_v58 }
 0xac5   : > { %5708 = vmatprep.subr.bf16.mxu1 %v6306_v58 }
 0xac8   : > { %v2150_v53 = vpop.f32.mrb[24].mxu0 }
 0xac9   : > { %v2156_v27 = vmul.f32 0.17677669, %v2150_v53  ;;  %v5700_v28 = vpop.f32.mrb[25].mxu0 }
 0xaca   : > { %v2153_v55 = vpop.f32.mrb[26].mxu0 }
 0xacb   : > { %v5701_v56 = vpop.f32.mrb[27].mxu0  ;;  %v2157_v60 = vsel %vm1365_vm5, %v2156_v27, -1e+30 }
 0xacc   : > { %v2158_v62 = vsel %vm1445_vm6, %v2157_v60, -inf }
 0xacd   : > { %2159 = vmax.xlane.f32.xlu0 %v2158_v62 }
 0xae3   : > { %2285 = vrot.lane.b32.xlu0 %v6656_v38, %s6310_s3  ;;  %v6839_v38 = vld [vmem:[%s6448_s29 + $0x90] ss:$8 sps:$4 sm:$0xff]  }
 0xae4   : > { %2243 = vmatpush1.bf16.msra.mxu0 %v6839_v38 }
 0xae5   : > { %5714 = vmatprep.subr.bf16.mxu0 %v6306_v58 }
 0xb5a   : > { %v2160_v0 = vpop.xlane.xlu0 %2159 }
 0xb5b   : > { %v2161_v2 = vsub.f32 %v2157_v60, %v2160_v0 }
 0xb5d   : > { %v2162_v3 = vmul.f32 1.442695, %v2161_v2  ;;  %v6860_v2 = vpack.c.bf16 %v6631_v19, %v6631_v19 }
 0xb5e   : > { %v2286_v45 = vpop.permute.xlu0 %2285 }
 0xb5f   : > { %6217 = vpow2.f32 %v2162_v3  ;;  %v2291_v47 = vsel %vm1396_vm4, %v2286_v45, 0 }
 0xb69   : > { %v6218_v4 = vpop.eup %6217 }
 0xb6a   : > { %v2164_v5 = vsel %vm1445_vm6, %v6218_v4, 0.0 }
 0xb6b   : > { %2165 = vadd.xlane.f32.xlu1 %v2164_v5 }
 0xb7c   : > { %2283 = vrot.lane.b32.xlu1 %v6627_v16, %s6309_s0 }
 0xb96   : > { %v2098_v33 = vpop.f32.mrb[32].mxu1 }
 0xb97   : > { %v2105_v35 = vadd.f32 %v2098_v33, %v1925_v24  ;;  %v2100_v40 = vpop.f32.mrb[33].mxu1 }
 0xb98   : > { %v2106_v16 = vadd.f32 %v2100_v40, %v1926_v30  ;;  %v2102_v25 = vpop.f32.mrb[34].mxu1 }
 0xb99   : > { %v2103_v41 = vpop.f32.mrb[35].mxu1  ;;  %v6871_v25 = vpack.c.bf16 %v6623_v11, %v6623_v11  ;;  %v6891_v11 = vld [vmem:[%s6448_s29 + $0xb0] ss:$8 sps:$4 sm:$0xff]  }
 0xbf8   : > { %v2166_v36 = vpop.xlane.xlu1 %2165 }
 0xbf9   : > { %6219 = vrcp.f32 %v2166_v36 }
 0xbfc   : > { %v2284_v24 = vpop.permute.xlu1 %2283 }
 0xc03   : > { %v6220_v44 = vpop.eup %6219 }
 0xc04   : > { %v2168_v34 = vmul.f32 %v6220_v44, %v6218_v4 }
 0xc06   : > { %v2169_v46 = vpack.c.bf16 %v2168_v34, %v2168_v34 }
 0xc08   : > { %5705 = vmatmul.mubr.msk.bf16.vlgmr.msra.gmra.mrb[36].mxu1 %vm1445_vm6, %v2169_v46  ;;  %v6880_v46 = vld [vmem:[%s6448_s29 + $0xa0] ss:$8 sps:$4 sm:$0xff]  }
 0xc09   : > { %5709 = vmatpush3.bf16.xpose.msra.mxu1 %v2291_v47  ;;  %5710 = vmatprep.mubr.msk.bf16.mxu1 %vm6307_vm2, %v6306_v58  ;;  %v6883_v47 = vld [vmem:[%s6448_s29 + $0xa4] ss:$8 sps:$4 sm:$0xff]  }
 0xc0a   : > { %2420 = vmatprep.subr.bf16.mxu1 %v6883_v47 }
 0xc10   : > { %5711 = vmatmul.mubr.msk.bf16.vlgmr.msra.gmra.mrb[40].mxu1 %vm1396_vm4, %v2284_v24 }
 0xc11   : > { %2452 = vmatprep.mubr.bf16.mxu1 %v6305_v13  ;;  %2421 = vmatpush1.bf16.msra.mxu1 %v6880_v46 }
 0xcdb   : > { %v2210_v30 = vpop.f32.mrb[36].mxu1 }
 0xcdc   : > { %v2216_v48 = vpack.c.bf16 %v2210_v30, %v2210_v30  ;;  %v5706_v42 = vpop.f32.mrb[37].mxu1  ;;  %v6886_v30 = vld [vmem:[%s6448_s29 + $0xb4] ss:$8 sps:$4 sm:$0xff]  }
 0xcdd   : > { %v2213_v52 = vpop.f32.mrb[38].mxu1  ;;  %2422 = vmatprep.subr.bf16.mxu1 %v6886_v30 }
 0xcde   : > { %v5707_v53 = vpop.f32.mrb[39].mxu1  ;;  %5386 = vmatmul.mubr.msk.bf16.vlgmr.msra.gmra.mrb[28].mxu0 %vm1396_vm4, %v2216_v48  ;;  %2423 = vmatpush1.bf16.msra.mxu1 %v6891_v11 }
 0xcdf   : > { %5716 = vmatprep.mubr.msk.bf16.mxu0 %vm6307_vm2, %v6306_v58  ;;  %5726 = vmatprep.subr.bf16.mxu1 %v6306_v58 }
 0xce3   : > { %v2327_v27 = vpop.f32.mrb[40].mxu1 }
 0xce4   : > { %v2333_v28 = vmul.f32 0.17677669, %v2327_v27  ;;  %v5712_v55 = vpop.f32.mrb[41].mxu1 }
 0xce5   : > { %v2330_v56 = vpop.f32.mrb[42].mxu1 }
 0xce6   : > { %v5713_v60 = vpop.f32.mrb[43].mxu1  ;;  %v2334_v62 = vsel %vm1365_vm5, %v2333_v28, -1e+30  ;;  %v6915_v56 = vpack.c.bf16 %v6633_v20, %v6633_v20 }
 0xce7   : > { %v2335_v0 = vsel %vm1445_vm6, %v2334_v62, -inf }
 0xce8   : > { %2336 = vmax.xlane.f32.xlu0 %v2335_v0 }
 0xcfe   : > { %2348 = vrot.lane.b32.xlu0 %v6811_v39, %s6309_s0 }
 0xd02   : > { %2593 = vrot.lane.b32.xlu0 %v6860_v2, %s6310_s3 }
 0xd75   : > { %v2337_v3 = vpop.xlane.xlu0 %2336 }
 0xd76   : > { %v2338_v4 = vsub.f32 %v2334_v62, %v2337_v3 }
 0xd78   : > { %v2339_v5 = vmul.f32 1.442695, %v2338_v4 }
 0xd79   : > { %v2349_v33 = vpop.permute.xlu0 %2348 }
 0xd7a   : > { %6221 = vpow2.f32 %v2339_v5  ;;  %v2354_v40 = vsel %vm1461_vm3, %v2349_v33, 0 }
 0xd7b   : > { %5715 = vmatpush3.bf16.msra.mxu0 %v2354_v40 }
 0xd7c   : > { %5720 = vmatprep.subr.bf16.mxu0 %v6306_v58 }
 0xd7d   : > { %v2594_v27 = vpop.permute.xlu0 %2593 }
 0xd7e   : > { %v2599_v28 = vsel %vm1396_vm4, %v2594_v27, 0 }
 0xd84   : > { %v6222_v39 = vpop.eup %6221 }
 0xd85   : > { %v2341_v19 = vsel %vm1445_vm6, %v6222_v39, 0.0 }
 0xd86   : > { %2342 = vadd.xlane.f32.xlu1 %v2341_v19 }
 0xd97   : > { %2481 = vrot.lane.b32.xlu1 %v6860_v2, %s6308_s24 }
 0xd9b   : > { %2591 = vrot.lane.b32.xlu1 %v6871_v25, %s6309_s0 }
 0xdb1   : > { %v2274_v41 = vpop.f32.mrb[28].mxu0 }
 0xdb2   : > { %v6875_v36 = vadd.f32 %v2274_v41, %v2105_v35  ;;  %v2276_v44 = vpop.f32.mrb[29].mxu0 }
 0xdb3   : > { %v6877_v34 = vadd.f32 %v2276_v44, %v2106_v16  ;;  %v2278_v45 = vpop.f32.mrb[30].mxu0 }
 0xdb4   : > { %v2279_v24 = vpop.f32.mrb[31].mxu0 }
 0xe13   : > { %v2343_v35 = vpop.xlane.xlu1 %2342 }
 0xe14   : > { %6223 = vrcp.f32 %v2343_v35 }
 0xe17   : > { %v2482_v42 = vpop.permute.xlu1 %2481 }
 0xe18   : > { %v2487_v53 = vsel %vm1396_vm4, %v2482_v42, 0 }
 0xe1b   : > { %v2592_v55 = vpop.permute.xlu1 %2591 }
 0xe1e   : > { %v6224_v16 = vpop.eup %6223 }
 0xe1f   : > { %v2345_v48 = vmul.f32 %v6224_v16, %v6222_v39 }
 0xe21   : > { %v2346_v52 = vpack.c.bf16 %v2345_v48, %v2345_v48 }
 0xe23   : > { %5717 = vmatmul.mubr.msk.bf16.vlgmr.msra.gmra.mrb[32].mxu0 %vm1445_vm6, %v2346_v52 }
 0xe24   : > { %5721 = vmatpush3.bf16.xpose.msra.mxu0 %v2487_v53  ;;  %5722 = vmatprep.mubr.msk.bf16.mxu0 %vm6307_vm2, %v6306_v58 }
 0xe25   : > { %5732 = vmatprep.subr.bf16.mxu0 %v6306_v58 }
 0xe2b   : > { %5723 = vmatmul.mubr.msk.bf16.vlgmr.msra.gmra.mrb[36].mxu0 %vm1396_vm4, %v6871_v25 }
 0xe2c   : > { %5733 = vmatpush3.bf16.xpose.msra.mxu0 %v2599_v28  ;;  %5734 = vmatprep.mubr.msk.bf16.mxu0 %vm6307_vm2, %v6306_v58 }
 0xe2d   : > { %2708 = vmatprep.subr.bf16.mxu0 %v6711_v18 }
 0xe33   : > { %5735 = vmatmul.mubr.msk.bf16.vlgmr.msra.gmra.mrb[40].mxu0 %vm1396_vm4, %v2592_v55 }
 0xe34   : > { %2709 = vmatpush1.bf16.msra.mxu0 %v6708_v43  ;;  %2740 = vmatprep.mubr.bf16.mxu0 %v6305_v13  ;;  %v2547_v43 = vsel %vm1461_vm3, %v6915_v56, 0 }
 0xe35   : > { %2710 = vmatprep.subr.bf16.mxu0 %v6714_v49 }
 0xe38   : > { %2711 = vmatpush1.bf16.msra.mxu0 %v6719_v50 }
 0xe39   : > { %5744 = vmatprep.subr.bf16.mxu0 %v6306_v58 }
 0xef6   : > { %v2390_v60 = vpop.f32.mrb[32].mxu0 }
 0xef7   : > { %v2396_v62 = vpack.c.bf16 %v2390_v60, %v2390_v60  ;;  %v5718_v18 = vpop.f32.mrb[33].mxu0 }
 0xef8   : > { %v2393_v0 = vpop.f32.mrb[34].mxu0 }
 0xef9   : > { %v5719_v3 = vpop.f32.mrb[35].mxu0  ;;  %5393 = vmatmul.mubr.msk.bf16.vlgmr.msra.gmra.mrb[44].mxu1 %vm1396_vm4, %v2396_v62 }
 0xefa   : > { %5727 = vmatpush3.bf16.msra.mxu1 %v2547_v43  ;;  %5728 = vmatprep.mubr.msk.bf16.mxu1 %vm6307_vm2, %v6306_v58 }
 0xefb   : > { %5738 = vmatprep.subr.bf16.mxu1 %v6306_v58 }
 0xefe   : > { %v2523_v49 = vpop.f32.mrb[36].mxu0 }
 0xeff   : > { %v2529_v50 = vmul.f32 0.17677669, %v2523_v49  ;;  %v5724_v20 = vpop.f32.mrb[37].mxu0 }
 0xf00   : > { %v2526_v4 = vpop.f32.mrb[38].mxu0 }
 0xf01   : > { %v5725_v5 = vpop.f32.mrb[39].mxu0  ;;  %v2530_v33 = vsel %vm1365_vm5, %v2529_v50, -1e+30 }
 0xf02   : > { %v2531_v40 = vsel %vm1445_vm6, %v2530_v33, -inf }
 0xf03   : > { %2532 = vmax.xlane.f32.xlu0 %v2531_v40 }
 0xf06   : > { %v2635_v39 = vpop.f32.mrb[40].mxu0 }
 0xf07   : > { %v2641_v19 = vmul.f32 0.17677669, %v2635_v39  ;;  %v5736_v41 = vpop.f32.mrb[41].mxu0 }
 0xf08   : > { %v2638_v44 = vpop.f32.mrb[42].mxu0 }
 0xf09   : > { %v5737_v45 = vpop.f32.mrb[43].mxu0  ;;  %v2642_v24 = vsel %vm1365_vm5, %v2641_v19, -1e+30 }
 0xf0a   : > { %v2643_v35 = vsel %vm1445_vm6, %v2642_v24, -inf }
 0xf0b   : > { %2644 = vmax.xlane.f32.xlu1 %v2643_v35 }
 0xf1c   : > { %2794 = vrot.lane.b32.xlu1 %v6871_v25, %s6308_s24 }
 0xf90   : > { %v2533_v16 = vpop.xlane.xlu0 %2532 }
 0xf91   : > { %v2534_v48 = vsub.f32 %v2530_v33, %v2533_v16 }
 0xf93   : > { %v2535_v42 = vmul.f32 1.442695, %v2534_v48 }
 0xf95   : > { %6225 = vpow2.f32 %v2535_v42 }
 0xf98   : > { %v2645_v52 = vpop.xlane.xlu1 %2644 }
 0xf99   : > { %v2646_v53 = vsub.f32 %v2642_v24, %v2645_v52 }
 0xf9b   : > { %v2647_v27 = vmul.f32 1.442695, %v2646_v53 }
 0xf9c   : > { %v2795_v53 = vpop.permute.xlu1 %2794 }
 0xf9d   : > { %6227 = vpow2.f32 %v2647_v27 }
 0xf9f   : > { %v6226_v28 = vpop.eup %6225 }
 0xfa0   : > { %v2537_v55 = vsel %vm1445_vm6, %v6226_v28, 0.0 }
 0xfa1   : > { %2538 = vadd.xlane.f32.xlu0 %v2537_v55 }
 0xfa7   : > { %v6228_v60 = vpop.eup %6227 }
 0xfa8   : > { %v2649_v62 = vsel %vm1445_vm6, %v6228_v60, 0.0 }
 0xfa9   : > { %2650 = vadd.xlane.f32.xlu0 %v2649_v62 }
 0xfbf   : > { %2656 = vrot.lane.b32.xlu0 %v6915_v56, %s6309_s0 }
 0xfcc   : > { %v2454_v18 = vpop.f32.mrb[44].mxu1 }
 0xfcd   : > { %v6936_v0 = vadd.f32 %v2454_v18, %v6875_v36  ;;  %v2456_v3 = vpop.f32.mrb[45].mxu1 }
 0xfce   : > { %v6939_v43 = vadd.f32 %v2456_v3, %v6877_v34  ;;  %v2458_v49 = vpop.f32.mrb[46].mxu1 }
 0xfcf   : > { %v2459_v50 = vpop.f32.mrb[47].mxu1 }
0x102e   : > { %v2539_v20 = vpop.xlane.xlu0 %2538 }
0x102f   : > { %6229 = vrcp.f32 %v2539_v20 }
0x1036   : > { %v2651_v4 = vpop.xlane.xlu0 %2650 }
0x1037   : > { %6231 = vrcp.f32 %v2651_v4 }
0x1039   : > { %v6230_v5 = vpop.eup %6229 }
0x103a   : > { %v2541_v33 = vmul.f32 %v6230_v5, %v6226_v28  ;;  %v2657_v40 = vpop.permute.xlu0 %2656 }
0x103b   : > { %v2662_v19 = vsel %vm1461_vm3, %v2657_v40, 0 }
0x103c   : > { %v2542_v39 = vpack.c.bf16 %v2541_v33, %v2541_v33 }
0x103e   : > { %5729 = vmatmul.mubr.msk.bf16.vlgmr.msra.gmra.mrb[48].mxu1 %vm1445_vm6, %v2542_v39 }
0x103f   : > { %5739 = vmatpush3.bf16.msra.mxu1 %v2662_v19  ;;  %5740 = vmatprep.mubr.msk.bf16.mxu1 %vm6307_vm2, %v6306_v58 }
0x1040   : > { %2752 = vmatprep.subr.bf16.mxu1 %v6724_v51 }
0x1041   : > { %v6232_v36 = vpop.eup %6231 }
0x1042   : > { %v2653_v34 = vmul.f32 %v6232_v36, %v6228_v60 }
0x1044   : > { %v2654_v41 = vpack.c.bf16 %v2653_v34, %v2653_v34 }
0x1046   : > { %5741 = vmatmul.mubr.msk.bf16.vlgmr.msra.gmra.mrb[52].mxu1 %vm1445_vm6, %v2654_v41 }
0x1047   : > { %2753 = vmatpush1.bf16.msra.mxu1 %v6728_v54  ;;  %2784 = vmatprep.mubr.bf16.mxu1 %v6305_v13  ;;  %v6957_v54 = vpack.c.bf16 %v6625_v12, %v6625_v12 }
0x1048   : > { %2754 = vmatprep.subr.bf16.mxu1 %v6731_v57 }
0x1049   : > { %v2800_v52 = vsel %vm1396_vm4, %v6957_v54, 0 }
0x104b   : > { %2755 = vmatpush1.bf16.msra.mxu1 %v6736_v63 }
0x104c   : > { %5750 = vmatprep.subr.bf16.mxu1 %v6306_v58 }
0x1111   : > { %v2583_v44 = vpop.f32.mrb[48].mxu1 }
0x1112   : > { %v2589_v45 = vpack.c.bf16 %v2583_v44, %v2583_v44  ;;  %v5730_v24 = vpop.f32.mrb[49].mxu1 }
0x1113   : > { %v2586_v35 = vpop.f32.mrb[50].mxu1 }
0x1114   : > { %v5731_v51 = vpop.f32.mrb[51].mxu1  ;;  %5399 = vmatmul.mubr.msk.bf16.vlgmr.msra.gmra.mrb[56].mxu1 %vm1396_vm4, %v2589_v45 }
0x1115   : > { %5752 = vmatprep.mubr.msk.bf16.mxu1 %vm6307_vm2, %v6306_v58 }
0x1119   : > { %v2698_v16 = vpop.f32.mrb[52].mxu1 }
0x111a   : > { %v2704_v57 = vpack.c.bf16 %v2698_v16, %v2698_v16  ;;  %v5742_v48 = vpop.f32.mrb[53].mxu1 }
0x111b   : > { %v2701_v63 = vpop.f32.mrb[54].mxu1 }
0x111c   : > { %v5743_v42 = vpop.f32.mrb[55].mxu1  ;;  %5398 = vmatmul.mubr.msk.bf16.vlgmr.msra.gmra.mrb[44].mxu0 %vm1396_vm4, %v2704_v57 }
0x111d   : > { %5745 = vmatpush3.bf16.xpose.msra.mxu0 %v2800_v52  ;;  %5746 = vmatprep.mubr.msk.bf16.mxu0 %vm6307_vm2, %v6306_v58 }
0x111e   : > { %2908 = vmatprep.subr.bf16.mxu0 %v6756_v9 }
0x1124   : > { %5747 = vmatmul.mubr.msk.bf16.vlgmr.msra.gmra.mrb[48].mxu0 %vm1396_vm4, %v2795_v53 }
0x1125   : > { %2909 = vmatpush1.bf16.msra.mxu0 %v6759_v10  ;;  %2940 = vmatprep.mubr.bf16.mxu0 %v6305_v13 }
0x1126   : > { %2910 = vmatprep.subr.bf16.mxu0 %v6762_v14 }
0x1129   : > { %2911 = vmatpush1.bf16.msra.mxu0 %v6767_v15 }
0x112a   : > { %5762 = vmatprep.subr.bf16.mxu0 %v6306_v58 }
0x11e7   : > { %v2786_v12 = vpop.f32.mrb[56].mxu1 }
0x11e8   : > { %v2788_v27 = vpop.f32.mrb[57].mxu1 }
0x11e9   : > { %v2790_v28 = vpop.f32.mrb[58].mxu1 }
0x11ea   : > { %v2791_v55 = vpop.f32.mrb[59].mxu1 }
0x11ef   : > { %v2742_v60 = vpop.f32.mrb[44].mxu0 }
0x11f0   : > { %v6971_v62 = vadd.f32 %v2786_v12, %v2742_v60  ;;  %v2744_v9 = vpop.f32.mrb[45].mxu0 }
0x11f1   : > { %v6973_v18 = vadd.f32 %v2788_v27, %v2744_v9  ;;  %v2746_v3 = vpop.f32.mrb[46].mxu0 }
0x11f2   : > { %v2747_v10 = vpop.f32.mrb[47].mxu0 }
0x11f7   : > { %v2836_v49 = vpop.f32.mrb[48].mxu0 }
0x11f8   : > { %v2842_v50 = vmul.f32 0.17677669, %v2836_v49  ;;  %v5748_v20 = vpop.f32.mrb[49].mxu0 }
0x11f9   : > { %v2839_v14 = vpop.f32.mrb[50].mxu0 }
0x11fa   : > { %v5749_v4 = vpop.f32.mrb[51].mxu0  ;;  %v2843_v15 = vsel %vm1365_vm5, %v2842_v50, -1e+30 }
0x11fb   : > { %v2844_v5 = vsel %vm1445_vm6, %v2843_v15, -inf }
0x11fc   : > { %2845 = vmax.xlane.f32.xlu1 %v2844_v5 }
0x120d   : > { %2954 = vrot.lane.b32.xlu1 %v6957_v54, %s6309_s0 }
0x1211   : > { %2951 = vrot.lane.b32.xlu1 %v6871_v25, %s6310_s3 }
0x1289   : > { %v2846_v33 = vpop.xlane.xlu1 %2845 }
0x128a   : > { %v2847_v40 = vsub.f32 %v2843_v15, %v2846_v33 }
0x128c   : > { %v2848_v39 = vmul.f32 1.442695, %v2847_v40 }
0x128d   : > { %v2955_v24 = vpop.permute.xlu1 %2954 }
0x128e   : > { %6233 = vpow2.f32 %v2848_v39  ;;  %v2960_v51 = vsel %vm1396_vm4, %v2955_v24, 0 }
0x1291   : > { %v2952_v16 = vpop.permute.xlu1 %2951 }
0x1298   : > { %v6234_v19 = vpop.eup %6233 }
0x1299   : > { %v2850_v36 = vsel %vm1445_vm6, %v6234_v19, 0.0 }
0x129a   : > { %2851 = vadd.xlane.f32.xlu0 %v2850_v36 }
0x12b0   : > { %2856 = vrot.lane.b32.xlu0 %v6915_v56, %s6308_s24 }
0x1327   : > { %v2852_v34 = vpop.xlane.xlu0 %2851 }
0x1328   : > { %6235 = vrcp.f32 %v2852_v34 }
0x132b   : > { %v2857_v41 = vpop.permute.xlu0 %2856 }
0x132c   : > { %v2862_v44 = vsel %vm1461_vm3, %v2857_v41, 0 }
0x132d   : > { %5751 = vmatpush3.bf16.msra.mxu1 %v2862_v44 }
0x132e   : > { %5756 = vmatprep.subr.bf16.mxu1 %v6306_v58 }
0x1332   : > { %v6236_v25 = vpop.eup %6235 }
0x1333   : > { %v2854_v45 = vmul.f32 %v6236_v25, %v6234_v19 }
0x1335   : > { %v2855_v35 = vpack.c.bf16 %v2854_v45, %v2854_v45 }
0x1337   : > { %5753 = vmatmul.mubr.msk.bf16.vlgmr.msra.gmra.mrb[60].mxu1 %vm1445_vm6, %v2855_v35 }
0x1338   : > { %5757 = vmatpush3.bf16.xpose.msra.mxu1 %v2960_v51  ;;  %5758 = vmatprep.mubr.msk.bf16.mxu1 %vm6307_vm2, %v6306_v58 }
0x1339   : > { %3068 = vmatprep.subr.bf16.mxu1 %v6789_v17 }
0x133f   : > { %5759 = vmatmul.mubr.msk.bf16.vlgmr.msra.gmra.mrb[64].mxu1 %vm1396_vm4, %v2952_v16 }
0x1340   : > { %3069 = vmatpush1.bf16.msra.mxu1 %v6786_v6  ;;  %3100 = vmatprep.mubr.bf16.mxu1 %v6305_v13 }
0x1341   : > { %3070 = vmatprep.subr.bf16.mxu1 %v6792_v1 }
0x1344   : > { %3071 = vmatpush1.bf16.msra.mxu1 %v6797_v7 }
0x1345   : > { %5774 = vmatprep.subr.bf16.mxu1 %v6306_v58 }
0x140a   : > { %v2898_v57 = vpop.f32.mrb[60].mxu1 }
0x140b   : > { %v2904_v48 = vpack.c.bf16 %v2898_v57, %v2898_v57  ;;  %v5754_v63 = vpop.f32.mrb[61].mxu1 }
0x140c   : > { %v2901_v42 = vpop.f32.mrb[62].mxu1 }
0x140d   : > { %v5755_v52 = vpop.f32.mrb[63].mxu1  ;;  %5402 = vmatmul.mubr.msk.bf16.vlgmr.msra.gmra.mrb[52].mxu0 %vm1396_vm4, %v2904_v48 }
0x140e   : > { %5764 = vmatprep.mubr.msk.bf16.mxu0 %vm6307_vm2, %v6306_v58 }
0x1412   : > { %v2996_v17 = vpop.f32.mrb[64].mxu1 }
0x1413   : > { %v3002_v6 = vmul.f32 0.17677669, %v2996_v17  ;;  %v5760_v53 = vpop.f32.mrb[65].mxu1 }
0x1414   : > { %v2999_v12 = vpop.f32.mrb[66].mxu1 }
0x1415   : > { %v5761_v27 = vpop.f32.mrb[67].mxu1  ;;  %v3003_v1 = vsel %vm1365_vm5, %v3002_v6, -1e+30 }
0x1416   : > { %v3004_v7 = vsel %vm1445_vm6, %v3003_v1, -inf }
0x1417   : > { %3005 = vmax.xlane.f32.xlu1 %v3004_v7 }
0x1428   : > { %3112 = vrot.lane.b32.xlu1 %v6957_v54, %s6308_s24 }
0x14a4   : > { %v3006_v28 = vpop.xlane.xlu1 %3005 }
0x14a5   : > { %v3007_v55 = vsub.f32 %v3003_v1, %v3006_v28 }
0x14a7   : > { %v3008_v60 = vmul.f32 1.442695, %v3007_v55 }
0x14a8   : > { %v3113_v19 = vpop.permute.xlu1 %3112 }
0x14a9   : > { %6237 = vpow2.f32 %v3008_v60  ;;  %v3118_v36 = vsel %vm1396_vm4, %v3113_v19, 0  ;;  %v2463_v60 = vld [vmem:[%s7439_s16] sm:$0x3] }
0x14b3   : > { %v6238_v9 = vpop.eup %6237 }
0x14b4   : > { %v3010_v3 = vsel %vm1445_vm6, %v6238_v9, 0.0 }
0x14b5   : > { %3011 = vadd.xlane.f32.xlu0 %v3010_v3 }
0x14cb   : > { %3016 = vrot.lane.b32.xlu0 %v6915_v56, %s6310_s3 }
0x14e0   : > { %v2942_v10 = vpop.f32.mrb[52].mxu0 }
0x14e1   : > { %v2949_v49 = vadd.f32 %v2942_v10, %v6971_v62  ;;  %v2944_v50 = vpop.f32.mrb[53].mxu0  ;;  %v7027_v62 = vpack.c.bf16 %v6652_v31, %v6652_v31 }
0x14e2   : > { %v2950_v20 = vadd.f32 %v2944_v50, %v6973_v18  ;;  %v2946_v14 = vpop.f32.mrb[54].mxu0 }
0x14e3   : > { %v2947_v4 = vpop.f32.mrb[55].mxu0  ;;  %v3178_v44 = vsel %vm1461_vm3, %v7027_v62, 0 }
0x1542   : > { %v3012_v15 = vpop.xlane.xlu0 %3011 }
0x1543   : > { %6239 = vrcp.f32 %v3012_v15 }
0x1546   : > { %v3017_v5 = vpop.permute.xlu0 %3016 }
0x1547   : > { %v3022_v33 = vsel %vm1461_vm3, %v3017_v5, 0 }
0x1548   : > { %5763 = vmatpush3.bf16.msra.mxu0 %v3022_v33 }
0x1549   : > { %5768 = vmatprep.subr.bf16.mxu0 %v6306_v58 }
0x154d   : > { %v6240_v40 = vpop.eup %6239 }
0x154e   : > { %v3014_v39 = vmul.f32 %v6240_v40, %v6238_v9  ;;  %v7059_v9 = vrot.slane %v2463_v60, %v6559_v22 }
0x1550   : > { %v3015_v56 = vpack.c.bf16 %v3014_v39, %v3014_v39  ;;  %v6278_v39 = vld [vmem:[#allocation2] sm:$0xff] }
0x1552   : > { %5765 = vmatmul.mubr.msk.bf16.vlgmr.msra.gmra.mrb[56].mxu0 %vm1445_vm6, %v3015_v56 }
0x1553   : > { %5769 = vmatpush3.bf16.xpose.msra.mxu0 %v3118_v36  ;;  %5770 = vmatprep.mubr.msk.bf16.mxu0 %vm6307_vm2, %v6306_v58 }
0x1554   : > { %3224 = vmatprep.subr.bf16.mxu0 %v6831_v29 }
0x155a   : > { %5771 = vmatmul.mubr.msk.bf16.vlgmr.msra.gmra.mrb[60].mxu0 %vm1396_vm4, %v6860_v2 }
0x155b   : > { %3225 = vmatpush1.bf16.msra.mxu0 %v6828_v8  ;;  %3256 = vmatprep.mubr.bf16.mxu0 %v6305_v13 }
0x155c   : > { %3226 = vmatprep.subr.bf16.mxu0 %v6834_v32 }
0x155f   : > { %3227 = vmatpush1.bf16.msra.mxu0 %v6839_v38 }
0x1560   : > { %5786 = vmatprep.subr.bf16.mxu0 %v6306_v58 }
0x1625   : > { %v3058_v18 = vpop.f32.mrb[56].mxu0 }
0x1626   : > { %v3064_v34 = vpack.c.bf16 %v3058_v18, %v3058_v18  ;;  %v5766_v29 = vpop.f32.mrb[57].mxu0 }
0x1627   : > { %v3061_v41 = vpop.f32.mrb[58].mxu0 }
0x1628   : > { %v5767_v8 = vpop.f32.mrb[59].mxu0  ;;  %5405 = vmatmul.mubr.msk.bf16.vlgmr.msra.gmra.mrb[68].mxu1 %vm1396_vm4, %v3064_v34 }
0x1629   : > { %5775 = vmatpush3.bf16.msra.mxu1 %v3178_v44  ;;  %5776 = vmatprep.mubr.msk.bf16.mxu1 %vm6307_vm2, %v6306_v58 }
0x162a   : > { %5780 = vmatprep.subr.bf16.mxu1 %v6306_v58 }
0x162d   : > { %v3154_v32 = vpop.f32.mrb[60].mxu0 }
0x162e   : > { %v3160_v38 = vmul.f32 0.17677669, %v3154_v32  ;;  %v5772_v31 = vpop.f32.mrb[61].mxu0 }
0x162f   : > { %v3157_v25 = vpop.f32.mrb[62].mxu0 }
0x1630   : > { %v5773_v45 = vpop.f32.mrb[63].mxu0  ;;  %v3161_v24 = vsel %vm1365_vm5, %v3160_v38, -1e+30 }
0x1631   : > { %v3162_v35 = vsel %vm1445_vm6, %v3161_v24, -inf }
0x1632   : > { %3163 = vmax.xlane.f32.xlu1 %v3162_v35 }
0x1643   : > { %3267 = vrot.lane.b32.xlu1 %v6860_v2, %s6309_s0 }
0x16bf   : > { %v3164_v51 = vpop.xlane.xlu1 %3163 }
0x16c0   : > { %v3165_v16 = vsub.f32 %v3161_v24, %v3164_v51 }
0x16c2   : > { %v3166_v57 = vmul.f32 1.442695, %v3165_v16 }
0x16c4   : > { %6241 = vpow2.f32 %v3166_v57 }
0x16ce   : > { %v6242_v48 = vpop.eup %6241 }
0x16cf   : > { %v3168_v63 = vsel %vm1445_vm6, %v6242_v48, 0.0 }
0x16d0   : > { %3169 = vadd.xlane.f32.xlu0 %v3168_v63 }
0x16e6   : > { %3269 = vrot.lane.b32.xlu0 %v6957_v54, %s6310_s3  ;;  %v3268_v54 = vpop.permute.xlu1 %3267 }
0x16fb   : > { %v3102_v42 = vpop.f32.mrb[68].mxu1 }
0x16fc   : > { %v3109_v52 = vadd.f32 %v3102_v42, %v2949_v49  ;;  %v3104_v17 = vpop.f32.mrb[69].mxu1 }
0x16fd   : > { %v3110_v6 = vadd.f32 %v3104_v17, %v2950_v20  ;;  %v3106_v53 = vpop.f32.mrb[70].mxu1 }
0x16fe   : > { %v3107_v12 = vpop.f32.mrb[71].mxu1 }
0x175d   : > { %v3170_v27 = vpop.xlane.xlu0 %3169 }
0x175e   : > { %6243 = vrcp.f32 %v3170_v27 }
0x1761   : > { %v3270_v7 = vpop.permute.xlu0 %3269 }
0x1762   : > { %v3275_v55 = vsel %vm1396_vm4, %v3270_v7, 0 }
0x1768   : > { %v6244_v2 = vpop.eup %6243 }
0x1769   : > { %v3172_v1 = vmul.f32 %v6244_v2, %v6242_v48 }
0x176b   : > { %v3173_v28 = vpack.c.bf16 %v3172_v1, %v3172_v1 }
0x176d   : > { %5777 = vmatmul.mubr.msk.bf16.vlgmr.msra.gmra.mrb[72].mxu1 %vm1445_vm6, %v3173_v28 }
0x176e   : > { %5781 = vmatpush3.bf16.xpose.msra.mxu1 %v3275_v55  ;;  %5782 = vmatprep.mubr.msk.bf16.mxu1 %vm6307_vm2, %v6306_v58 }
0x176f   : > { %3384 = vmatprep.subr.bf16.mxu1 %v6883_v47 }
0x1775   : > { %5783 = vmatmul.mubr.msk.bf16.vlgmr.msra.gmra.mrb[76].mxu1 %vm1396_vm4, %v3268_v54  ;;  %v6279_v54 = vld [vmem:[#allocation2 + $0x18] sm:$0xff] }
0x1776   : > { %3385 = vmatpush1.bf16.msra.mxu1 %v6880_v46  ;;  %3416 = vmatprep.mubr.bf16.mxu1 %v6305_v13  ;;  %v2476_v13 = vadd.f32 %v7059_v9, %v6939_v43  ;;  %v2468_v46 = vrot.slane %v2463_v60, %v6562_v23 }
0x1777   : > { %3386 = vmatprep.subr.bf16.mxu1 %v6886_v30  ;;  %v6277_v30 = vld [vmem:[#allocation2 + $0x8] sm:$0xff] }
0x1778   : > { %v2475_v14 = vadd.f32 %v2468_v46, %v6936_v0 }
0x177a   : > { %3387 = vmatpush1.bf16.msra.mxu1 %v6891_v11  ;;  %v7067_v11 = vadd.f32 %v6277_v30, %v2476_v13  ;;  %v7075_v19 = vadd.f32 %v6278_v39, %v2475_v14  ;;  %v5945_v30 = vld [vmem:[%s6461_s30] ss:$24 sps:$4 sm:$0xff]  }
0x177b   : > { %v5948_v14 = vld [vmem:[%s6461_s30 + $0x8] ss:$24 sps:$4 sm:$0xff]  }
0x177c   : > { %v5957_v39 = vld [vmem:[%s6461_s30 + $0x60] ss:$24 sps:$4 sm:$0xff]  }
0x1840   : > { %v3214_v47 = vpop.f32.mrb[72].mxu1 }
0x1841   : > { %v3220_v3 = vpack.c.bf16 %v3214_v47, %v3214_v47  ;;  %v5778_v10 = vpop.f32.mrb[73].mxu1 }
0x1842   : > { %v3217_v49 = vpop.f32.mrb[74].mxu1 }
0x1843   : > { %v5779_v50 = vpop.f32.mrb[75].mxu1  ;;  %5408 = vmatmul.mubr.msk.bf16.vlgmr.msra.gmra.mrb[64].mxu0 %vm1396_vm4, %v3220_v3  ;;  %v6280_v3 = vld [vmem:[#allocation2 + $0x10] sm:$0xff] }
0x1844   : > { %5788 = vmatprep.mubr.msk.bf16.mxu0 %vm6307_vm2, %v6306_v58  ;;  %v3435_v58 = vsel %vm752_vm1, %v7067_v11, 0.0 }
0x1845   : > { %v3436_v56 = vadd.f32 %v3435_v58, %v7075_v19  ;;  %v5962_v58 = vld [vmem:[%s6461_s30 + $0x6c] ss:$24 sps:$4 sm:$0xff]  }
0x1848   : > { %v3311_v20 = vpop.f32.mrb[76].mxu1 }
0x1849   : > { %v3317_v4 = vmul.f32 0.17677669, %v3311_v20  ;;  %v5784_v15 = vpop.f32.mrb[77].mxu1  ;;  %v5947_v20 = vld [vmem:[%s6461_s30 + $0x4] ss:$24 sps:$4 sm:$0xff]  }
0x184a   : > { %v3314_v5 = vpop.f32.mrb[78].mxu1  ;;  %v5953_v15 = vld [vmem:[%s6461_s30 + $0x34] ss:$24 sps:$4 sm:$0xff]  }
0x184b   : > { %v5785_v33 = vpop.f32.mrb[79].mxu1  ;;  %v3318_v40 = vsel %vm1365_vm5, %v3317_v4, -1e+30  ;;  %v5950_v4 = vld [vmem:[%s6461_s30 + $0xc] ss:$24 sps:$4 sm:$0xff]  }
0x184c   : > { %v3319_v43 = vsel %vm1445_vm6, %v3318_v40, -inf  ;;  %v5956_v5 = vld [vmem:[%s6461_s30 + $0x3c] ss:$24 sps:$4 sm:$0xff]   ;;  %4013 = vmatprep.subr.bf16.mxu1 %v5950_v4  ;;  %v5951_v33 = vld [vmem:[%s6461_s30 + $0x30] ss:$24 sps:$4 sm:$0xff]  }
0x184d   : > { %3320 = vmax.xlane.f32.xlu1 %v3319_v43  ;;  %v5959_v43 = vld [vmem:[%s6461_s30 + $0x64] ss:$24 sps:$4 sm:$0xff]   ;;  %v6014_v4 = vld [vmem:[%s6461_s30 + $0x218] ss:$24 sps:$4 sm:$0xff]  }
0x1851   : > { %3437 = vadd.xlane.f32.xlu1 %v3436_v56  ;;  %v5960_v56 = vld [vmem:[%s6461_s30 + $0x68] ss:$24 sps:$4 sm:$0xff]  }
0x18da   : > { %v3321_v0 = vpop.xlane.xlu1 %3320 }
0x18db   : > { %v3322_v36 = vsub.f32 %v3318_v40, %v3321_v0  ;;  %v5954_v40 = vld [vmem:[%s6461_s30 + $0x38] ss:$24 sps:$4 sm:$0xff]   ;;  %v5965_v0 = vld [vmem:[%s6461_s30 + $0x94] ss:$24 sps:$4 sm:$0xff]  }
0x18dd   : > { %v3323_v18 = vmul.f32 1.442695, %v3322_v36  ;;  %v5968_v36 = vld [vmem:[%s6461_s30 + $0x9c] ss:$24 sps:$4 sm:$0xff]  }
0x18de   : > { %v3438_v42 = vpop.xlane.xlu1 %3437 }
0x18df   : > { %6245 = vpow2.f32 %v3323_v18  ;;  %v5963_v18 = vld [vmem:[%s6461_s30 + $0x90] ss:$24 sps:$4 sm:$0xff]  }
0x18e9   : > { %v6246_v34 = vpop.eup %6245 }
0x18ea   : > { %v3325_v37 = vsel %vm1445_vm6, %v6246_v34, 0.0 }
0x18eb   : > { %3326 = vadd.xlane.f32.xlu0 %v3325_v37  ;;  %v5971_v37 = vld [vmem:[%s6461_s30 + $0xc4] ss:$24 sps:$4 sm:$0xff]  }
0x1901   : > { %3332 = vrot.lane.b32.xlu0 %v7027_v62, %s6309_s0 }
0x1916   : > { %v3258_v29 = vpop.f32.mrb[64].mxu0 }
0x1917   : > { %v3265_v41 = vadd.f32 %v3258_v29, %v3109_v52  ;;  %v3260_v44 = vpop.f32.mrb[65].mxu0  ;;  %v3443_v52 = vmul.f32 0.0052083335, %v3438_v42  ;;  %v5974_v29 = vld [vmem:[%s6461_s30 + $0xcc] ss:$24 sps:$4 sm:$0xff]  }
0x1918   : > { %v3266_v8 = vadd.f32 %v3260_v44, %v3110_v6  ;;  %v3262_v32 = vpop.f32.mrb[66].mxu0  ;;  %v5972_v44 = vld [vmem:[%s6461_s30 + $0xc8] ss:$24 sps:$4 sm:$0xff]   ;;  %v5986_v42 = vld [vmem:[%s6461_s30 + $0x12c] ss:$24 sps:$4 sm:$0xff]  }
0x1919   : > { %v3263_v38 = vpop.f32.mrb[67].mxu0  ;;  %v7085_v12 = vsub.f32 %v7067_v11, %v3443_v52  ;;  %v7089_v55 = vsub.f32 %v7075_v19, %v3443_v52  ;;  %v5980_v32 = vld [vmem:[%s6461_s30 + $0xfc] ss:$24 sps:$4 sm:$0xff]   ;;  %v5984_v52 = vld [vmem:[%s6461_s30 + $0x128] ss:$24 sps:$4 sm:$0xff]  }
0x191a   : > { %v5975_v38 = vld [vmem:[%s6461_s30 + $0xf0] ss:$24 sps:$4 sm:$0xff]  }
0x191b   : > { %v3450_v47 = vmul.f32 %v7085_v12, %v7085_v12  ;;  %v3449_v50 = vmul.f32 %v7089_v55, %v7089_v55 }
0x191d   : > { %v3453_v13 = vsel %vm752_vm1, %v3450_v47, 0.0  ;;  %v5999_v47 = vld [vmem:[%s6461_s30 + $0x1b0] ss:$24 sps:$4 sm:$0xff]  }
0x1978   : > { %v3327_v31 = vpop.xlane.xlu0 %3326 }
0x1979   : > { %6247 = vrcp.f32 %v3327_v31  ;;  %v5978_v31 = vld [vmem:[%s6461_s30 + $0xf8] ss:$24 sps:$4 sm:$0xff]  }
0x197c   : > { %v3333_v25 = vpop.permute.xlu0 %3332 }
0x197d   : > { %v3338_v45 = vsel %vm1461_vm3, %v3333_v25, 0  ;;  %v5983_v25 = vld [vmem:[%s6461_s30 + $0x124] ss:$24 sps:$4 sm:$0xff]  }
0x197e   : > { %5787 = vmatpush3.bf16.msra.mxu0 %v3338_v45  ;;  %v5981_v45 = vld [vmem:[%s6461_s30 + $0x120] ss:$24 sps:$4 sm:$0xff]  }
0x197f   : > { %3970 = vmatprep.subr.bf16.mxu0 %v5947_v20  ;;  %v6011_v20 = vld [vmem:[%s6461_s30 + $0x210] ss:$24 sps:$4 sm:$0xff]  }
0x1983   : > { %v6248_v24 = vpop.eup %6247 }
0x1984   : > { %v3329_v35 = vmul.f32 %v6248_v24, %v6246_v34  ;;  %v5966_v34 = vld [vmem:[%s6461_s30 + $0x98] ss:$24 sps:$4 sm:$0xff]  }
0x1986   : > { %v3330_v51 = vpack.c.bf16 %v3329_v35, %v3329_v35 }
0x1988   : > { %5789 = vmatmul.mubr.msk.bf16.vlgmr.msra.gmra.mrb[68].mxu0 %vm1445_vm6, %v3330_v51 }
0x1989   : > { %3971 = vmatpush1.bf16.msra.mxu0 %v5945_v30  ;;  %v6013_v30 = vld [vmem:[%s6461_s30 + $0x214] ss:$24 sps:$4 sm:$0xff]  }
0x198a   : > { %3972 = vmatprep.subr.bf16.mxu0 %v5953_v15  ;;  %v6019_v15 = vld [vmem:[%s6461_s30 + $0x14] ss:$24 sps:$4 sm:$0xff]  }
0x198d   : > { %3973 = vmatpush1.bf16.msra.mxu0 %v5951_v33 }
0x198e   : > { %3974 = vmatprep.subr.bf16.mxu0 %v5959_v43 }
0x1991   : > { %3975 = vmatpush1.bf16.msra.mxu0 %v5957_v39 }
0x1992   : > { %3976 = vmatprep.subr.bf16.mxu0 %v5965_v0 }
0x1995   : > { %3977 = vmatpush1.bf16.msra.mxu0 %v5963_v18 }
0x1996   : > { %3978 = vmatprep.subr.bf16.mxu0 %v5971_v37  ;;  %v3434_v37 = vld [vmem:[%s7441_s21] sm:$0x3] }
0x1a5b   : > { %v3374_v16 = vpop.f32.mrb[68].mxu0 }
0x1a5c   : > { %v3380_v57 = vpack.c.bf16 %v3374_v16, %v3374_v16  ;;  %v5790_v62 = vpop.f32.mrb[69].mxu0 }
0x1a5d   : > { %v3377_v48 = vpop.f32.mrb[70].mxu0 }
0x1a5e   : > { %v5791_v63 = vpop.f32.mrb[71].mxu0  ;;  %5411 = vmatmul.mubr.msk.bf16.vlgmr.msra.gmra.mrb[80].mxu1 %vm1396_vm4, %v3380_v57 }
0x1a5f   : > { %4014 = vmatpush1.bf16.msra.mxu1 %v5948_v14  ;;  %v6016_v14 = vld [vmem:[%s6461_s30 + $0x21c] ss:$24 sps:$4 sm:$0xff]  }
0x1a60   : > { %4015 = vmatprep.subr.bf16.mxu1 %v5956_v5  ;;  %v6055_v5 = vld [vmem:[%s6471_s23 + $0x104] ss:$8 sps:$4 sm:$0xff]  }
0x1a63   : > { %4016 = vmatpush1.bf16.msra.mxu1 %v5954_v40 }
0x1a64   : > { %4017 = vmatprep.subr.bf16.mxu1 %v5962_v58 }
0x1a67   : > { %4018 = vmatpush1.bf16.msra.mxu1 %v5960_v56 }
0x1a68   : > { %4019 = vmatprep.subr.bf16.mxu1 %v5968_v36  ;;  %v3433_v36 = vld [vmem:[%s7440_s25] sm:$0x3] }
0x1a6b   : > { %4020 = vmatpush1.bf16.msra.mxu1 %v5966_v34 }
0x1a6c   : > { %4021 = vmatprep.subr.bf16.mxu1 %v5974_v29  ;;  %v3479_v29 = vrot.slane %v3433_v36, %v6559_v22 }
0x1a6f   : > { %4022 = vmatpush1.bf16.msra.mxu1 %v5972_v44 }
0x1a70   : > { %4023 = vmatprep.subr.bf16.mxu1 %v5980_v32  ;;  %v3490_v32 = vrot.slane %v3434_v37, %v6562_v23 }
0x1a73   : > { %4024 = vmatpush1.bf16.msra.mxu1 %v5978_v31 }
0x1a74   : > { %4025 = vmatprep.subr.bf16.mxu1 %v5986_v42 }
0x1a77   : > { %4026 = vmatpush1.bf16.msra.mxu1 %v5984_v52  ;;  %v6053_v52 = vld [vmem:[%s6471_s23 + $0x100] ss:$8 sps:$4 sm:$0xff]  }
0x1b31   : > { %v3418_v17 = vpop.f32.mrb[80].mxu1 }
0x1b32   : > { %v3425_v6 = vadd.f32 %v3418_v17, %v3265_v41  ;;  %v3420_v53 = vpop.f32.mrb[81].mxu1  ;;  %v5969_v41 = vld [vmem:[%s6461_s30 + $0xc0] ss:$24 sps:$4 sm:$0xff]   ;;  %v5989_v17 = vld [vmem:[%s6461_s30 + $0x154] ss:$24 sps:$4 sm:$0xff]  }
0x1b33   : > { %v3426_v27 = vadd.f32 %v3420_v53, %v3266_v8  ;;  %v3422_v2 = vpop.f32.mrb[82].mxu1  ;;  %v5977_v8 = vld [vmem:[%s6461_s30 + $0xf4] ss:$24 sps:$4 sm:$0xff]   ;;  %3979 = vmatpush1.bf16.msra.mxu0 %v5969_v41  ;;  %v3475_v41 = vrot.slane %v3433_v36, %v6562_v23  ;;  %v6046_v36 = vld [vmem:[%s6461_s30 + $0x1c4] ss:$24 sps:$4 sm:$0xff]  }
0x1b34   : > { %v3427_v1 = vadd.f32 %v3425_v6, %v2468_v46  ;;  %v3423_v7 = vpop.f32.mrb[83].mxu1  ;;  %v3454_v46 = vadd.f32 %v3453_v13, %v3449_v50  ;;  %3980 = vmatprep.subr.bf16.mxu0 %v5977_v8  ;;  %v5987_v6 = vld [vmem:[%s6461_s30 + $0x150] ss:$24 sps:$4 sm:$0xff]   ;;  %v5992_v53 = vld [vmem:[%s6461_s30 + $0x15c] ss:$24 sps:$4 sm:$0xff]   ;;  %v3494_v8 = vrot.slane %v3434_v37, %v6559_v22 }
0x1b35   : > { %v3428_v28 = vadd.f32 %v3426_v27, %v7059_v9  ;;  %v5990_v27 = vld [vmem:[%s6461_s30 + $0x158] ss:$24 sps:$4 sm:$0xff]   ;;  %4027 = vmatprep.subr.bf16.mxu1 %v5992_v53  ;;  %v5995_v2 = vld [vmem:[%s6461_s30 + $0x184] ss:$24 sps:$4 sm:$0xff]   ;;  %v6008_v13 = vld [vmem:[%s6461_s30 + $0x1e8] ss:$24 sps:$4 sm:$0xff]  }
0x1b36   : > { %v7095_v10 = vadd.f32 %v6280_v3, %v3427_v1  ;;  %4028 = vmatpush1.bf16.msra.mxu1 %v5990_v27  ;;  %v5993_v1 = vld [vmem:[%s6461_s30 + $0x180] ss:$24 sps:$4 sm:$0xff]   ;;  %v5998_v7 = vld [vmem:[%s6461_s30 + $0x18c] ss:$24 sps:$4 sm:$0xff]   ;;  %v6004_v3 = vld [vmem:[%s6461_s30 + $0x1bc] ss:$24 sps:$4 sm:$0xff]  }
0x1b37   : > { %v7091_v60 = vadd.f32 %v6279_v54, %v3428_v28  ;;  %3981 = vmatpush1.bf16.msra.mxu0 %v5975_v38  ;;  %v5996_v28 = vld [vmem:[%s6461_s30 + $0x188] ss:$24 sps:$4 sm:$0xff]   ;;  %4029 = vmatprep.subr.bf16.mxu1 %v5998_v7  ;;  %v6001_v54 = vld [vmem:[%s6461_s30 + $0x1b4] ss:$24 sps:$4 sm:$0xff]   ;;  %v6059_v53 = vld [vmem:[%s6471_s23 + $0x110] ss:$8 sps:$4 sm:$0xff]  }
0x1b38   : > { %3982 = vmatprep.subr.bf16.mxu0 %v5983_v25  ;;  %v6005_v50 = vld [vmem:[%s6461_s30 + $0x1e0] ss:$24 sps:$4 sm:$0xff]   ;;  %v6067_v27 = vld [vmem:[%s6471_s23 + $0x124] ss:$8 sps:$4 sm:$0xff]  }
0x1b39   : > { %v3439_v49 = vsel %vm752_vm1, %v7091_v60, 0.0  ;;  %v6065_v7 = vld [vmem:[%s6471_s23 + $0x120] ss:$8 sps:$4 sm:$0xff]  }
0x1b3a   : > { %v3440_v9 = vadd.f32 %v3439_v49, %v7095_v10  ;;  %4030 = vmatpush1.bf16.msra.mxu1 %v5996_v28  ;;  %v6002_v49 = vld [vmem:[%s6461_s30 + $0x1b8] ss:$24 sps:$4 sm:$0xff]   ;;  %v6073_v28 = vld [vmem:[%s6471_s23 + $0x134] ss:$8 sps:$4 sm:$0xff]  }
0x1b3b   : > { %3983 = vmatpush1.bf16.msra.mxu0 %v5981_v45  ;;  %4031 = vmatprep.subr.bf16.mxu1 %v6004_v3  ;;  %v6071_v3 = vld [vmem:[%s6471_s23 + $0x130] ss:$8 sps:$4 sm:$0xff]  }
0x1b3c   : > { %3441 = vadd.xlane.f32.xlu1 %v3440_v9  ;;  %3984 = vmatprep.subr.bf16.mxu0 %v5989_v17  ;;  %v6007_v9 = vld [vmem:[%s6461_s30 + $0x1e4] ss:$24 sps:$4 sm:$0xff]   ;;  %v6020_v17 = vld [vmem:[%s6461_s30 + $0x40] ss:$24 sps:$4 sm:$0xff]  }
0x1b3d   : > { %v6044_v37 = vld [vmem:[%s6461_s30 + $0x1c0] ss:$24 sps:$4 sm:$0xff]  }
0x1b3e   : > { %4032 = vmatpush1.bf16.msra.mxu1 %v6002_v49  ;;  %v6079_v49 = vld [vmem:[%s6471_s23 + $0x144] ss:$8 sps:$4 sm:$0xff]  }
0x1b3f   : > { %3985 = vmatpush1.bf16.msra.mxu0 %v5987_v6  ;;  %v6025_v6 = vld [vmem:[%s6461_s30 + $0x74] ss:$24 sps:$4 sm:$0xff]  }
0x1b40   : > { %3455 = vadd.xlane.f32.xlu1 %v3454_v46  ;;  %3986 = vmatprep.subr.bf16.mxu0 %v5995_v2  ;;  %v6010_v46 = vld [vmem:[%s6461_s30 + $0x1ec] ss:$24 sps:$4 sm:$0xff]   ;;  %v6023_v2 = vld [vmem:[%s6461_s30 + $0x70] ss:$24 sps:$4 sm:$0xff]  }
0x1b41   : > { %4033 = vmatprep.subr.bf16.mxu1 %v6010_v46  ;;  %v6085_v46 = vld [vmem:[%s6471_s23 + $0x154] ss:$8 sps:$4 sm:$0xff]  }
0x1b42   : > { %4034 = vmatpush1.bf16.msra.mxu1 %v6008_v13  ;;  %v6077_v13 = vld [vmem:[%s6471_s23 + $0x140] ss:$8 sps:$4 sm:$0xff]  }
0x1b43   : > { %3987 = vmatpush1.bf16.msra.mxu0 %v5993_v1  ;;  %4035 = vmatprep.subr.bf16.mxu1 %v6016_v14  ;;  %v6028_v1 = vld [vmem:[%s6461_s30 + $0xa4] ss:$24 sps:$4 sm:$0xff]   ;;  %v6083_v14 = vld [vmem:[%s6471_s23 + $0x150] ss:$8 sps:$4 sm:$0xff]  }
0x1b44   : > { %3988 = vmatprep.subr.bf16.mxu0 %v6001_v54  ;;  %v6026_v54 = vld [vmem:[%s6461_s30 + $0xa0] ss:$24 sps:$4 sm:$0xff]  }
0x1b46   : > { %4036 = vmatpush1.bf16.msra.mxu1 %v6014_v4  ;;  %v6091_v4 = vld [vmem:[%s6471_s23 + $0x164] ss:$8 sps:$4 sm:$0xff]  }
0x1b47   : > { %3989 = vmatpush1.bf16.msra.mxu0 %v5999_v47  ;;  %4796 = vmatprep.subr.bf16.mxu1 %v6055_v5  ;;  %v6031_v47 = vld [vmem:[%s6461_s30 + $0xd4] ss:$24 sps:$4 sm:$0xff]   ;;  %v6040_v5 = vld [vmem:[%s6461_s30 + $0x164] ss:$24 sps:$4 sm:$0xff]  }
0x1b48   : > { %3990 = vmatprep.subr.bf16.mxu0 %v6007_v9  ;;  %v6029_v9 = vld [vmem:[%s6461_s30 + $0xd0] ss:$24 sps:$4 sm:$0xff]  }
0x1b4b   : > { %3991 = vmatpush1.bf16.msra.mxu0 %v6005_v50  ;;  %v6034_v50 = vld [vmem:[%s6461_s30 + $0x104] ss:$24 sps:$4 sm:$0xff]  }
0x1b4c   : > { %3992 = vmatprep.subr.bf16.mxu0 %v6013_v30  ;;  %v6032_v30 = vld [vmem:[%s6461_s30 + $0x100] ss:$24 sps:$4 sm:$0xff]  }
0x1b4f   : > { %3993 = vmatpush1.bf16.msra.mxu0 %v6011_v20  ;;  %v6037_v20 = vld [vmem:[%s6461_s30 + $0x134] ss:$24 sps:$4 sm:$0xff]  }
0x1b50   : > { %4056 = vmatprep.subr.bf16.mxu0 %v6019_v15  ;;  %v6035_v15 = vld [vmem:[%s6461_s30 + $0x130] ss:$24 sps:$4 sm:$0xff]  }
0x1bc9   : > { %v3442_v24 = vpop.xlane.xlu1 %3441 }
0x1bca   : > { %v3444_v35 = vmul.f32 0.0052083335, %v3442_v24 }
0x1bcc   : > { %v7130_v51 = vsub.f32 %v7095_v10, %v3444_v35  ;;  %v7133_v16 = vsub.f32 %v7091_v60, %v3444_v35 }
0x1bcd   : > { %v3456_v33 = vpop.xlane.xlu1 %3455 }
0x1bce   : > { %v3451_v57 = vmul.f32 %v7130_v51, %v7130_v51  ;;  %v3452_v62 = vmul.f32 %v7133_v16, %v7133_v16  ;;  %v3461_v40 = vmul.f32 0.0052083335, %v3456_v33  ;;  %v6089_v33 = vld [vmem:[%s6471_s23 + $0x160] ss:$8 sps:$4 sm:$0xff]  }
0x1bd0   : > { %v3457_v48 = vsel %vm752_vm1, %v3452_v62, 0.0  ;;  %v3463_v43 = vadd.f32 1e-05, %v3461_v40  ;;  %v6097_v40 = vld [vmem:[%s6471_s23 + $0x174] ss:$8 sps:$4 sm:$0xff]  }
0x1bd1   : > { %v3458_v63 = vadd.f32 %v3457_v48, %v3451_v57 }
0x1bd2   : > { %6249 = vrsqrt.f32 %v3463_v43  ;;  %v6038_v43 = vld [vmem:[%s6461_s30 + $0x160] ss:$24 sps:$4 sm:$0xff]  }
0x1bd3   : > { %3459 = vadd.xlane.f32.xlu1 %v3458_v63  ;;  %v6017_v63 = vld [vmem:[%s6461_s30 + $0x10] ss:$24 sps:$4 sm:$0xff]  }
0x1bdc   : > { %v6250_v0 = vpop.eup %6249 }
0x1bdd   : > { %v3467_v18 = vmul.f32 %v6250_v0, %v7089_v55  ;;  %v3468_v34 = vmul.f32 %v6250_v0, %v7085_v12  ;;  %v6041_v0 = vld [vmem:[%s6461_s30 + $0x190] ss:$24 sps:$4 sm:$0xff]  }
0x1bdf   : > { %v3483_v38 = vmul.f32 %v3479_v29, %v3468_v34  ;;  %v3482_v31 = vmul.f32 %v3475_v41, %v3467_v18  ;;  %v6101_v18 = vld [vmem:[%s6471_s23 + $0x180] ss:$8 sps:$4 sm:$0xff]   ;;  %v6109_v34 = vld [vmem:[%s6471_s23 + $0x194] ss:$8 sps:$4 sm:$0xff]  }
0x1be1   : > { %v3498_v24 = vadd.f32 %v3494_v8, %v3483_v38  ;;  %v3497_v57 = vadd.f32 %v3490_v32, %v3482_v31  ;;  %v6064_v38 = vld [vmem:[%s6471_s23 + $0x14] ss:$8 sps:$4 sm:$0xff]   ;;  %v6062_v31 = vld [vmem:[%s6471_s23 + $0x10] ss:$8 sps:$4 sm:$0xff]  }
0x1c60   : > { %v3460_v58 = vpop.xlane.xlu1 %3459 }
0x1c61   : > { %v3462_v39 = vmul.f32 0.0052083335, %v3460_v58  ;;  %v6043_v58 = vld [vmem:[%s6461_s30 + $0x194] ss:$24 sps:$4 sm:$0xff]  }
0x1c63   : > { %v3464_v56 = vadd.f32 1e-05, %v3462_v39  ;;  %v6095_v39 = vld [vmem:[%s6471_s23 + $0x170] ss:$8 sps:$4 sm:$0xff]  }
0x1c65   : > { %6251 = vrsqrt.f32 %v3464_v56  ;;  %v6103_v56 = vld [vmem:[%s6471_s23 + $0x184] ss:$8 sps:$4 sm:$0xff]  }
0x1c6f   : > { %v6252_v44 = vpop.eup %6251 }
0x1c70   : > { %v3469_v55 = vmul.f32 %v6252_v44, %v7130_v51  ;;  %v3470_v12 = vmul.f32 %v6252_v44, %v7133_v16  ;;  %v6022_v51 = vld [vmem:[%s6461_s30 + $0x44] ss:$24 sps:$4 sm:$0xff]   ;;  %v6047_v44 = vld [vmem:[%s6461_s30 + $0x1f0] ss:$24 sps:$4 sm:$0xff]  }
0x1c71   : > { %v6061_v16 = vld [vmem:[%s6471_s23 + $0x114] ss:$8 sps:$4 sm:$0xff]  }
0x1c72   : > { %v3485_v25 = vmul.f32 %v3479_v29, %v3470_v12  ;;  %v3484_v45 = vmul.f32 %v3475_v41, %v3469_v55  ;;  %v6049_v29 = vld [vmem:[%s6461_s30 + $0x1f4] ss:$24 sps:$4 sm:$0xff]   ;;  %v6107_v41 = vld [vmem:[%s6471_s23 + $0x190] ss:$8 sps:$4 sm:$0xff]   ;;  %v6056_v12 = vld [vmem:[%s6471_s23] ss:$8 sps:$4 sm:$0xff]  }
0x1c73   : > { %v6058_v55 = vld [vmem:[%s6471_s23 + $0x4] ss:$8 sps:$4 sm:$0xff]  }
0x1c74   : > { %v3500_v35 = vadd.f32 %v3494_v8, %v3485_v25  ;;  %v3499_v62 = vadd.f32 %v3490_v32, %v3484_v45  ;;  %v6052_v8 = vld [vmem:[%s6461_s30 + $0x224] ss:$24 sps:$4 sm:$0xff]   ;;  %v6050_v32 = vld [vmem:[%s6461_s30 + $0x220] ss:$24 sps:$4 sm:$0xff]  }
0x1c75   : > { %v6070_v25 = vld [vmem:[%s6471_s23 + $0x24] ss:$8 sps:$4 sm:$0xff]   ;;  %v6068_v45 = vld [vmem:[%s6471_s23 + $0x20] ss:$8 sps:$4 sm:$0xff]  }
0x1c76   : > { %v3502_v48 = vpack.c.bf16 %v3500_v35, %v3498_v24  ;;  %v7183_v42 = vpack.c.bf16 %v3499_v62, %v3497_v57  ;;  %v6076_v24 = vld [vmem:[%s6471_s23 + $0x34] ss:$8 sps:$4 sm:$0xff]   ;;  %v6074_v35 = vld [vmem:[%s6471_s23 + $0x30] ss:$8 sps:$4 sm:$0xff]   ;;  %v6082_v57 = vld [vmem:[%s6471_s23 + $0x44] ss:$8 sps:$4 sm:$0xff]  }
0x1c77   : > { %v6080_v62 = vld [vmem:[%s6471_s23 + $0x40] ss:$8 sps:$4 sm:$0xff]  }
0x1c78   : > { %5484 = vmatprep.mubr.msk.bf16.mxu0 %vm752_vm1, %v3502_v48  ;;  %5485 = vmatprep.mubr.msk.bf16.mxu1 %vm752_vm1, %v3502_v48 }
0x1c79   : > { %4003 = vmatmul.mubr.bf16.vlgmr.msra.gmra.mrb[72].mxu0 %v7183_v42  ;;  %4046 = vmatmul.mubr.bf16.vlgmr.msra.gmra.mrb[84].mxu1 %v7183_v42 }
0x1c7a   : > { %4057 = vmatpush1.bf16.msra.mxu0 %v6017_v63  ;;  %5486 = vmatprep.mubr.msk.bf16.mxu0 %vm752_vm1, %v3502_v48  ;;  %v6088_v48 = vld [vmem:[%s6471_s23 + $0x54] ss:$8 sps:$4 sm:$0xff]   ;;  %v6086_v63 = vld [vmem:[%s6471_s23 + $0x50] ss:$8 sps:$4 sm:$0xff]  }
0x1c7b   : > { %4058 = vmatprep.subr.bf16.mxu0 %v6022_v51  ;;  %4797 = vmatpush1.bf16.msra.mxu1 %v6053_v52  ;;  %v6092_v51 = vld [vmem:[%s6471_s23 + $0x60] ss:$8 sps:$4 sm:$0xff]   ;;  %v6100_v52 = vld [vmem:[%s6471_s23 + $0x74] ss:$8 sps:$4 sm:$0xff]  }
0x1c7c   : > { %4798 = vmatprep.subr.bf16.mxu1 %v6061_v16  ;;  %v6098_v16 = vld [vmem:[%s6471_s23 + $0x70] ss:$8 sps:$4 sm:$0xff]  }
0x1c7e   : > { %4059 = vmatpush1.bf16.msra.mxu0 %v6020_v17  ;;  %v6106_v17 = vld [vmem:[%s6471_s23 + $0x84] ss:$8 sps:$4 sm:$0xff]  }
0x1c7f   : > { %4060 = vmatprep.subr.bf16.mxu0 %v6025_v6  ;;  %4799 = vmatpush1.bf16.msra.mxu1 %v6059_v53  ;;  %v6104_v6 = vld [vmem:[%s6471_s23 + $0x80] ss:$8 sps:$4 sm:$0xff]   ;;  %v6112_v53 = vld [vmem:[%s6471_s23 + $0x94] ss:$8 sps:$4 sm:$0xff]  }
0x1c80   : > { %4800 = vmatprep.subr.bf16.mxu1 %v6067_v27  ;;  %v6110_v27 = vld [vmem:[%s6471_s23 + $0x90] ss:$8 sps:$4 sm:$0xff]  }
0x1c82   : > { %4061 = vmatpush1.bf16.msra.mxu0 %v6023_v2  ;;  %v6115_v2 = vld [vmem:[%s6471_s23 + $0x1a4] ss:$8 sps:$4 sm:$0xff]  }
0x1c83   : > { %4062 = vmatprep.subr.bf16.mxu0 %v6028_v1  ;;  %4801 = vmatpush1.bf16.msra.mxu1 %v6065_v7  ;;  %v6113_v1 = vld [vmem:[%s6471_s23 + $0x1a0] ss:$8 sps:$4 sm:$0xff]   ;;  %v6118_v7 = vld [vmem:[%s6471_s23 + $0xa4] ss:$8 sps:$4 sm:$0xff]  }
0x1c84   : > { %4802 = vmatprep.subr.bf16.mxu1 %v6073_v28  ;;  %v6116_v28 = vld [vmem:[%s6471_s23 + $0xa0] ss:$8 sps:$4 sm:$0xff]  }
0x1c86   : > { %4063 = vmatpush1.bf16.msra.mxu0 %v6026_v54  ;;  %v6121_v54 = vld [vmem:[%s6471_s23 + $0x1b4] ss:$8 sps:$4 sm:$0xff]  }
0x1c87   : > { %4064 = vmatprep.subr.bf16.mxu0 %v6031_v47  ;;  %4803 = vmatpush1.bf16.msra.mxu1 %v6071_v3  ;;  %v6119_v47 = vld [vmem:[%s6471_s23 + $0x1b0] ss:$8 sps:$4 sm:$0xff]   ;;  %v6124_v3 = vld [vmem:[%s6471_s23 + $0xb4] ss:$8 sps:$4 sm:$0xff]  }
0x1c88   : > { %4804 = vmatprep.subr.bf16.mxu1 %v6079_v49  ;;  %v6122_v49 = vld [vmem:[%s6471_s23 + $0xb0] ss:$8 sps:$4 sm:$0xff]  }
0x1c8a   : > { %4065 = vmatpush1.bf16.msra.mxu0 %v6029_v9  ;;  %v6127_v9 = vld [vmem:[%s6471_s23 + $0x1c4] ss:$8 sps:$4 sm:$0xff]  }
0x1c8b   : > { %4066 = vmatprep.subr.bf16.mxu0 %v6034_v50  ;;  %4805 = vmatpush1.bf16.msra.mxu1 %v6077_v13  ;;  %v6125_v50 = vld [vmem:[%s6471_s23 + $0x1c0] ss:$8 sps:$4 sm:$0xff]   ;;  %v6130_v13 = vld [vmem:[%s6471_s23 + $0xc4] ss:$8 sps:$4 sm:$0xff]  }
0x1c8c   : > { %4806 = vmatprep.subr.bf16.mxu1 %v6085_v46  ;;  %v6128_v46 = vld [vmem:[%s6471_s23 + $0xc0] ss:$8 sps:$4 sm:$0xff]  }
0x1c8e   : > { %4067 = vmatpush1.bf16.msra.mxu0 %v6032_v30  ;;  %v6133_v30 = vld [vmem:[%s6471_s23 + $0x1d4] ss:$8 sps:$4 sm:$0xff]  }
0x1c8f   : > { %4068 = vmatprep.subr.bf16.mxu0 %v6037_v20  ;;  %4807 = vmatpush1.bf16.msra.mxu1 %v6083_v14  ;;  %v6131_v20 = vld [vmem:[%s6471_s23 + $0x1d0] ss:$8 sps:$4 sm:$0xff]   ;;  %v6136_v14 = vld [vmem:[%s6471_s23 + $0xd4] ss:$8 sps:$4 sm:$0xff]  }
0x1c90   : > { %4808 = vmatprep.subr.bf16.mxu1 %v6091_v4  ;;  %v6134_v4 = vld [vmem:[%s6471_s23 + $0xd0] ss:$8 sps:$4 sm:$0xff]  }
0x1c92   : > { %4069 = vmatpush1.bf16.msra.mxu0 %v6035_v15  ;;  %v6139_v15 = vld [vmem:[%s6471_s23 + $0x1e4] ss:$8 sps:$4 sm:$0xff]  }
0x1c93   : > { %4070 = vmatprep.subr.bf16.mxu0 %v6040_v5  ;;  %4809 = vmatpush1.bf16.msra.mxu1 %v6089_v33  ;;  %v6137_v5 = vld [vmem:[%s6471_s23 + $0x1e0] ss:$8 sps:$4 sm:$0xff]   ;;  %v6142_v33 = vld [vmem:[%s6471_s23 + $0xe4] ss:$8 sps:$4 sm:$0xff]  }
0x1c94   : > { %4810 = vmatprep.subr.bf16.mxu1 %v6097_v40  ;;  %v6140_v40 = vld [vmem:[%s6471_s23 + $0xe0] ss:$8 sps:$4 sm:$0xff]  }
0x1c96   : > { %4071 = vmatpush1.bf16.msra.mxu0 %v6038_v43  ;;  %v6145_v43 = vld [vmem:[%s6471_s23 + $0x1f4] ss:$8 sps:$4 sm:$0xff]  }
0x1c97   : > { %4072 = vmatprep.subr.bf16.mxu0 %v6043_v58  ;;  %4811 = vmatpush1.bf16.msra.mxu1 %v6095_v39  ;;  %v6143_v58 = vld [vmem:[%s6471_s23 + $0x1f0] ss:$8 sps:$4 sm:$0xff]   ;;  %v6148_v39 = vld [vmem:[%s6471_s23 + $0xf4] ss:$8 sps:$4 sm:$0xff]  }
0x1c98   : > { %4812 = vmatprep.subr.bf16.mxu1 %v6103_v56  ;;  %v6146_v56 = vld [vmem:[%s6471_s23 + $0xf0] ss:$8 sps:$4 sm:$0xff]  }
0x1c9a   : > { %4073 = vmatpush1.bf16.msra.mxu0 %v6041_v0  ;;  %v6151_v0 = vld [vmem:[%s6471_s23 + $0x204] ss:$8 sps:$4 sm:$0xff]  }
0x1c9b   : > { %4074 = vmatprep.subr.bf16.mxu0 %v6046_v36  ;;  %4813 = vmatpush1.bf16.msra.mxu1 %v6101_v18  ;;  %v7278_v36 = vld [vmem:[%s6466_s26] sm:$0x3f] }
0x1c9c   : > { %4814 = vmatprep.subr.bf16.mxu1 %v6109_v34  ;;  %v3580_v18 = vrot.slane %v7278_v36, %v6562_v23  ;;  %v3588_v34 = vrot.slane %v7278_v36, %v906_v61 }
0x1c9e   : > { %4075 = vmatpush1.bf16.msra.mxu0 %v6044_v37  ;;  %v3584_v37 = vrot.slane %v7278_v36, %v6559_v22 }
0x1c9f   : > { %4076 = vmatprep.subr.bf16.mxu0 %v6049_v29  ;;  %4815 = vmatpush1.bf16.msra.mxu1 %v6107_v41  ;;  %v3592_v29 = vrot.slane %v7278_v36, %v910_v59 }
0x1ca0   : > { %4816 = vmatprep.subr.bf16.mxu1 %v6115_v2 }
0x1ca2   : > { %4077 = vmatpush1.bf16.msra.mxu0 %v6047_v44 }
0x1ca3   : > { %4078 = vmatprep.subr.bf16.mxu0 %v6052_v8  ;;  %4817 = vmatpush1.bf16.msra.mxu1 %v6113_v1 }
0x1ca4   : > { %4818 = vmatprep.subr.bf16.mxu1 %v6121_v54 }
0x1ca6   : > { %4079 = vmatpush1.bf16.msra.mxu0 %v6050_v32 }
0x1ca7   : > { %4753 = vmatprep.subr.bf16.mxu0 %v6058_v55  ;;  %4819 = vmatpush1.bf16.msra.mxu1 %v6119_v47 }
0x1ca8   : > { %4820 = vmatprep.subr.bf16.mxu1 %v6127_v9 }
0x1ca9   : > { %4089 = vmatmul.mubr.bf16.vlgmr.msra.gmra.mrb[76].mxu0 %v7183_v42  ;;  %v6094_v42 = vld [vmem:[%s6471_s23 + $0x64] ss:$8 sps:$4 sm:$0xff]  }
0x1caa   : > { %4754 = vmatpush1.bf16.msra.mxu0 %v6056_v12 }
0x1cab   : > { %4755 = vmatprep.subr.bf16.mxu0 %v6064_v38  ;;  %4821 = vmatpush1.bf16.msra.mxu1 %v6125_v50 }
0x1cac   : > { %4822 = vmatprep.subr.bf16.mxu1 %v6133_v30 }
0x1cae   : > { %4756 = vmatpush1.bf16.msra.mxu0 %v6062_v31 }
0x1caf   : > { %4757 = vmatprep.subr.bf16.mxu0 %v6070_v25  ;;  %4823 = vmatpush1.bf16.msra.mxu1 %v6131_v20 }
0x1cb0   : > { %4824 = vmatprep.subr.bf16.mxu1 %v6139_v15 }
0x1cb2   : > { %4758 = vmatpush1.bf16.msra.mxu0 %v6068_v45 }
0x1cb3   : > { %4759 = vmatprep.subr.bf16.mxu0 %v6076_v24  ;;  %4825 = vmatpush1.bf16.msra.mxu1 %v6137_v5 }
0x1cb4   : > { %4826 = vmatprep.subr.bf16.mxu1 %v6145_v43 }
0x1cb6   : > { %4760 = vmatpush1.bf16.msra.mxu0 %v6074_v35 }
0x1cb7   : > { %4761 = vmatprep.subr.bf16.mxu0 %v6082_v57  ;;  %4827 = vmatpush1.bf16.msra.mxu1 %v6143_v58 }
0x1cb8   : > { %4839 = vmatprep.subr.bf16.mxu1 %v6151_v0 }
0x1cba   : > { %4762 = vmatpush1.bf16.msra.mxu0 %v6080_v62 }
0x1cbb   : > { %4763 = vmatprep.subr.bf16.mxu0 %v6088_v48 }
0x1cbe   : > { %4764 = vmatpush1.bf16.msra.mxu0 %v6086_v63 }
0x1cbf   : > { %4765 = vmatprep.subr.bf16.mxu0 %v6094_v42 }
0x1cc2   : > { %4766 = vmatpush1.bf16.msra.mxu0 %v6092_v51 }
0x1cc3   : > { %4767 = vmatprep.subr.bf16.mxu0 %v6100_v52 }
0x1cc6   : > { %4768 = vmatpush1.bf16.msra.mxu0 %v6098_v16 }
0x1cc7   : > { %4769 = vmatprep.subr.bf16.mxu0 %v6106_v17 }
0x1cca   : > { %4770 = vmatpush1.bf16.msra.mxu0 %v6104_v6 }
0x1ccb   : > { %4771 = vmatprep.subr.bf16.mxu0 %v6112_v53 }
0x1cce   : > { %4772 = vmatpush1.bf16.msra.mxu0 %v6110_v27 }
0x1ccf   : > { %4773 = vmatprep.subr.bf16.mxu0 %v6118_v7 }
0x1cd2   : > { %4774 = vmatpush1.bf16.msra.mxu0 %v6116_v28 }
0x1cd3   : > { %4775 = vmatprep.subr.bf16.mxu0 %v6124_v3 }
0x1cd6   : > { %4776 = vmatpush1.bf16.msra.mxu0 %v6122_v49 }
0x1cd7   : > { %4777 = vmatprep.subr.bf16.mxu0 %v6130_v13 }
0x1cda   : > { %4778 = vmatpush1.bf16.msra.mxu0 %v6128_v46 }
0x1cdb   : > { %4779 = vmatprep.subr.bf16.mxu0 %v6136_v14 }
0x1cde   : > { %4780 = vmatpush1.bf16.msra.mxu0 %v6134_v4 }
0x1cdf   : > { %4781 = vmatprep.subr.bf16.mxu0 %v6142_v33 }
0x1ce2   : > { %4782 = vmatpush1.bf16.msra.mxu0 %v6140_v40 }
0x1ce3   : > { %4783 = vmatprep.subr.bf16.mxu0 %v6148_v39 }
0x1ce6   : > { %4784 = vmatpush1.bf16.msra.mxu0 %v6146_v56 }
0x1d4c   : > { %v4004_v41 = vpop.f32.mrb[72].mxu0  ;;  %v4047_v44 = vpop.f32.mrb[84].mxu1 }
0x1d4d   : > { %v4005_v8 = vadd.f32 %v4004_v41, %v3580_v18  ;;  %v4048_v32 = vadd.f32 %v4047_v44, %v3588_v34  ;;  %v4006_v55 = vpop.f32.mrb[73].mxu0  ;;  %v4049_v12 = vpop.f32.mrb[85].mxu1 }
0x1d4e   : > { %v4007_v38 = vadd.f32 %v4006_v55, %v3584_v37  ;;  %v4050_v31 = vadd.f32 %v4049_v12, %v3592_v29  ;;  %v4008_v25 = vpop.f32.mrb[74].mxu0  ;;  %v4051_v45 = vpop.f32.mrb[86].mxu1  ;;  %v6149_v12 = vld [vmem:[%s6471_s23 + $0x200] ss:$8 sps:$4 sm:$0xff]  }
0x1d4f   : > { %v4111_v24 = vmul.f32 0.70710677, %v4005_v8  ;;  %v4113_v35 = vmul.f32 0.70710677, %v4048_v32  ;;  %v4009_v62 = vadd.f32 %v4008_v25, %v3580_v18  ;;  %v4052_v48 = vadd.f32 %v4051_v45, %v3588_v34  ;;  %v4010_v63 = vpop.f32.mrb[75].mxu0  ;;  %v4053_v42 = vpop.f32.mrb[87].mxu1 }
0x1d50   : > { %v4112_v61 = vmul.f32 0.70710677, %v4007_v38  ;;  %v4114_v57 = vmul.f32 0.70710677, %v4050_v31  ;;  %v4011_v59 = vadd.f32 %v4010_v63, %v3584_v37  ;;  %v4054_v51 = vadd.f32 %v4053_v42, %v3592_v29  ;;  %v6157_v25 = vld [vmem:[%s6471_s23 + $0x224] ss:$8 sps:$4 sm:$0xff]  }
0x1d51   : > { %6253 = verf.f32 %v4111_v24  ;;  %v4117_v52 = vmul.f32 0.70710677, %v4009_v62  ;;  %v4119_v16 = vmul.f32 0.70710677, %v4052_v48  ;;  %v4099_v54 = vmul.f32 0.5, %v4005_v8 }
0x1d52   : > { %6255 = verf.f32 %v4113_v35  ;;  %v4118_v17 = vmul.f32 0.70710677, %v4011_v59  ;;  %v4120_v6 = vmul.f32 0.70710677, %v4054_v51  ;;  %v4101_v47 = vmul.f32 0.5, %v4048_v32 }
0x1d53   : > { %6257 = verf.f32 %v4112_v61  ;;  %v4100_v9 = vmul.f32 0.5, %v4007_v38  ;;  %v4105_v13 = vmul.f32 0.5, %v4009_v62  ;;  %v4102_v20 = vmul.f32 0.5, %v4050_v31  ;;  %v6154_v38 = vld [vmem:[%s6471_s23 + $0x214] ss:$8 sps:$4 sm:$0xff]  }
0x1d54   : > { %6259 = verf.f32 %v4114_v57  ;;  %v4107_v4 = vmul.f32 0.5, %v4052_v48  ;;  %v4106_v43 = vmul.f32 0.5, %v4011_v59  ;;  %v4108_v0 = vmul.f32 0.5, %v4054_v51  ;;  %v6152_v31 = vld [vmem:[%s6471_s23 + $0x210] ss:$8 sps:$4 sm:$0xff]  }
0x1d55   : > { %6261 = verf.f32 %v4117_v52  ;;  %v6155_v45 = vld [vmem:[%s6471_s23 + $0x220] ss:$8 sps:$4 sm:$0xff]   ;;  %v6160_v24 = vld [vmem:[%s6471_s23 + $0x234] ss:$8 sps:$4 sm:$0xff]   ;;  %v6158_v35 = vld [vmem:[%s6471_s23 + $0x230] ss:$8 sps:$4 sm:$0xff]   ;;  %v3596_v63 = vrot.slane %v7278_v36, %v914_v26 }
0x1d56   : > { %6263 = verf.f32 %v4119_v16  ;;  %v6163_v61 = vld [vmem:[%s6471_s23 + $0x244] ss:$8 sps:$4 sm:$0xff]   ;;  %v3599_v57 = vsub.s32 5, %v6556_v21  ;;  %v6161_v62 = vld [vmem:[%s6471_s23 + $0x240] ss:$8 sps:$4 sm:$0xff]  }
0x1d57   : > { %6265 = verf.f32 %v4118_v17  ;;  %v6166_v48 = vld [vmem:[%s6471_s23 + $0x254] ss:$8 sps:$4 sm:$0xff]   ;;  %v6164_v59 = vld [vmem:[%s6471_s23 + $0x250] ss:$8 sps:$4 sm:$0xff]   ;;  %v6169_v52 = vld [vmem:[%s6471_s23 + $0x264] ss:$8 sps:$4 sm:$0xff]  }
0x1d58   : > { %6267 = verf.f32 %v4120_v6  ;;  %v3600_v42 = vrot.slane %v7278_v36, %v3599_v57  ;;  %v6167_v21 = vld [vmem:[%s6471_s23 + $0x260] ss:$8 sps:$4 sm:$0xff]  }
0x1d5b   : > { %v6254_v53 = vpop.eup %6253 }
0x1d5c   : > { %v6256_v27 = vpop.eup %6255  ;;  %v4135_v7 = vadd.f32 1.0, %v6254_v53 }
0x1d5d   : > { %v6258_v2 = vpop.eup %6257  ;;  %v4137_v3 = vadd.f32 1.0, %v6256_v27 }
0x1d5e   : > { %v6260_v1 = vpop.eup %6259  ;;  %v4136_v50 = vadd.f32 1.0, %v6258_v2  ;;  %v4147_v33 = vmul.f32 %v4135_v7, %v4099_v54  ;;  %v6172_v7 = vld [vmem:[%s6471_s23 + $0x274] ss:$8 sps:$4 sm:$0xff]  }
0x1d5f   : > { %v6262_v28 = vpop.eup %6261  ;;  %v4138_v14 = vadd.f32 1.0, %v6260_v1  ;;  %v4149_v39 = vmul.f32 %v4137_v3, %v4101_v47  ;;  %v6170_v47 = vld [vmem:[%s6471_s23 + $0x270] ss:$8 sps:$4 sm:$0xff]   ;;  %v6175_v3 = vld [vmem:[%s6471_s23 + $0x284] ss:$8 sps:$4 sm:$0xff]  }
0x1d60   : > { %v6264_v49 = vpop.eup %6263  ;;  %v4141_v46 = vadd.f32 1.0, %v6262_v28  ;;  %v4148_v34 = vmul.f32 %v4136_v50, %v4100_v9  ;;  %v6178_v9 = vld [vmem:[%s6471_s23 + $0x294] ss:$8 sps:$4 sm:$0xff]  }
0x1d61   : > { %v6266_v30 = vpop.eup %6265  ;;  %v4143_v15 = vadd.f32 1.0, %v6264_v49  ;;  %v4150_v41 = vmul.f32 %v4138_v14, %v4102_v20  ;;  %v6173_v49 = vld [vmem:[%s6471_s23 + $0x280] ss:$8 sps:$4 sm:$0xff]   ;;  %v6181_v20 = vld [vmem:[%s6471_s23 + $0x2a4] ss:$8 sps:$4 sm:$0xff]  }
0x1d62   : > { %v6268_v5 = vpop.eup %6267  ;;  %v4153_v40 = vmul.f32 %v4141_v46, %v4105_v13  ;;  %v4142_v58 = vadd.f32 1.0, %v6266_v30  ;;  %v6176_v13 = vld [vmem:[%s6471_s23 + $0x290] ss:$8 sps:$4 sm:$0xff]  }
0x1d63   : > { %v4155_v56 = vmul.f32 %v4143_v15, %v4107_v4  ;;  %v4144_v18 = vadd.f32 1.0, %v6268_v5 }
0x1d64   : > { %v4159_v37 = vpack.c.bf16 %v4153_v40, %v4147_v33  ;;  %v4154_v29 = vmul.f32 %v4142_v58, %v4106_v43 }
0x1d65   : > { %v4161_v44 = vpack.c.bf16 %v4155_v56, %v4149_v39  ;;  %v4156_v8 = vmul.f32 %v4144_v18, %v4108_v0  ;;  %v6179_v56 = vld [vmem:[%s6471_s23 + $0x2a0] ss:$8 sps:$4 sm:$0xff]  }
0x1d66   : > { %v4160_v32 = vpack.c.bf16 %v4154_v29, %v4148_v34  ;;  %v6184_v34 = vld [vmem:[%s6471_s23 + $0x2b4] ss:$8 sps:$4 sm:$0xff]  }
0x1d67   : > { %v4162_v55 = vpack.c.bf16 %v4156_v8, %v4150_v41 }
0x1d68   : > { %4785 = vmatprep.mubr.bf16.mxu0 %v4160_v32  ;;  %v6187_v32 = vld [vmem:[%s6471_s23 + $0x2c4] ss:$8 sps:$4 sm:$0xff]  }
0x1d69   : > { %4828 = vmatprep.mubr.bf16.mxu1 %v4162_v55  ;;  %4786 = vmatmul.mubr.bf16.vlgmr.msra.gmra.mrb[80].mxu0 %v4159_v37  ;;  %v6185_v55 = vld [vmem:[%s6471_s23 + $0x2c0] ss:$8 sps:$4 sm:$0xff]  }
0x1d6a   : > { %4829 = vmatmul.mubr.bf16.vlgmr.msra.gmra.mrb[88].mxu1 %v4161_v44  ;;  %v6182_v44 = vld [vmem:[%s6471_s23 + $0x2b0] ss:$8 sps:$4 sm:$0xff]  }
0x1d6b   : > { %4840 = vmatpush1.bf16.msra.mxu1 %v6149_v12  ;;  %v6190_v12 = vld [vmem:[%s6471_s23 + $0x2d4] ss:$8 sps:$4 sm:$0xff]  }
0x1d6c   : > { %4841 = vmatprep.subr.bf16.mxu1 %v6154_v38  ;;  %v6188_v38 = vld [vmem:[%s6471_s23 + $0x2d0] ss:$8 sps:$4 sm:$0xff]  }
0x1d6f   : > { %4842 = vmatpush1.bf16.msra.mxu1 %v6152_v31  ;;  %v6193_v31 = vld [vmem:[%s6471_s23 + $0x2e4] ss:$8 sps:$4 sm:$0xff]  }
0x1d70   : > { %4843 = vmatprep.subr.bf16.mxu1 %v6157_v25  ;;  %v6191_v25 = vld [vmem:[%s6471_s23 + $0x2e0] ss:$8 sps:$4 sm:$0xff]  }
0x1d73   : > { %4844 = vmatpush1.bf16.msra.mxu1 %v6155_v45  ;;  %v6196_v45 = vld [vmem:[%s6471_s23 + $0x2f4] ss:$8 sps:$4 sm:$0xff]  }
0x1d74   : > { %4845 = vmatprep.subr.bf16.mxu1 %v6160_v24  ;;  %v6194_v24 = vld [vmem:[%s6471_s23 + $0x2f0] ss:$8 sps:$4 sm:$0xff]  }
0x1d77   : > { %4846 = vmatpush1.bf16.msra.mxu1 %v6158_v35 }
0x1d78   : > { %4847 = vmatprep.subr.bf16.mxu1 %v6163_v61 }
0x1d7b   : > { %4848 = vmatpush1.bf16.msra.mxu1 %v6161_v62 }
0x1d7c   : > { %4849 = vmatprep.subr.bf16.mxu1 %v6166_v48  ;;  %v4090_v51 = vpop.f32.mrb[76].mxu0  ;;  %v4261_v48 = vld [vmem:[%s7442_s20] sm:$0x3] }
0x1d7d   : > { %v4091_v16 = vadd.f32 %v4090_v51, %v3596_v63  ;;  %v4092_v17 = vpop.f32.mrb[77].mxu0 }
0x1d7e   : > { %v4093_v6 = vadd.f32 %v4092_v17, %v3600_v42  ;;  %v4094_v53 = vpop.f32.mrb[78].mxu0 }
0x1d7f   : > { %4850 = vmatpush1.bf16.msra.mxu1 %v6164_v59  ;;  %v4115_v27 = vmul.f32 0.70710677, %v4091_v16  ;;  %v4095_v2 = vadd.f32 %v4094_v53, %v3596_v63  ;;  %v4096_v1 = vpop.f32.mrb[79].mxu0  ;;  %v4103_v5 = vmul.f32 0.5, %v4091_v16  ;;  %v4266_v63 = vrot.slane %v4261_v48, %v6562_v23 }
0x1d80   : > { %v4116_v26 = vmul.f32 0.70710677, %v4093_v6  ;;  %4851 = vmatprep.subr.bf16.mxu1 %v6169_v52  ;;  %v4097_v36 = vadd.f32 %v4096_v1, %v3600_v42  ;;  %v4104_v43 = vmul.f32 0.5, %v4093_v6  ;;  %v4270_v42 = vrot.slane %v4261_v48, %v6559_v22 }
0x1d81   : > { %6269 = verf.f32 %v4115_v27  ;;  %v4121_v28 = vmul.f32 0.70710677, %v4095_v2  ;;  %v4109_v33 = vmul.f32 0.5, %v4095_v2 }
0x1d82   : > { %6271 = verf.f32 %v4116_v26  ;;  %v4122_v54 = vmul.f32 0.70710677, %v4097_v36  ;;  %v4110_v58 = vmul.f32 0.5, %v4097_v36 }
0x1d83   : > { %6273 = verf.f32 %v4121_v28  ;;  %4852 = vmatpush1.bf16.msra.mxu1 %v6167_v21 }
0x1d84   : > { %6275 = verf.f32 %v4122_v54  ;;  %4853 = vmatprep.subr.bf16.mxu1 %v6172_v7 }
0x1d87   : > { %4854 = vmatpush1.bf16.msra.mxu1 %v6170_v47 }
0x1d88   : > { %4855 = vmatprep.subr.bf16.mxu1 %v6175_v3 }
0x1d8b   : > { %v6270_v50 = vpop.eup %6269  ;;  %4856 = vmatpush1.bf16.msra.mxu1 %v6173_v49  ;;  %v6311_v49 = vmov (!%p5583_p5), 0  }
0x1d8c   : > { %v6272_v46 = vpop.eup %6271  ;;  %v4139_v30 = vadd.f32 1.0, %v6270_v50  ;;  %4857 = vmatprep.subr.bf16.mxu1 %v6178_v9  ;;  %5070 = vmatprep.subr.bf16.mxu0 (!%p5583_p5), %v6311_v49  ;;  %v6283_v9 = vld [vmem:[%s7444_s13 + $0x10] sm:$0xff] (!%p5583_p5)   ;;  %v6284_v50 = vld [vmem:[%s7444_s13 + $0x18] sm:$0xff] (!%p5583_p5)  }
0x1d8d   : > { %v6274_v14 = vpop.eup %6273  ;;  %v4140_v4 = vadd.f32 1.0, %v6272_v46 }
0x1d8e   : > { %v6276_v15 = vpop.eup %6275  ;;  %v4145_v40 = vadd.f32 1.0, %v6274_v14  ;;  %v4151_v0 = vmul.f32 %v4139_v30, %v4103_v5 }
0x1d8f   : > { %v4146_v39 = vadd.f32 1.0, %v6276_v15  ;;  %4858 = vmatpush1.bf16.msra.mxu1 %v6176_v13  ;;  %v4152_v37 = vmul.f32 %v4140_v4, %v4104_v43  ;;  %v6285_v13 = vld [vmem:[%s7444_s13 + $0x20] sm:$0xff] (!%p5583_p5)  }
0x1d90   : > { %v4157_v18 = vmul.f32 %v4145_v40, %v4109_v33  ;;  %4859 = vmatprep.subr.bf16.mxu1 %v6181_v20 }
0x1d91   : > { %v4158_v29 = vmul.f32 %v4146_v39, %v4110_v58 }
0x1d92   : > { %v4163_v41 = vpack.c.bf16 %v4157_v18, %v4151_v0 }
0x1d93   : > { %4860 = vmatpush1.bf16.msra.mxu1 %v6179_v56  ;;  %v4164_v8 = vpack.c.bf16 %v4158_v29, %v4152_v37  ;;  %v6286_v37 = vld [vmem:[%s7444_s13 + $0x28] sm:$0xff] (!%p5583_p5)   ;;  %v6287_v29 = vld [vmem:[%s7444_s13 + $0x30] sm:$0xff] (!%p5583_p5)  }
0x1d94   : > { %4861 = vmatprep.subr.bf16.mxu1 %v6184_v34 }
0x1d95   : > { %4871 = vmatprep.mubr.bf16.mxu1 %v4164_v8  ;;  %v6290_v8 = vld [vmem:[%s7444_s13 + $0x48] sm:$0xff] (!%p5583_p5)  }
0x1d97   : > { %4862 = vmatpush1.bf16.msra.mxu1 %v6182_v44  ;;  %v6289_v44 = vld [vmem:[%s7444_s13 + $0x40] sm:$0xff] (!%p5583_p5)  }
0x1d98   : > { %4863 = vmatprep.subr.bf16.mxu1 %v6187_v32  ;;  %v6291_v32 = vld [vmem:[%s7444_s13 + $0x50] sm:$0xff] (!%p5583_p5)  }
0x1d9b   : > { %4864 = vmatpush1.bf16.msra.mxu1 %v6185_v55  ;;  %v6292_v55 = vld [vmem:[%s7444_s13 + $0x58] sm:$0xff] (!%p5583_p5)  }
0x1d9c   : > { %4865 = vmatprep.subr.bf16.mxu1 %v6190_v12 }
0x1d9f   : > { %4866 = vmatpush1.bf16.msra.mxu1 %v6188_v38 }
0x1da0   : > { %4867 = vmatprep.subr.bf16.mxu1 %v6193_v31 }
0x1da3   : > { %4868 = vmatpush1.bf16.msra.mxu1 %v6191_v25 }
0x1da4   : > { %4869 = vmatprep.subr.bf16.mxu1 %v6196_v45 }
0x1da7   : > { %4870 = vmatpush1.bf16.msra.mxu1 %v6194_v24 }
0x1daa   : > { %4872 = vmatmul.mubr.bf16.vlgmr.msra.gmra.mrb[88].mxu1 %v4163_v41  ;;  %v6288_v41 = vld [vmem:[%s7444_s13 + $0x38] sm:$0xff] (!%p5583_p5)  }
0x1e3c   : > { %v4787_v35 = vpop.f32.mrb[80].mxu0 }
0x1e3d   : > { %v4789_v61 = vpop.f32.mrb[81].mxu0  ;;  %v4788_v59 = vadd.f32 %v4787_v35, %v4266_v63  ;;  %v4894_v35 = vld [vmem:[%s7445_s14] sm:$0x3] (!%p5583_p5) }
0x1e3e   : > { %v4791_v57 = vpop.f32.mrb[82].mxu0  ;;  %v4790_v51 = vadd.f32 %v4789_v61, %v4270_v42  ;;  %v4936_v48 = vrot.slane (!%p5583_p5), %v4894_v35, %v6562_v23 }
0x1e3f   : > { %v4793_v62 = vpop.f32.mrb[83].mxu0  ;;  %v4792_v16 = vadd.f32 %v4791_v57, %v4266_v63  ;;  %v4895_v57 = vld [vmem:[%s7446_s27] sm:$0x3] (!%p5583_p5)  ;;  %v4940_v63 = vrot.slane (!%p5583_p5), %v4894_v35, %v6559_v22 }
0x1e40   : > { %v4794_v53 = vadd.f32 %v4793_v62, %v4270_v42 }
0x1e7d   : > { %v4873_v52 = vpop.f32.mrb[88].mxu1 }
0x1e7e   : > { %v5793_v17 = vadd.f32 %v4873_v52, %v4788_v59  ;;  %v4875_v6 = vpop.f32.mrb[89].mxu1  ;;  %v4955_v52 = vrot.slane (!%p5583_p5), %v4895_v57, %v6559_v22 }
0x1e7f   : > { %v5795_v27 = vadd.f32 %v4875_v6, %v4790_v51  ;;  %v4877_v2 = vpop.f32.mrb[90].mxu1  ;;  %4893 = sbr.rel (%p5583_p5) target bundleno = 8352 (0x20a0), region = 96  ;;  %v4951_v51 = vrot.slane (!%p5583_p5), %v4895_v57, %v6562_v23 }
0x1e80   : > { %v4882_v21 = vadd.f32 %v5793_v17, %v7075_v19  ;;  %v5797_v1 = vadd.f32 %v4877_v2, %v4792_v16  ;;  %v4879_v26 = vpop.f32.mrb[91].mxu1 }
0x1e81   : > { %v4883_v36 = vadd.f32 %v5795_v27, %v7067_v11  ;;  %v5799_v7 = vadd.f32 %v4879_v26, %v4794_v53 }
0x1e82   : > { %4886 = vst [vmem:[#allocation2] sm:$0xff] %v4882_v21  ;;  %v4884_v28 = vadd.f32 %v5797_v1, %v7095_v10  ;;  %v6281_v10 = vld [vmem:[%s7444_s13] sm:$0xff] (!%p5583_p5)  }
0x1e83   : > { %4887 = vst.msk [vmem:[#allocation2 + $0x8] sm:$0xff] %vm752_vm1, %v4883_v36  ;;  %v4885_v54 = vadd.f32 %v5799_v7, %v7091_v60  ;;  %v4896_v19 = vsel (!%p5583_p5), %vm752_vm1, %v4883_v36, 0.0  ;;  %5071 = vmatpush1.bf16.msra.mxu0 (!%p5583_p5), %v6281_v10  ;;  %v6282_v60 = vld [vmem:[%s7444_s13 + $0x8] sm:$0xff] (!%p5583_p5)  }
0x1e84   : > { %4888 = vst [vmem:[#allocation2 + $0x10] sm:$0xff] %v4884_v28  ;;  %v4897_v3 = vadd.f32 (!%p5583_p5), %v4896_v19, %v4882_v21  ;;  %5072 = vmatprep.subr.bf16.mxu0 (!%p5583_p5), %v6311_v49 }
0x1e85   : > { %4889 = vst.msk [vmem:[#allocation2 + $0x18] sm:$0xff] %vm752_vm1, %v4885_v54  ;;  %v4900_v47 = vsel (!%p5583_p5), %vm752_vm1, %v4885_v54, 0.0 }
0x1e86   : > { %4898 = vadd.xlane.f32.xlu0 %v4897_v3  ;;  %v4901_v11 = vadd.f32 %v4900_v47, %v4884_v28 }
0x1e87   : > { %5073 = vmatpush1.bf16.msra.mxu0 %v6282_v60 }
0x1e88   : > { %5074 = vmatprep.subr.bf16.mxu0 %v6311_v49 }
0x1e8a   : > { %4902 = vadd.xlane.f32.xlu0 %v4901_v11 }
0x1e8b   : > { %5075 = vmatpush1.bf16.msra.mxu0 %v6283_v9 }
0x1e8c   : > { %5076 = vmatprep.subr.bf16.mxu0 %v6311_v49 }
0x1e8f   : > { %5077 = vmatpush1.bf16.msra.mxu0 %v6284_v50 }
0x1e90   : > { %5078 = vmatprep.subr.bf16.mxu0 %v6311_v49 }
0x1e93   : > { %5079 = vmatpush1.bf16.msra.mxu0 %v6285_v13 }
0x1e94   : > { %5080 = vmatprep.subr.bf16.mxu0 %v6311_v49 }
0x1e97   : > { %5081 = vmatpush1.bf16.msra.mxu0 %v6286_v37 }
0x1e98   : > { %5082 = vmatprep.subr.bf16.mxu0 %v6311_v49 }
0x1e9b   : > { %5083 = vmatpush1.bf16.msra.mxu0 %v6287_v29 }
0x1e9c   : > { %5084 = vmatprep.subr.bf16.mxu0 %v6311_v49 }
0x1e9f   : > { %5085 = vmatpush1.bf16.msra.mxu0 %v6288_v41 }
0x1ea0   : > { %5086 = vmatprep.subr.bf16.mxu0 %v6311_v49 }
0x1ea3   : > { %5087 = vmatpush1.bf16.msra.mxu0 %v6289_v44 }
0x1ea4   : > { %5088 = vmatprep.subr.bf16.mxu0 %v6311_v49 }
0x1ea7   : > { %5089 = vmatpush1.bf16.msra.mxu0 %v6290_v8 }
0x1ea8   : > { %5090 = vmatprep.subr.bf16.mxu0 %v6311_v49 }
0x1eab   : > { %5091 = vmatpush1.bf16.msra.mxu0 %v6291_v32 }
0x1eac   : > { %5092 = vmatprep.subr.bf16.mxu0 %v6311_v49 }
0x1eaf   : > { %5093 = vmatpush1.bf16.msra.mxu0 %v6292_v55 }
0x1f13   : > { %v4899_v46 = vpop.xlane.xlu0 %4898 }
0x1f14   : > { %v4904_v30 = vmul.f32 0.0052083335, %v4899_v46 }
0x1f16   : > { %v4906_v20 = vsub.f32 %v4882_v21, %v4904_v30  ;;  %v4907_v14 = vsub.f32 %v4883_v36, %v4904_v30 }
0x1f17   : > { %v4903_v4 = vpop.xlane.xlu0 %4902 }
0x1f18   : > { %v4905_v15 = vmul.f32 0.0052083335, %v4903_v4  ;;  %v4910_v5 = vmul.f32 %v4906_v20, %v4906_v20  ;;  %v4911_v33 = vmul.f32 %v4907_v14, %v4907_v14 }
0x1f1a   : > { %v4908_v40 = vsub.f32 %v4884_v28, %v4905_v15  ;;  %v4909_v43 = vsub.f32 %v4885_v54, %v4905_v15  ;;  %v4914_v58 = vsel %vm752_vm1, %v4911_v33, 0.0  ;;  %v5584_v54 = vld [vmem:[#allocation3] ss:$0 sm:$0xff] }
0x1f1b   : > { %v4915_v39 = vadd.f32 %v4914_v58, %v4910_v5 }
0x1f1c   : > { %v4912_v56 = vmul.f32 %v4908_v40, %v4908_v40  ;;  %v4913_v0 = vmul.f32 %v4909_v43, %v4909_v43 }
0x1f1d   : > { %4916 = vadd.xlane.f32.xlu1 %v4915_v39 }
0x1f1e   : > { %v4918_v18 = vsel %vm752_vm1, %v4913_v0, 0.0 }
0x1f1f   : > { %v4919_v34 = vadd.f32 %v4918_v18, %v4912_v56 }
0x1f21   : > { %4920 = vadd.xlane.f32.xlu1 %v4919_v34 }
0x1faa   : > { %v4917_v12 = vpop.xlane.xlu1 %4916 }
0x1fab   : > { %v4922_v38 = vmul.f32 0.0052083335, %v4917_v12 }
0x1fad   : > { %v4924_v31 = vadd.f32 1e-05, %v4922_v38 }
0x1fae   : > { %v4921_v25 = vpop.xlane.xlu1 %4920 }
0x1faf   : > { %6293 = vrsqrt.f32 %v4924_v31  ;;  %v4923_v45 = vmul.f32 0.0052083335, %v4921_v25 }
0x1fb1   : > { %v4925_v24 = vadd.f32 1e-05, %v4923_v45 }
0x1fb3   : > { %6295 = vrsqrt.f32 %v4925_v24 }
0x1fb9   : > { %v6294_v61 = vpop.eup %6293 }
0x1fba   : > { %v4929_v62 = vmul.f32 %v6294_v61, %v4907_v14  ;;  %v4928_v42 = vmul.f32 %v6294_v61, %v4906_v20 }
0x1fbc   : > { %v4944_v17 = vmul.f32 %v4940_v63, %v4929_v62  ;;  %v4943_v53 = vmul.f32 %v4936_v48, %v4928_v42 }
0x1fbd   : > { %v6296_v59 = vpop.eup %6295 }
0x1fbe   : > { %v4931_v16 = vmul.f32 %v6296_v59, %v4909_v43  ;;  %v4930_v6 = vmul.f32 %v6296_v59, %v4908_v40  ;;  %v4959_v21 = vadd.f32 %v4955_v52, %v4944_v17  ;;  %v4958_v26 = vadd.f32 %v4951_v51, %v4943_v53 }
0x1fc0   : > { %v4946_v27 = vmul.f32 %v4940_v63, %v4931_v16  ;;  %v4945_v2 = vmul.f32 %v4936_v48, %v4930_v6 }
0x1fc2   : > { %v4961_v1 = vadd.f32 %v4955_v52, %v4946_v27  ;;  %v4960_v36 = vadd.f32 %v4951_v51, %v4945_v2 }
0x1fc4   : > { %v4963_v7 = vpack.c.bf16 %v4961_v1, %v4959_v21  ;;  %v4962_v28 = vpack.c.bf16 %v4960_v36, %v4958_v26 }
0x1fc6   : > { %5597 = vmatprep.mubr.msk.bf16.mxu0 %vm752_vm1, %v4963_v7 }
0x1fc7   : > { %5103 = vmatmul.mubr.bf16.vlgmr.msra.gmra.mrb[0].mxu0 %v4962_v28 }
0x209a   : > { %v5104_v19 = vpop.f32.mrb[0].mxu0 }
0x209b   : > { %v5105_v23 = vadd.f32 %v5584_v54, %v5104_v19  ;;  %v5106_v22 = vpop.f32.mrb[1].mxu0 }
0x209c   : > { %v5107_v47 = vpop.f32.mrb[2].mxu0 }
0x209d   : > { %5112 = vst.msk [vmem:[%s7447_s18] sm:$0xff] %vm5111_vm7, %v5105_v23  ;;  %v5108_v3 = vadd.f32 %v5584_v54, %v5107_v47  ;;  %v5109_v11 = vpop.f32.mrb[3].mxu0 }
0x209f   : > { %5113 = vst.msk [vmem:[%s7447_s18 + $0x8] sm:$0xff] %vm5111_vm7, %v5108_v3 }
0x20a0 PF: > { %s7448_s26 = sld [smem:[#allocation4_spill]] }
0x20a6   : > { %s29_s26 = sadd.s32 1, %s7448_s26  }
0x20a7   : > { %p26_p6 = scmp.ge.s32.totalorder %s29_s26, 4  }
0x20a9   :  { %28 = sbr.rel (!%p26_p6) target bundleno = 8 (0x8), region = 155 }

</bundles_post_ra>
